<compile_context>
chip_gen: v7x
topology: tpu7x:2x2x1
jax: 0.10.0
libtpu: 0.0.40
codegen_flags: <defaults>
</compile_context>

<pallas_src>
import jax
import jax.numpy as jnp
from jax.experimental import pallas as pl
from jax.experimental.pallas import tpu as pltpu

TAF = 1.0          # module default
FUN = "sqrt"       # module default

_LANES = 1024          # lane width per block (multiple of 128)
_MAX_BLOCK_ROWS = 128  # 5*128*1024*4 B = 2.5 MiB per input per grid step;
                       # double-buffered (2 inputs + output) ~= 11 MiB, under
                       # every generation's default scoped-VMEM limit.
_MIN_GRID_STEPS = 4    # keep a few steps so v7x's 2 TCs can split the grid
                       # and the DMA pipeline has depth.


def _kld_kernel(pred_ref, tgt_ref, out_ref):
    # pred_ref, tgt_ref: (5, TR, L) float32 in VMEM; out_ref: (TR, L) float32
    px = pred_ref[0]
    py = pred_ref[1]
    pw = pred_ref[2]
    ph = pred_ref[3]
    pa = pred_ref[4]

    tx = tgt_ref[0]
    ty = tgt_ref[1]
    tw = tgt_ref[2]
    th = tgt_ref[3]
    ta = tgt_ref[4]

    dx = px - tx
    dy = py - ty
    da = pa - ta

    cos_t = jnp.cos(ta)
    sin_t = jnp.sin(ta)

    tw2 = tw * tw
    th2 = th * th
    pw2 = pw * pw
    ph2 = ph * ph

    # Single EUP reciprocal shared by 1/tw^2 and 1/th^2 (2 cheap VALU muls
    # replace a second EUP reciprocal).
    rden = 1.0 / (tw2 * th2)
    rtw2 = th2 * rden          # == 1 / tw^2
    rth2 = tw2 * rden          # == 1 / th^2

    u = dx * cos_t + dy * sin_t
    v = dy * cos_t - dx * sin_t
    t1 = 2.0 * (u * u * rtw2 + v * v * rth2)

    sin_da = jnp.sin(da)
    sin_da2 = sin_da * sin_da
    cos_da2 = 1.0 - sin_da2                      # drop jnp.cos(da)
    t2 = 0.5 * (sin_da2 * (ph2 * rtw2 + pw2 * rth2)
                + cos_da2 * (ph2 * rth2 + pw2 * rtw2))

    # 0.5*(log(th^2/ph^2) + log(tw^2/pw^2)) fused into one log, reusing rden so
    # no extra divide is needed.  (Can under/overflow only for extremely
    # degenerate boxes; reference sums two separate logs.)
    t3 = -0.5 * jnp.log(ph2 * pw2 * rden)

    kld = t1 + t2 + t3 - 1.0

    if FUN == "sqrt":
        kld = jnp.sqrt(jnp.maximum(kld, 1e-07))
    elif FUN == "log1p":
        kld = jnp.log1p(jnp.maximum(kld, 1e-07))
    # else: pass

    # exact divide on the output (approx reciprocal can exceed 1e-5 tolerance)
    out_ref[...] = 1.0 - 1.0 / (TAF + kld)


def kld_loss_pallas(pred, target):
    """pred, target: arrays whose trailing dim (after flattening) is 5.
    Returns per-box loss of shape (N,), matching the PyTorch module."""
    pred = jnp.asarray(pred, jnp.float32).reshape(-1, 5)
    target = jnp.asarray(target, jnp.float32).reshape(-1, 5)
    n = pred.shape[0]

    L = _LANES
    rows = max(1, pl.cdiv(n, L))

    # Block rows: multiple of 8, capped at _MAX_BLOCK_ROWS (2.5 MiB / input /
    # step), sized so the 1-D grid keeps ~_MIN_GRID_STEPS steps for mid/large N
    # (megacore sharding + pipeline depth).
    block_rows = pl.cdiv(rows, _MIN_GRID_STEPS)
    block_rows = pl.cdiv(block_rows, 8) * 8          # round up to multiple of 8
    block_rows = max(8, min(_MAX_BLOCK_ROWS, block_rows))

    # Ragged tail handled by Pallas partial-block semantics: last block may be
    # partial in rows (garbage reads are per-lane isolated, OOB writes dropped).
    grid = pl.cdiv(rows, block_rows)

    # Single layout pass: (N,5) -> (5,N) struct-of-arrays, then pad at most
    # L-1 benign (w=h=1) boxes so the reshape to (5, rows, L) is rectangular.
    # allow_input_fusion below lets XLA fuse this copy into the pallas_call
    # operands instead of materializing it separately in HBM.
    # TODO(synk): accepting a channels-first (5, N) layout upstream would
    # remove the transpose entirely.
    pad = rows * L - n
    pred_t = jnp.pad(pred.T, ((0, 0), (0, pad)),
                     constant_values=1.0).reshape(5, rows, L)
    tgt_t = jnp.pad(target.T, ((0, 0), (0, pad)),
                    constant_values=1.0).reshape(5, rows, L)

    out = pl.pallas_call(
        _kld_kernel,
        out_shape=jax.ShapeDtypeStruct((rows, L), jnp.float32),
        grid_spec=pltpu.PrefetchScalarGridSpec(
            num_scalar_prefetch=0,
            grid=(grid,),
            in_specs=[
                pl.BlockSpec((5, block_rows, L), lambda i: (0, i, 0)),
                pl.BlockSpec((5, block_rows, L), lambda i: (0, i, 0)),
            ],
            out_specs=pl.BlockSpec((block_rows, L), lambda i: (i, 0)),
        ),
        compiler_params=pltpu.CompilerParams(
            dimension_semantics=("parallel",),
            allow_input_fusion=[True, True],
        ),
    )(pred_t, tgt_t)

    return out.reshape(-1)[:n]


def kld_loss_ref(pred, target):
    """Pure-JAX reference mirroring the PyTorch forward."""
    pred = jnp.asarray(pred, jnp.float32).reshape(-1, 5)
    target = jnp.asarray(target, jnp.float32).reshape(-1, 5)
    dx = pred[:, 0] - target[:, 0]
    dy = pred[:, 1] - target[:, 1]
    ta = target[:, 4]
    da = pred[:, 4] - ta
    kld = (
        0.5 * (4 * (dx * jnp.cos(ta) + dy * jnp.sin(ta)) ** 2 / target[:, 2] ** 2
               + 4 * (dy * jnp.cos(ta) - dx * jnp.sin(ta)) ** 2 / target[:, 3] ** 2)
        + 0.5 * (pred[:, 3] ** 2 / target[:, 2] ** 2 * jnp.sin(da) ** 2
                 + pred[:, 2] ** 2 / target[:, 3] ** 2 * jnp.sin(da) ** 2
                 + pred[:, 3] ** 2 / target[:, 3] ** 2 * jnp.cos(da) ** 2
                 + pred[:, 2] ** 2 / target[:, 2] ** 2 * jnp.cos(da) ** 2)
        + 0.5 * (jnp.log(target[:, 3] ** 2 / pred[:, 3] ** 2)
                 + jnp.log(target[:, 2] ** 2 / pred[:, 2] ** 2))
        - 1.0
    )
    kld = jnp.sqrt(jnp.maximum(kld, 1e-07))
    return 1.0 - 1.0 / (TAF + kld)


if __name__ == "__main__":
    key = jax.random.PRNGKey(0)
    k1, k2, k3, k4, k5, k6 = jax.random.split(key, 6)

    # small shape: batch=2, anchors=50, 5 box params -> 100 boxes
    B, A = 2, 50
    xy_p = jax.random.normal(k1, (B, A, 2), jnp.float32)
    wh_p = jax.random.uniform(k2, (B, A, 2), jnp.float32, minval=0.5, maxval=2.0)
    ang_p = jax.random.uniform(k3, (B, A, 1), jnp.float32, minval=-1.5, maxval=1.5)
    pred = jnp.concatenate([xy_p, wh_p, ang_p], axis=-1)

    xy_t = jax.random.normal(k4, (B, A, 2), jnp.float32)
    wh_t = jax.random.uniform(k5, (B, A, 2), jnp.float32, minval=0.5, maxval=2.0)
    ang_t = jax.random.uniform(k6, (B, A, 1), jnp.float32, minval=-1.5, maxval=1.5)
    target = jnp.concatenate([xy_t, wh_t, ang_t], axis=-1)

    out = jax.block_until_ready(kld_loss_pallas(pred, target))
    ref = jax.block_until_ready(kld_loss_ref(pred, target))

    assert out.shape == (B * A,), out.shape
    assert jnp.allclose(out, ref, rtol=1e-4, atol=1e-5), (out[:5], ref[:5])
    print("KERNEL_OK")
</pallas_src>

<mosaic_0001>
module attributes {stable_mosaic.version = 11 : i64} {
  func.func @_kld_kernel(%arg0: i32, %arg1: memref<5x8x1024xf32, #tpu.memory_space<vmem>>, %arg2: memref<5x8x1024xf32, #tpu.memory_space<vmem>>, %arg3: memref<8x1024xf32, #tpu.memory_space<vmem>>) attributes {dimension_semantics = [#tpu.dimension_semantics<parallel>], iteration_bounds = array<i64: 1>, scalar_prefetch = 0 : i64, scratch_operands = 0 : i64, tpu.core_type = #tpu.core_type<tc>, window_params = [{transform_indices = @transform_0, window_bounds = array<i64: 5, 8, 1024>}, {transform_indices = @transform_1, window_bounds = array<i64: 5, 8, 1024>}, {transform_indices = @transform_2, window_bounds = array<i64: 8, 1024>}]} {
    %c0 = arith.constant 0 : index
    %c0_0 = arith.constant 0 : index
    %c0_1 = arith.constant 0 : index
    %0 = vector.load %arg1[%c0, %c0_0, %c0_1] : memref<5x8x1024xf32, #tpu.memory_space<vmem>>, vector<1x8x1024xf32>
    %1 = vector.shape_cast %0 : vector<1x8x1024xf32> to vector<8x1024xf32>
    %c1 = arith.constant 1 : index
    %c0_2 = arith.constant 0 : index
    %c0_3 = arith.constant 0 : index
    %2 = vector.load %arg1[%c1, %c0_2, %c0_3] : memref<5x8x1024xf32, #tpu.memory_space<vmem>>, vector<1x8x1024xf32>
    %3 = vector.shape_cast %2 : vector<1x8x1024xf32> to vector<8x1024xf32>
    %c2 = arith.constant 2 : index
    %c0_4 = arith.constant 0 : index
    %c0_5 = arith.constant 0 : index
    %4 = vector.load %arg1[%c2, %c0_4, %c0_5] : memref<5x8x1024xf32, #tpu.memory_space<vmem>>, vector<1x8x1024xf32>
    %5 = vector.shape_cast %4 : vector<1x8x1024xf32> to vector<8x1024xf32>
    %c3 = arith.constant 3 : index
    %c0_6 = arith.constant 0 : index
    %c0_7 = arith.constant 0 : index
    %6 = vector.load %arg1[%c3, %c0_6, %c0_7] : memref<5x8x1024xf32, #tpu.memory_space<vmem>>, vector<1x8x1024xf32>
    %7 = vector.shape_cast %6 : vector<1x8x1024xf32> to vector<8x1024xf32>
    %c4 = arith.constant 4 : index
    %c0_8 = arith.constant 0 : index
    %c0_9 = arith.constant 0 : index
    %8 = vector.load %arg1[%c4, %c0_8, %c0_9] : memref<5x8x1024xf32, #tpu.memory_space<vmem>>, vector<1x8x1024xf32>
    %9 = vector.shape_cast %8 : vector<1x8x1024xf32> to vector<8x1024xf32>
    %c0_10 = arith.constant 0 : index
    %c0_11 = arith.constant 0 : index
    %c0_12 = arith.constant 0 : index
    %10 = vector.load %arg2[%c0_10, %c0_11, %c0_12] : memref<5x8x1024xf32, #tpu.memory_space<vmem>>, vector<1x8x1024xf32>
    %11 = vector.shape_cast %10 : vector<1x8x1024xf32> to vector<8x1024xf32>
    %c1_13 = arith.constant 1 : index
    %c0_14 = arith.constant 0 : index
    %c0_15 = arith.constant 0 : index
    %12 = vector.load %arg2[%c1_13, %c0_14, %c0_15] : memref<5x8x1024xf32, #tpu.memory_space<vmem>>, vector<1x8x1024xf32>
    %13 = vector.shape_cast %12 : vector<1x8x1024xf32> to vector<8x1024xf32>
    %c2_16 = arith.constant 2 : index
    %c0_17 = arith.constant 0 : index
    %c0_18 = arith.constant 0 : index
    %14 = vector.load %arg2[%c2_16, %c0_17, %c0_18] : memref<5x8x1024xf32, #tpu.memory_space<vmem>>, vector<1x8x1024xf32>
    %15 = vector.shape_cast %14 : vector<1x8x1024xf32> to vector<8x1024xf32>
    %c3_19 = arith.constant 3 : index
    %c0_20 = arith.constant 0 : index
    %c0_21 = arith.constant 0 : index
    %16 = vector.load %arg2[%c3_19, %c0_20, %c0_21] : memref<5x8x1024xf32, #tpu.memory_space<vmem>>, vector<1x8x1024xf32>
    %17 = vector.shape_cast %16 : vector<1x8x1024xf32> to vector<8x1024xf32>
    %c4_22 = arith.constant 4 : index
    %c0_23 = arith.constant 0 : index
    %c0_24 = arith.constant 0 : index
    %18 = vector.load %arg2[%c4_22, %c0_23, %c0_24] : memref<5x8x1024xf32, #tpu.memory_space<vmem>>, vector<1x8x1024xf32>
    %19 = vector.shape_cast %18 : vector<1x8x1024xf32> to vector<8x1024xf32>
    %20 = arith.subf %1, %11 : vector<8x1024xf32>
    %21 = arith.subf %3, %13 : vector<8x1024xf32>
    %22 = arith.subf %9, %19 : vector<8x1024xf32>
    %23 = math.cos %19 : vector<8x1024xf32>
    %24 = math.sin %19 : vector<8x1024xf32>
    %25 = arith.mulf %15, %15 : vector<8x1024xf32>
    %26 = arith.mulf %17, %17 : vector<8x1024xf32>
    %27 = arith.mulf %5, %5 : vector<8x1024xf32>
    %28 = arith.mulf %7, %7 : vector<8x1024xf32>
    %29 = arith.mulf %25, %26 : vector<8x1024xf32>
    %cst = arith.constant 1.000000e+00 : f32
    %30 = vector.broadcast %cst : f32 to vector<8x1024xf32>
    %31 = arith.divf %30, %29 : vector<8x1024xf32>
    %32 = arith.mulf %26, %31 : vector<8x1024xf32>
    %33 = arith.mulf %25, %31 : vector<8x1024xf32>
    %34 = arith.mulf %20, %23 : vector<8x1024xf32>
    %35 = arith.mulf %21, %24 : vector<8x1024xf32>
    %36 = arith.addf %34, %35 : vector<8x1024xf32>
    %37 = arith.mulf %21, %23 : vector<8x1024xf32>
    %38 = arith.mulf %20, %24 : vector<8x1024xf32>
    %39 = arith.subf %37, %38 : vector<8x1024xf32>
    %40 = arith.mulf %36, %36 : vector<8x1024xf32>
    %41 = arith.mulf %40, %32 : vector<8x1024xf32>
    %42 = arith.mulf %39, %39 : vector<8x1024xf32>
    %43 = arith.mulf %42, %33 : vector<8x1024xf32>
    %44 = arith.addf %41, %43 : vector<8x1024xf32>
    %cst_25 = arith.constant 2.000000e+00 : f32
    %45 = vector.broadcast %cst_25 : f32 to vector<8x1024xf32>
    %46 = arith.mulf %45, %44 : vector<8x1024xf32>
    %47 = math.sin %22 : vector<8x1024xf32>
    %48 = arith.mulf %47, %47 : vector<8x1024xf32>
    %cst_26 = arith.constant 1.000000e+00 : f32
    %49 = vector.broadcast %cst_26 : f32 to vector<8x1024xf32>
    %50 = arith.subf %49, %48 : vector<8x1024xf32>
    %51 = arith.mulf %28, %32 : vector<8x1024xf32>
    %52 = arith.mulf %27, %33 : vector<8x1024xf32>
    %53 = arith.addf %51, %52 : vector<8x1024xf32>
    %54 = arith.mulf %48, %53 : vector<8x1024xf32>
    %55 = arith.mulf %28, %33 : vector<8x1024xf32>
    %56 = arith.mulf %27, %32 : vector<8x1024xf32>
    %57 = arith.addf %55, %56 : vector<8x1024xf32>
    %58 = arith.mulf %50, %57 : vector<8x1024xf32>
    %59 = arith.addf %54, %58 : vector<8x1024xf32>
    %cst_27 = arith.constant 5.000000e-01 : f32
    %60 = vector.broadcast %cst_27 : f32 to vector<8x1024xf32>
    %61 = arith.mulf %60, %59 : vector<8x1024xf32>
    %62 = arith.mulf %28, %27 : vector<8x1024xf32>
    %63 = arith.mulf %62, %31 : vector<8x1024xf32>
    %64 = math.log %63 : vector<8x1024xf32>
    %cst_28 = arith.constant -5.000000e-01 : f32
    %65 = vector.broadcast %cst_28 : f32 to vector<8x1024xf32>
    %66 = arith.mulf %65, %64 : vector<8x1024xf32>
    %67 = arith.addf %46, %61 : vector<8x1024xf32>
    %68 = arith.addf %67, %66 : vector<8x1024xf32>
    %cst_29 = arith.constant 1.000000e+00 : f32
    %69 = vector.broadcast %cst_29 : f32 to vector<8x1024xf32>
    %70 = arith.subf %68, %69 : vector<8x1024xf32>
    %cst_30 = arith.constant 1.000000e-07 : f32
    %71 = vector.broadcast %cst_30 : f32 to vector<8x1024xf32>
    %72 = arith.maximumf %70, %71 : vector<8x1024xf32>
    %73 = math.sqrt %72 : vector<8x1024xf32>
    %cst_31 = arith.constant 1.000000e+00 : f32
    %74 = vector.broadcast %cst_31 : f32 to vector<8x1024xf32>
    %75 = arith.addf %74, %73 : vector<8x1024xf32>
    %cst_32 = arith.constant 1.000000e+00 : f32
    %76 = vector.broadcast %cst_32 : f32 to vector<8x1024xf32>
    %77 = arith.divf %76, %75 : vector<8x1024xf32>
    %cst_33 = arith.constant 1.000000e+00 : f32
    %78 = vector.broadcast %cst_33 : f32 to vector<8x1024xf32>
    %79 = arith.subf %78, %77 : vector<8x1024xf32>
    %c0_34 = arith.constant 0 : index
    %c0_35 = arith.constant 0 : index
    %80 = vector.load %arg3[%c0_34, %c0_35] : memref<8x1024xf32, #tpu.memory_space<vmem>>, vector<8x1024xf32>
    tpu.vector_store %arg3[%c0_34, %c0_35], %79 {strides = array<i32>} : memref<8x1024xf32, #tpu.memory_space<vmem>>, vector<8x1024xf32>,
    return
  }
  func.func @transform_0(%arg0: i32) -> (i32, i32, i32) {
    %c0_i32 = arith.constant 0 : i32
    %c0_i32_0 = arith.constant 0 : i32
    %c0_i32_1 = arith.constant 0 : i32
    return %c0_i32, %arg0, %c0_i32_0 : i32, i32, i32
  }
  func.func @transform_1(%arg0: i32) -> (i32, i32, i32) {
    %c0_i32 = arith.constant 0 : i32
    %c0_i32_0 = arith.constant 0 : i32
    %c0_i32_1 = arith.constant 0 : i32
    return %c0_i32, %arg0, %c0_i32_0 : i32, i32, i32
  }
  func.func @transform_2(%arg0: i32) -> (i32, i32) {
    %c0_i32 = arith.constant 0 : i32
    %c0_i32_0 = arith.constant 0 : i32
    return %arg0, %c0_i32 : i32, i32
  }
}

</mosaic_0001>

<bundles_post_ra>
// kernel: tpu_custom_call.1
= control target key start
LH: loop header
LB: loop body
LE: loop exit
PB: predicated region body
PF: predicated region fallthrough
CT: control target
= control target key end

     0   :  { %7 = vsyncpa [#allocation3], 0  ;;  %s5924_s0 = inlined_call_operand.hbm [shape: f32[5,1,1024], index: 0, kind: input, shape index: {}]   ;;  %s5925_s1 = inlined_call_operand.hbm [shape: f32[5,1,1024], index: 1, kind: input, shape index: {}]   ;;  %s5926_s2 = inlined_call_operand.hbm [shape: f32[1,1024], index: 2, kind: output, shape index: {}]  }
   0x1   :  { %8 = vsyncpa [#allocation6], 0 }
   0x2   :  { %9 = vsyncpa [#allocation4], 0 }
   0x3   :  { %14 = vsyncadd [#allocation3], 4480  ;;  %s19_s9 = sld [smem:[#allocation0]]   ;;  %s3499_s10 = smov [#allocation2]  }
   0x4   :  { %s27_s11 = sshll.u32 %s3499_s10, 4  ;;  %s3500_s12 = smov 128   ;;  %s28_s11 = int_to_ptr.vmem [resolvable:$true] %s27_s11 }
   0x5   :  { %34 = sst [smem:[#allocation9]] %s3500_s12  ;;  %s3501_s13 = smov 1024  }
   0x6   :  { %36 = sst [smem:[#allocation9 + $0x1]] %s3501_s13  ;;  %s3502_s14 = smov 1  }
   0x7   :  { %38 = sst [smem:[#allocation9 + $0x2]] %s3502_s14  ;;  %s3503_s17 = smov 8  }
   0x8   :  { %40 = sst [smem:[#allocation9 + $0x3]] %s3500_s12  ;;  %s3504_s18 = smov [#allocation3]  }
   0x9   :  { %s3140_s15 = sshll.u32 %s19_s9, 26  ;;  %42 = sst [smem:[#allocation9 + $0x4]] %s3500_s12 }
   0xa   :  { %s3141_s16 = sadd.s32 134217728, %s3140_s15  ;;  %44 = sst [smem:[#allocation9 + $0x5]] %s3503_s17 }
   0xb   :  { %s3505_s19 = smov [#allocation8]  }
   0xc   :  { %46 = dma.general %s5924_s0, 640, %s28_s11, %s3504_s18, %s3505_s19, [#allocation9], %s3141_s16, 0  }
   0xd   :  { %51 = vsyncadd [#allocation6], 4480  ;;  %s56_s22 = sld [smem:[#allocation0]]   ;;  %s3506_s23 = smov [#allocation5]  }
   0xe   :  { %s64_s24 = sshll.u32 %s3506_s23, 4  ;;  %s3507_s25 = smov 128   ;;  %s65_s24 = int_to_ptr.vmem [resolvable:$true] %s64_s24 }
   0xf   :  { %71 = sst [smem:[#allocation11]] %s3507_s25  ;;  %s3508_s26 = smov 1024  }
  0x10   :  { %73 = sst [smem:[#allocation11 + $0x1]] %s3508_s26  ;;  %s3509_s27 = smov 1  }
  0x11   :  { %75 = sst [smem:[#allocation11 + $0x2]] %s3509_s27  ;;  %s3510_s30 = smov 8  }
  0x12   :  { %77 = sst [smem:[#allocation11 + $0x3]] %s3507_s25  ;;  %s3511_s3 = smov [#allocation6]  }
  0x13   :  { %s3142_s28 = sshll.u32 %s56_s22, 26  ;;  %79 = sst [smem:[#allocation11 + $0x4]] %s3507_s25 }
  0x14   :  { %s3143_s29 = sadd.s32 134217728, %s3142_s28  ;;  %81 = sst [smem:[#allocation11 + $0x5]] %s3510_s30 }
  0x15   :  { %s3512_s4 = smov [#allocation10]  }
  0x16   :  { %83 = dma.general %s5925_s1, 640, %s65_s24, %s3511_s3, %s3512_s4, [#allocation11], %s3143_s29, 0  }
  0x17   :  { %3493 = dma.done.wait [#allocation3], 5120  }
  0x18   :  { %3494 = vsyncadd [#allocation3], 4294962176 }
  0x19   :  { %3495 = dma.done.wait [#allocation6], 5120  }
  0x1a   :  { %3496 = vsyncadd [#allocation6], 4294962176  ;;  %v3543_v0 = vld [vmem:[#allocation5 + $0x100] sm:$0xff]  ;;  %v3545_v1 = vld [vmem:[#allocation5 + $0x108] sm:$0xff]  ;;  %v5940_v27 = vmov 683565275  }
  0x1b   :  { %v202_v2 = vand.u32 2147483647, %v3543_v0  ;;  %v205_v3 = vand.u32 2139095040, %v3543_v0  ;;  %v3549_v4 = vld [vmem:[#allocation5 + $0x110] sm:$0xff]  ;;  %v5931_v5 = vand.u32 2147483647, %v3545_v1 }
  0x1c   :  { %v308_v7 = vand.u32 2139095040, %v3545_v1  ;;  %v411_v12 = vand.u32 2139095040, %v3549_v4  ;;  %v5944_v29 = vmov 2475754826   ;;  %v5947_v31 = vmov 2131351028  }
  0x1d   :  { %v206_v6 = vshrl.u32 %v205_v3, 23  ;;  %v209_v8 = vand.u32 8388607, %v202_v2  ;;  %v312_v9 = vand.u32 8388607, %v5931_v5 }
  0x1e   :  { %v309_v11 = vshrl.u32 %v308_v7, 23  ;;  %v412_v15 = vshrl.u32 %v411_v12, 23  ;;  %v5934_v33 = vmov 2102212464   ;;  %v5932_v35 = vmov 920167782  }
  0x1f   :  { %v3144_v10 = vadd.s32 4294967169, %v206_v6  ;;  %v210_v16 = vor.u32 8388608, %v209_v8  ;;  %v313_v17 = vor.u32 8388608, %v312_v9  ;;  %v5929_v43 = vmov 1326507024  }
  0x20   :  { %v3148_v14 = vadd.s32 4294967169, %v309_v11  ;;  %v3152_v19 = vadd.s32 4294967169, %v412_v15 }
  0x21   :  { %v212_v13 = vadd.s32 1, %v3144_v10  ;;  %v3558_v23 = vshll.u32 %v210_v16, 8  ;;  %v3560_v24 = vshll.u32 %v313_v17, 8 }
  0x22   :  { %v315_v18 = vadd.s32 1, %v3148_v14  ;;  %v3562_v25 = vadd.s32 1, %v3152_v19 }
  0x23   :  { %vm213_vm0 = vcmp.gt.s32.totalorder %v212_v13, 0 }
  0x24   :  { %v214_v20 = vsel %vm213_vm0, %v212_v13, 0  ;;  %vm316_vm1 = vcmp.gt.s32.totalorder %v315_v18, 0  ;;  %vm419_vm8 = vcmp.gt.s32.totalorder %v3562_v25, 0 }
  0x25   :  { %v215_v21 = vshrl.u32 %v214_v20, 5  ;;  %v216_v22 = vand.u32 31, %v214_v20  ;;  %v317_v37 = vsel %vm316_vm1, %v315_v18, 0 }
  0x26   :  { %v318_v50 = vshrl.u32 %v317_v37, 5  ;;  %v319_v51 = vand.u32 31, %v317_v37 }
  0x27   :  { %v217_v26 = vsub.s32 32, %v216_v22  ;;  %v219_v28 = vshll.u32 %v5940_v27, %v216_v22  ;;  %v222_v30 = vshll.u32 %v5944_v29, %v216_v22  ;;  %v225_v32 = vshll.u32 %v5947_v31, %v216_v22 }
  0x28   :  { %v228_v34 = vshll.u32 %v5934_v33, %v216_v22  ;;  %v231_v36 = vshll.u32 %v5932_v35, %v216_v22  ;;  %vm234_vm2 = vcmp.lt.s32.totalorder %v215_v21, 1  ;;  %vm235_vm3 = vcmp.lt.s32.totalorder %v215_v21, 2 }
  0x29   :  { %v218_v38 = vshrl.u32 %v5940_v27, %v217_v26  ;;  %v220_v39 = vshrl.u32 %v5944_v29, %v217_v26  ;;  %v223_v40 = vshrl.u32 %v5947_v31, %v217_v26  ;;  %v226_v41 = vshrl.u32 %v5934_v33, %v217_v26 }
  0x2a   :  { %v229_v42 = vshrl.u32 %v5932_v35, %v217_v26  ;;  %v232_v44 = vshrl.u32 %v5929_v43, %v217_v26  ;;  %vm236_vm4 = vcmp.lt.s32.totalorder %v215_v21, 3  ;;  %vm237_vm5 = vcmp.lt.s32.totalorder %v215_v21, 4 }
  0x2b   :  { %v221_v45 = vor.u32 %v220_v39, %v219_v28  ;;  %v224_v46 = vor.u32 %v223_v40, %v222_v30  ;;  %v227_v47 = vor.u32 %v226_v41, %v225_v32  ;;  %v320_v59 = vsub.s32 32, %v319_v51 }
  0x2c   :  { %v230_v48 = vor.u32 %v229_v42, %v228_v34  ;;  %v233_v49 = vor.u32 %v232_v44, %v231_v36  ;;  %v322_v63 = vshll.u32 %v5940_v27, %v319_v51  ;;  %v325_v14 = vshll.u32 %v5944_v29, %v319_v51 }
  0x2d   :  { %v238_v52 = vsel %vm234_vm2, %v218_v38, %v221_v45  ;;  %v239_v53 = vsel %vm237_vm5, %v227_v47, 2102212464  ;;  %v242_v54 = vsel %vm234_vm2, %v221_v45, %v224_v46  ;;  %v246_v55 = vsel %vm234_vm2, %v224_v46, %v227_v47 }
  0x2e   :  { %v240_v56 = vsel %vm236_vm4, %v224_v46, %v239_v53  ;;  %v243_v57 = vsel %vm237_vm5, %v230_v48, 920167782  ;;  %v247_v58 = vsel %vm237_vm5, %v233_v49, 1326507024  ;;  %v321_v8 = vshrl.u32 %v5940_v27, %v320_v59 }
  0x2f   :  { %v241_v60 = vsel %vm235_vm3, %v238_v52, %v240_v56  ;;  %v244_v61 = vsel %vm236_vm4, %v227_v47, %v243_v57  ;;  %v248_v62 = vsel %vm236_vm4, %v230_v48, %v247_v58  ;;  %v323_v13 = vshrl.u32 %v5944_v29, %v320_v59 }
  0x30   :  { %v245_v3 = vsel %vm235_vm3, %v242_v54, %v244_v61  ;;  %v249_v6 = vsel %vm235_vm3, %v246_v55, %v248_v62  ;;  %v257_v7 = vmul.u32 %v3558_v23, %v241_v60  ;;  %v326_v15 = vshrl.u32 %v5947_v31, %v320_v59 }
  0x31   :  { %v3589_v9 = vmul.u32.u64.low %v3558_v23, %v249_v6  ;;  %v3590_v10 = vmul.u32.u64.high %v3558_v23, %v249_v6, %v3589_v9  ;;  %v3593_v11 = vmul.u32.u64.low %v3558_v23, %v245_v3  ;;  %v3594_v12 = vmul.u32.u64.high %v3558_v23, %v245_v3, %v3593_v11 }
  0x32   :  { %v328_v16 = vshll.u32 %v5947_v31, %v319_v51  ;;  %v329_v17 = vshrl.u32 %v5934_v33, %v320_v59  ;;  %v331_v18 = vshll.u32 %v5934_v33, %v319_v51  ;;  %v332_v19 = vshrl.u32 %v5932_v35, %v320_v59 }
  0x33   :  { %v334_v20 = vshll.u32 %v5932_v35, %v319_v51  ;;  %v324_v21 = vor.u32 %v323_v13, %v322_v63  ;;  %v327_v22 = vor.u32 %v326_v15, %v325_v14  ;;  %v335_v23 = vshrl.u32 %v5929_v43, %v320_v59  ;;  %v3618_v51 = vld [vmem:[#allocation5 + $0x118] sm:$0xff] }
  0x34   :  { %vm337_vm6 = vcmp.lt.s32.totalorder %v318_v50, 1  ;;  %vm259_vm7 = vc.u32 %v3590_v10, %v3593_v11  ;;  %v260_v26 = vadd.s32 1, %v3594_v12  ;;  %v330_v28 = vor.u32 %v329_v17, %v328_v16 }
  0x35   :  { %v333_v30 = vor.u32 %v332_v19, %v331_v18  ;;  %v336_v32 = vor.u32 %v335_v23, %v334_v20  ;;  %vm338_vm9 = vcmp.lt.s32.totalorder %v318_v50, 2  ;;  %vm339_vm10 = vcmp.lt.s32.totalorder %v318_v50, 3 }
  0x36   :  { %v261_v34 = vsel %vm259_vm7, %v260_v26, %v3594_v12  ;;  %vm340_vm11 = vcmp.lt.s32.totalorder %v318_v50, 4  ;;  %v341_v36 = vsel %vm337_vm6, %v321_v8, %v324_v21  ;;  %v345_v37 = vsel %vm337_vm6, %v324_v21, %v327_v22 }
  0x37   :  { %v262_v38 = vadd.s32 %v261_v34, %v257_v7  ;;  %v342_v39 = vsel %vm340_vm11, %v330_v28, 2102212464  ;;  %v346_v40 = vsel %vm340_vm11, %v333_v30, 920167782  ;;  %v349_v41 = vsel %vm337_vm6, %v327_v22, %v330_v28 }
  0x38   :  { %v343_v42 = vsel %vm339_vm10, %v327_v22, %v342_v39  ;;  %v347_v44 = vsel %vm339_vm10, %v330_v28, %v346_v40  ;;  %v350_v45 = vsel %vm340_vm11, %v336_v32, 1326507024  ;;  %v420_v49 = vsel %vm419_vm8, %v3562_v25, 0 }
  0x39   :  { %v263_v46 = vadd.s32 536870912, %v262_v38  ;;  %v348_v47 = vsel %vm338_vm9, %v345_v37, %v347_v44  ;;  %v351_v48 = vsel %vm339_vm10, %v333_v30, %v350_v45  ;;  %v344_v52 = vsel %vm338_vm9, %v341_v36, %v343_v42 }
  0x3a   :  { %v352_v53 = vsel %vm338_vm9, %v349_v41, %v351_v48  ;;  %v3623_v54 = vmul.u32.u64.low %v3560_v24, %v348_v47  ;;  %v3624_v55 = vmul.u32.u64.high %v3560_v24, %v348_v47, %v3623_v54  ;;  %v422_v59 = vand.u32 31, %v420_v49 }
  0x3b   :  { %v3627_v56 = vshrl.u32 %v263_v46, 30  ;;  %v3630_v57 = vmul.u32.u64.low %v3560_v24, %v352_v53  ;;  %v3631_v58 = vmul.u32.u64.high %v3560_v24, %v352_v53, %v3630_v57  ;;  %v360_v60 = vmul.u32 %v3560_v24, %v344_v52 }
  0x3c   :  { %v5928_v61 = vand.u32 2147483647, %v3549_v4  ;;  %v514_v50 = vand.u32 2139095040, %v3618_v51  ;;  %v363_v62 = vadd.s32 1, %v3624_v55  ;;  %v423_v63 = vsub.s32 32, %v422_v59 }
  0x3d   :  { %v265_v25 = vshll.u32 %v3627_v56, 30  ;;  %vm362_vm12 = vc.u32 %v3631_v58, %v3623_v54  ;;  %v421_v9 = vshrl.u32 %v420_v49, 5  ;;  %v425_v12 = vshll.u32 %v5940_v27, %v422_v59 }
  0x3e   :  { %v364_v6 = vsel %vm362_vm12, %v363_v62, %v3624_v55  ;;  %v415_v8 = vand.u32 8388607, %v5928_v61  ;;  %v515_v24 = vshrl.u32 %v514_v50, 23  ;;  %v426_v13 = vshrl.u32 %v5944_v29, %v423_v63  ;;  %v103_v61 = vld [vmem:[#allocation2 + $0x60] sm:$0xff] }
  0x3f   :  { %v3638_v3 = vsub.s32 %v262_v38, %v265_v25  ;;  %v365_v7 = vadd.s32 %v364_v6, %v360_v60  ;;  %v428_v14 = vshll.u32 %v5944_v29, %v422_v59  ;;  %v434_v15 = vshll.u32 %v5934_v33, %v422_v59 }
  0x40   :  { %v429_v17 = vshrl.u32 %v5947_v31, %v423_v63  ;;  %v431_v18 = vshll.u32 %v5947_v31, %v422_v59  ;;  %v432_v19 = vshrl.u32 %v5934_v33, %v423_v63  ;;  %v435_v21 = vshrl.u32 %v5932_v35, %v423_v63 }
  0x41   :  { %v268_v16 = vsub.s32 0, %v3638_v3  ;;  %v366_v20 = vadd.s32 536870912, %v365_v7  ;;  %v416_v22 = vor.u32 8388608, %v415_v8  ;;  %v437_v23 = vshll.u32 %v5932_v35, %v422_v59 }
  0x42   :  { %v438_v26 = vshrl.u32 %v5929_v43, %v423_v63  ;;  %v3156_v28 = vadd.s32 4294967169, %v515_v24  ;;  %v436_v32 = vor.u32 %v435_v21, %v434_v15  ;;  %vm440_vm13 = vcmp.lt.s32.totalorder %v421_v9, 1 }
  0x43   :  { %v3656_v30 = vshrl.u32 %v366_v20, 30  ;;  %vm443_vm14 = vcmp.lt.s32.totalorder %v421_v9, 4  ;;  %v3145_v34 = vmin.u32 %v268_v16, %v3638_v3  ;;  %v427_v36 = vor.u32 %v426_v13, %v425_v12 }
  0x44   :  { %v430_v37 = vor.u32 %v429_v17, %v428_v14  ;;  %v433_v38 = vor.u32 %v432_v19, %v431_v18  ;;  %v439_v40 = vor.u32 %v438_v26, %v437_v23  ;;  %vm442_vm15 = vcmp.lt.s32.totalorder %v421_v9, 3 }
  0x45   :  { %v368_v39 = vshll.u32 %v3656_v30, 30  ;;  %v449_v41 = vsel %vm443_vm14, %v436_v32, 920167782  ;;  %v521_v42 = vadd.s32 1, %v3156_v28  ;;  %v424_v45 = vshrl.u32 %v5940_v27, %v423_v63 }
  0x46   :  { %vm441_vm0 = vcmp.lt.s32.totalorder %v421_v9, 2  ;;  %v445_v46 = vsel %vm443_vm14, %v433_v38, 2102212464  ;;  %v448_v47 = vsel %vm440_vm13, %v427_v36, %v430_v37  ;;  %v450_v48 = vsel %vm442_vm15, %v433_v38, %v449_v41 }
  0x47   :  { %v3661_v44 = vsub.s32 %v365_v7, %v368_v39  ;;  %v270_v49 = vclz %v3145_v34  ;;  %v452_v52 = vsel %vm440_vm13, %v430_v37, %v433_v38  ;;  %v453_v53 = vsel %vm443_vm14, %v439_v40, 1326507024 }
  0x48   :  { %v456_v55 = vshll.u32 %v416_v22, 8  ;;  %v454_v59 = vsel %vm442_vm15, %v436_v32, %v453_v53  ;;  %vm522_vm1 = vcmp.gt.s32.totalorder %v521_v42, 0  ;;  %v444_v25 = vsel %vm440_vm13, %v424_v45, %v427_v36 }
  0x49   :  { %v371_v57 = vsub.s32 0, %v3661_v44  ;;  %v446_v60 = vsel %vm442_vm15, %v430_v37, %v445_v46  ;;  %v451_v50 = vsel %vm441_vm0, %v448_v47, %v450_v48  ;;  %v455_v62 = vsel %vm441_vm0, %v452_v52, %v454_v59 }
  0x4a   :  { %v523_v63 = vsel %vm522_vm1, %v521_v42, 0  ;;  %v3146_v6 = vadd.s32 4294967294, %v270_v49  ;;  %v3675_v7 = vmul.u32.u64.low %v456_v55, %v455_v62  ;;  %v3676_v8 = vmul.u32.u64.high %v456_v55, %v455_v62, %v3675_v7  ;;  %v134_v62 = vld [vmem:[#allocation5] sm:$0xff] }
  0x4b   :  { %v3149_v24 = vmin.u32 %v371_v57, %v3661_v44  ;;  %v447_v12 = vsel %vm441_vm0, %v444_v25, %v446_v60  ;;  %v3680_v13 = vmul.u32.u64.low %v456_v55, %v451_v50  ;;  %v3681_v14 = vmul.u32.u64.high %v456_v55, %v451_v50, %v3680_v13  ;;  %v90_v57 = vld [vmem:[#allocation2] sm:$0xff]  ;;  %v91_v50 = vld [vmem:[#allocation2 + $0x8] sm:$0xff] }
  0x4c   :  { %v525_v15 = vand.u32 31, %v523_v63  ;;  %v463_v16 = vmul.u32 %v456_v55, %v447_v12  ;;  %v5927_v17 = vand.u32 2147483647, %v3618_v51  ;;  %vm3147_vm3 = vcmp.lt.s32.totalorder %v3146_v6, 0 }
  0x4d   :  { %vm465_vm2 = vc.u32 %v3676_v8, %v3680_v13  ;;  %v373_v18 = vclz %v3149_v24  ;;  %v466_v19 = vadd.s32 1, %v3681_v14  ;;  %v3689_v9 = vsel %vm3147_vm3, 0, %v3146_v6 }
  0x4e   :  { %v526_v20 = vsub.s32 32, %v525_v15  ;;  %v518_v23 = vand.u32 8388607, %v5927_v17  ;;  %v3693_v26 = vshrl.u32 %v523_v63, 5  ;;  %v528_v32 = vshll.u32 %v5940_v27, %v525_v15  ;;  %v135_v63 = vld [vmem:[#allocation5 + $0x8] sm:$0xff]  ;;  %v146_v17 = vld [vmem:[#allocation5 + $0x58] sm:$0xff] }
  0x4f   :  { %v467_v21 = vsel %vm465_vm2, %v466_v19, %v3681_v14  ;;  %v3150_v28 = vadd.s32 4294967294, %v373_v18  ;;  %v531_v36 = vshll.u32 %v5944_v29, %v525_v15  ;;  %v534_v39 = vshll.u32 %v5947_v31, %v525_v15  ;;  %v3724_v18 = vld [vmem:[#allocation5 + $0x120] sm:$0xff] }
  0x50   :  { %v468_v22 = vadd.s32 %v467_v21, %v463_v16  ;;  %v529_v34 = vshrl.u32 %v5944_v29, %v526_v20  ;;  %v532_v38 = vshrl.u32 %v5947_v31, %v526_v20  ;;  %v535_v40 = vshrl.u32 %v5934_v33, %v526_v20 }
  0x51   :  { %v537_v41 = vshll.u32 %v5934_v33, %v525_v15  ;;  %v278_v42 = vsub.s32 4294967266, %v3689_v9  ;;  %v519_v46 = vor.u32 8388608, %v518_v23  ;;  %vm543_vm4 = vcmp.lt.s32.totalorder %v3693_v26, 1 }
  0x52   :  { %v469_v37 = vadd.s32 536870912, %v468_v22  ;;  %vm3151_vm5 = vcmp.lt.s32.totalorder %v3150_v28, 0  ;;  %v538_v47 = vshrl.u32 %v5932_v35, %v526_v20  ;;  %v540_v48 = vshll.u32 %v5932_v35, %v525_v15 }
  0x53   :  { %v541_v49 = vshrl.u32 %v5929_v43, %v526_v20  ;;  %v530_v52 = vor.u32 %v529_v34, %v528_v32  ;;  %v533_v53 = vor.u32 %v532_v38, %v531_v36  ;;  %v536_v55 = vor.u32 %v535_v40, %v534_v39  ;;  %v92_v34 = vld [vmem:[#allocation2 + $0x10] sm:$0xff]  ;;  %v93_v36 = vld [vmem:[#allocation2 + $0x18] sm:$0xff]  ;;  %v104_v43 = vld [vmem:[#allocation2 + $0x68] sm:$0xff] }
  0x54   :  { %v3703_v45 = vshrl.u32 %v469_v37, 30  ;;  %vm546_vm6 = vcmp.lt.s32.totalorder %v3693_v26, 4  ;;  %v539_v25 = vor.u32 %v538_v47, %v537_v41  ;;  %vm545_vm7 = vcmp.lt.s32.totalorder %v3693_v26, 3  ;;  %v94_v41 = vld [vmem:[#allocation2 + $0x20] sm:$0xff] }
  0x55   :  { %v542_v60 = vor.u32 %v541_v49, %v540_v48  ;;  %v258_v6 = vadd.s32 %v3593_v11, %v3590_v10  ;;  %v274_v7 = vsub.s32 32, %v3689_v9  ;;  %v3716_v24 = vsel %vm3151_vm5, 0, %v3150_v28 }
  0x56   :  { %v471_v59 = vshll.u32 %v3703_v45, 30  ;;  %v527_v12 = vshrl.u32 %v5940_v27, %v526_v20  ;;  %v279_v14 = vadd.s32 127, %v278_v42  ;;  %vm544_vm8 = vcmp.lt.s32.totalorder %v3693_v26, 2  ;;  %v136_v42 = vld [vmem:[#allocation5 + $0x10] sm:$0xff] }
  0x57   :  { %v552_v15 = vsel %vm546_vm6, %v539_v25, 920167782  ;;  %v556_v16 = vsel %vm546_vm6, %v542_v60, 1326507024  ;;  %v548_v10 = vsel %vm546_vm6, %v536_v55, 2102212464  ;;  %v551_v11 = vsel %vm543_vm4, %v530_v52, %v533_v53 }
  0x58   :  { %v553_v19 = vsel %vm545_vm7, %v536_v55, %v552_v15  ;;  %v555_v20 = vsel %vm543_vm4, %v533_v53, %v536_v55  ;;  %v381_v21 = vsub.s32 4294967266, %v3716_v24  ;;  %v3735_v23 = vsub.s32 %v468_v22, %v471_v59  ;;  %v95_v22 = vld [vmem:[#allocation2 + $0x28] sm:$0xff]  ;;  %v137_v55 = vld [vmem:[#allocation5 + $0x18] sm:$0xff]  ;;  %v96_v60 = vld [vmem:[#allocation2 + $0x30] sm:$0xff] }
  0x59   :  { %v557_v28 = vsel %vm545_vm7, %v539_v25, %v556_v16  ;;  %v3739_v32 = vshll.u32 %v519_v46, 8  ;;  %v3741_v37 = vsub.f32 %v90_v57, %v134_v62  ;;  %v3743_v38 = vsub.f32 %v91_v50, %v135_v63  ;;  %v138_v57 = vld [vmem:[#allocation5 + $0x20] sm:$0xff]  ;;  %v100_v16 = vld [vmem:[#allocation2 + $0x48] sm:$0xff] }
  0x5a   :  { %v361_v39 = vadd.s32 %v3623_v54, %v3631_v58  ;;  %v547_v40 = vsel %vm543_vm4, %v527_v12, %v530_v52  ;;  %v549_v47 = vsel %vm545_vm7, %v533_v53, %v548_v10  ;;  %v554_v46 = vsel %vm544_vm8, %v551_v11, %v553_v19  ;;  %v139_v54 = vld [vmem:[#allocation5 + $0x28] sm:$0xff]  ;;  %v97_v53 = vld [vmem:[#allocation2 + $0x38] sm:$0xff]  ;;  %v99_v50 = vld [vmem:[#allocation2 + $0x40] sm:$0xff] }
  0x5b   :  { %v558_v48 = vsel %vm544_vm8, %v555_v20, %v557_v28  ;;  %v617_v49 = vand.u32 2139095040, %v3724_v18  ;;  %v275_v58 = vshll.u32 %v3638_v3, %v3689_v9  ;;  %v276_v52 = vshrl.u32 %v258_v6, %v274_v7  ;;  %v101_v10 = vld [vmem:[#allocation2 + $0x50] sm:$0xff]  ;;  %v102_v11 = vld [vmem:[#allocation2 + $0x58] sm:$0xff]  ;;  %v143_v20 = vld [vmem:[#allocation5 + $0x40] sm:$0xff] }
  0x5c   :  { %v280_v59 = vshll.u32 %v279_v14, 23  ;;  %v377_v25 = vsub.s32 32, %v3716_v24  ;;  %v382_v62 = vadd.s32 127, %v381_v21  ;;  %v474_v63 = vsub.s32 0, %v3735_v23  ;;  %v140_v7 = vld [vmem:[#allocation5 + $0x30] sm:$0xff]  ;;  %v141_v14 = vld [vmem:[#allocation5 + $0x38] sm:$0xff] }
  0x5d   :  { %v3761_v12 = vmul.u32.u64.low %v3739_v32, %v558_v48  ;;  %v3762_v15 = vmul.u32.u64.high %v3739_v32, %v558_v48, %v3761_v12  ;;  %v3764_v19 = vsub.f32 %v92_v34, %v136_v42  ;;  %v550_v3 = vsel %vm544_vm8, %v547_v40, %v549_v47  ;;  %v144_v34 = vld [vmem:[#allocation5 + $0x48] sm:$0xff]  ;;  %v145_v42 = vld [vmem:[#allocation5 + $0x50] sm:$0xff] }
  0x5e   :  { %v3769_v9 = vmul.u32.u64.low %v3739_v32, %v554_v46  ;;  %v3770_v6 = vmul.u32.u64.high %v3739_v32, %v554_v46, %v3769_v9  ;;  %v3773_v21 = vsub.f32 %v93_v36, %v137_v55  ;;  %v3775_v28 = vsub.f32 %v94_v41, %v138_v57  ;;  %v147_v55 = vld [vmem:[#allocation5 + $0x60] sm:$0xff] }
  0x5f   :  { %v3777_v48 = vsub.f32 %v95_v22, %v139_v54  ;;  %v618_v12 = vshrl.u32 %v617_v49, 23  ;;  %v277_v26 = vor.u32 %v276_v52, %v275_v58  ;;  %v281_v40 = vor.u32 4788187, %v280_v59  ;;  %v105_v22 = vld [vmem:[#allocation2 + $0x70] sm:$0xff]  ;;  %v106_v49 = vld [vmem:[#allocation2 + $0x78] sm:$0xff] }
  0x60   :  { %6040 = vst [vmem:[#allocation15_spill] sm:$0xff] %v3775_v28  ;;  %v378_v47 = vshll.u32 %v3661_v44, %v3716_v24  ;;  %v379_v46 = vshrl.u32 %v361_v39, %v377_v25  ;;  %v383_v5 = vshll.u32 %v382_v62, 23  ;;  %v3153_v36 = vmin.u32 %v474_v63, %v3735_v23  ;;  %v148_v24 = vld [vmem:[#allocation5 + $0x68] sm:$0xff]  ;;  %v149_v39 = vld [vmem:[#allocation5 + $0x70] sm:$0xff]  ;;  %v150_v52 = vld [vmem:[#allocation5 + $0x78] sm:$0xff] }
  0x61   :  { %6041 = vst [vmem:[#allocation16_spill] sm:$0xff] %v3777_v48  ;;  %v566_v41 = vmul.u32 %v3739_v32, %v550_v3  ;;  %vm568_vm9 = vc.u32 %v3762_v15, %v3769_v9  ;;  %v3785_v57 = vsub.f32 %v96_v60, %v140_v7  ;;  %v3787_v54 = vsub.f32 %v97_v53, %v141_v14  ;;  %v126_v63 = vld [vmem:[#allocation2 + $0x100] sm:$0xff]  ;;  %v127_v3 = vld [vmem:[#allocation2 + $0x108] sm:$0xff] }
  0x62   :  { %v3789_v58 = vsub.f32 %v99_v50, %v143_v20  ;;  %v569_v44 = vadd.s32 1, %v3770_v6  ;;  %v3792_v59 = vsub.f32 %v100_v16, %v144_v34  ;;  %v3794_v32 = vsub.f32 %v101_v10, %v145_v42  ;;  %v128_v34 = vld [vmem:[#allocation2 + $0x110] sm:$0xff]  ;;  %v129_v10 = vld [vmem:[#allocation2 + $0x118] sm:$0xff] }
  0x63   :  { %6042 = vst [vmem:[#allocation17_spill] sm:$0xff] %v3785_v57  ;;  %6043 = vst [vmem:[#allocation18_spill] sm:$0xff] %v3787_v54  ;;  %v3796_v25 = vsub.f32 %v102_v11, %v146_v17  ;;  %v3160_v62 = vadd.s32 4294967169, %v618_v12  ;;  %v282_v60 = vand.u32 2147483647, %v281_v40  ;;  %v284_v7 = vcvt.s32.f32 %v277_v26  ;;  %v130_v26 = vld [vmem:[#allocation2 + $0x120] sm:$0xff] }
  0x64   :  { %6044 = vst [vmem:[#allocation19_spill] sm:$0xff] %v3789_v58  ;;  %6045 = vst [vmem:[#allocation20_spill] sm:$0xff] %v3792_v59  ;;  %v380_v53 = vor.u32 %v379_v46, %v378_v47  ;;  %v570_v50 = vsel %vm568_vm9, %v569_v44, %v3770_v6  ;;  %v384_v14 = vor.u32 4788187, %v383_v5  ;;  %v476_v20 = vclz %v3153_v36  ;;  %v131_v40 = vld [vmem:[#allocation2 + $0x128] sm:$0xff]  ;;  %v133_v36 = vld [vmem:[#allocation2 + $0x138] sm:$0xff] }
  0x65   :  { %6046 = vst [vmem:[#allocation21_spill] sm:$0xff] %v3794_v32  ;;  %6047 = vst [vmem:[#allocation22_spill] sm:$0xff] %v3796_v25  ;;  %v571_v35 = vadd.s32 %v570_v50, %v566_v41  ;;  %v624_v16 = vadd.s32 1, %v3160_v62  ;;  %v3802_v42 = vsub.f32 %v103_v61, %v147_v55  ;;  %v3804_v17 = vsub.f32 %v104_v43, %v148_v24  ;;  %v3810_v47 = vld [vmem:[#allocation5 + $0x128] sm:$0xff]  ;;  %v132_v61 = vld [vmem:[#allocation2 + $0x130] sm:$0xff] }
  0x66   :  { %v3806_v11 = vsub.f32 %v105_v22, %v149_v39  ;;  %v3808_v12 = vsub.f32 %v106_v49, %v150_v52  ;;  %v3813_v6 = vsub.f32 %v126_v63, %v3543_v0  ;;  %v3816_v5 = vsub.f32 %v127_v3, %v3545_v1  ;;  %v3818_v43 = vld [vmem:[#allocation5 + $0x130] sm:$0xff]  ;;  %v3821_v44 = vld [vmem:[#allocation5 + $0x138] sm:$0xff]  ;;  %v4180_v58 = vld [vmem:[#allocation5 + $0x100] sm:$0xff] }
  0x67   :  { %6048 = vst [vmem:[#allocation23_spill] sm:$0xff] %v3802_v42  ;;  %6049 = vst [vmem:[#allocation24_spill] sm:$0xff] %v3804_v17  ;;  %v572_v46 = vadd.s32 536870912, %v571_v35  ;;  %vm625_vm10 = vcmp.gt.s32.totalorder %v624_v16, 0  ;;  %v285_v41 = vmul.f32 %v284_v7, %v282_v60  ;;  %v387_v22 = vcvt.s32.f32 %v380_v53 }
  0x68   :  { %6050 = vst [vmem:[#allocation25_spill] sm:$0xff] %v3806_v11  ;;  %6051 = vst [vmem:[#allocation26_spill] sm:$0xff] %v3808_v12  ;;  %v5936_v49 = vand.u32 2147483647, %v3724_v18  ;;  %v626_v55 = vsel %vm625_vm10, %v624_v16, 0  ;;  %v3154_v39 = vadd.s32 4294967294, %v476_v20  ;;  %v3826_v63 = vsub.f32 %v128_v34, %v3549_v4 }
  0x69   :  { %6052 = vst [vmem:[#allocation27_spill] sm:$0xff] %v3813_v6  ;;  %6053 = vst [vmem:[#allocation28_spill] sm:$0xff] %v3816_v5  ;;  %v385_v24 = vand.u32 2147483647, %v384_v14  ;;  %v3823_v52 = vshrl.u32 %v572_v46, 30  ;;  %v628_v62 = vand.u32 31, %v626_v55  ;;  %v3829_v3 = vsub.f32 %v129_v10, %v3618_v51 }
  0x6a   :  { %6054 = vst [vmem:[#allocation29_spill] sm:$0xff] %v3826_v63  ;;  %v3832_v50 = vsub.f32 %v130_v26, %v3724_v18  ;;  %v3835_v60 = vsub.f32 %v131_v40, %v3810_v47  ;;  %vm204_vm11 = vcmp.lt.s32.totalorder %v3543_v0, 0  ;;  %v720_v14 = vand.u32 2139095040, %v3810_v47 }
  0x6b   :  { %6055 = vst [vmem:[#allocation30_spill] sm:$0xff] %v3829_v3  ;;  %v574_v7 = vshll.u32 %v3823_v52, 30  ;;  %v629_v53 = vsub.s32 32, %v628_v62  ;;  %v3841_v20 = vsub.f32 %v132_v61, %v3818_v43  ;;  %v3844_v16 = vsub.f32 %v133_v36, %v3821_v44 }
  0x6c   :  { %6056 = vst [vmem:[#allocation31_spill] sm:$0xff] %v3832_v50  ;;  %6057 = vst [vmem:[#allocation32_spill] sm:$0xff] %v3835_v60  ;;  %v286_v34 = vxor.u32 2147483648, %v285_v41  ;;  %v621_v10 = vand.u32 8388607, %v5936_v49  ;;  %v388_v40 = vmul.f32 %v387_v22, %v385_v24  ;;  %vm3155_vm13 = vcmp.lt.s32.totalorder %v3154_v39, 0 }
  0x6d   :  { %6058 = vst [vmem:[#allocation33_spill] sm:$0xff] %v3841_v20  ;;  %6059 = vst [vmem:[#allocation34_spill] sm:$0xff] %v3844_v16  ;;  %vm3850_vm12 = vcmp.le.f32.partialorder %v202_v2, 0.7853982  ;;  %v3854_v46 = vsub.s32 %v571_v35, %v574_v7  ;;  %v631_v61 = vshll.u32 %v5940_v27, %v628_v62  ;;  %vm307_vm14 = vcmp.lt.s32.totalorder %v3545_v1, 0 }
  0x6e   :  { %v632_v36 = vshrl.u32 %v5944_v29, %v629_v53  ;;  %v634_v33 = vshll.u32 %v5944_v29, %v628_v62  ;;  %v635_v49 = vshrl.u32 %v5947_v31, %v629_v53  ;;  %v637_v16 = vshll.u32 %v5947_v31, %v628_v62 }
  0x6f   :  { %v288_v2 = vsub.s32 4, %v3627_v56  ;;  %v577_v20 = vsub.s32 0, %v3854_v46  ;;  %v6062_v22 = vmov 2102212464   ;;  %v721_v35 = vshrl.u32 %v720_v14, 23 }
  0x70   :  { %v638_v24 = vshrl.u32 %v6062_v22, %v629_v53  ;;  %v622_v7 = vor.u32 8388608, %v621_v10  ;;  %v627_v60 = vshrl.u32 %v626_v55, 5  ;;  %v640_v27 = vshll.u32 %v6062_v22, %v628_v62 }
  0x71   :  { %v6063_v50 = vmov 920167782   ;;  %v287_v29 = vsel %vm204_vm11, %v286_v34, %v285_v41  ;;  %v6064_v63 = vand.u32 2147483647, %v3545_v1  ;;  %v389_v5 = vxor.u32 2147483648, %v388_v40 }
  0x72   :  { %v641_v3 = vshrl.u32 %v6063_v50, %v629_v53  ;;  %v3876_v6 = vsel %vm3155_vm13, 0, %v3154_v39  ;;  %v6067_v14 = vmov 683565275   ;;  %v633_v55 = vor.u32 %v632_v36, %v631_v61 }
  0x73   :  { %vm3871_vm15 = vcmp.le.f32.partialorder %v6064_v63, 0.7853982  ;;  %v630_v10 = vshrl.u32 %v6067_v14, %v629_v53  ;;  %v636_v12 = vor.u32 %v635_v49, %v634_v33  ;;  %v639_v54 = vor.u32 %v638_v24, %v637_v16 }
  0x74   :  { %v642_v11 = vor.u32 %v641_v3, %v640_v27  ;;  %v3157_v17 = vmin.u32 %v577_v20, %v3854_v46  ;;  %v643_v41 = vshll.u32 %v6063_v50, %v628_v62  ;;  %v6068_v34 = vmov 1326507024  }
  0x75   :  { %v644_v42 = vshrl.u32 %v6068_v34, %v629_v53  ;;  %v3164_v63 = vadd.s32 4294967169, %v721_v35  ;;  %vm646_vm0 = vcmp.lt.s32.totalorder %v627_v60, 1  ;;  %vm648_vm1 = vcmp.lt.s32.totalorder %v627_v60, 3 }
  0x76   :  { %vm649_vm2 = vcmp.lt.s32.totalorder %v627_v60, 4  ;;  %v662_v25 = vshll.u32 %v622_v7, 8  ;;  %vm647_vm3 = vcmp.lt.s32.totalorder %v627_v60, 2  ;;  %v650_v39 = vsel %vm646_vm0, %v630_v10, %v633_v55 }
  0x77   :  { %v645_v32 = vor.u32 %v644_v42, %v643_v41  ;;  %v651_v57 = vsel %vm649_vm2, %v639_v54, 2102212464  ;;  %v654_v33 = vsel %vm646_vm0, %v633_v55, %v636_v12  ;;  %v655_v49 = vsel %vm649_vm2, %v642_v11, 920167782 }
  0x78   :  { %v652_v61 = vsel %vm648_vm1, %v636_v12, %v651_v57  ;;  %v658_v27 = vsel %vm646_vm0, %v636_v12, %v639_v54  ;;  %v579_v3 = vclz %v3157_v17  ;;  %v656_v20 = vsel %vm648_vm1, %v639_v54, %v655_v49 }
  0x79   :  { %v659_v62 = vsel %vm649_vm2, %v645_v32, 1326507024  ;;  %v727_v16 = vadd.s32 1, %v3164_v63  ;;  %v289_v53 = vsel %vm204_vm11, %v288_v2, %v3627_v56  ;;  %v290_v42 = vsel %vm3850_vm12, %v3543_v0, %v287_v29 }
  0x7a   :  { %v657_v36 = vsel %vm647_vm3, %v654_v33, %v656_v20  ;;  %v660_v57 = vsel %vm648_vm1, %v642_v11, %v659_v62  ;;  %v390_v12 = vsel %vm307_vm14, %v389_v5, %v388_v40  ;;  %v484_v17 = vsub.s32 4294967266, %v3876_v6 }
  0x7b   :  { %v653_v54 = vsel %vm647_vm3, %v650_v39, %v652_v61  ;;  %v661_v32 = vsel %vm647_vm3, %v658_v27, %v660_v57  ;;  %v3900_v56 = vmul.u32.u64.low %v662_v25, %v657_v36  ;;  %v3901_v2 = vmul.u32.u64.high %v662_v25, %v657_v36, %v3900_v56 }
  0x7c   :  { %v3897_v24 = vmul.u32.u64.low %v662_v25, %v661_v32  ;;  %v3898_v35 = vmul.u32.u64.high %v662_v25, %v661_v32, %v3897_v24  ;;  %v3906_v0 = vsel %vm3850_vm12, 0, %v289_v53  ;;  %v391_v29 = vsub.s32 4, %v3656_v30 }
  0x7d   :  { %v3158_v11 = vadd.s32 4294967294, %v579_v3  ;;  %vm728_vm4 = vcmp.gt.s32.totalorder %v727_v16, 0  ;;  %v3910_v5 = vand.u32 3, %v3906_v0  ;;  %v393_v60 = vsel %vm3871_vm15, %v3545_v1, %v390_v12 }
  0x7e   :  { %v464_v40 = vadd.s32 %v3680_v13, %v3676_v8  ;;  %v729_v7 = vsel %vm728_vm4, %v727_v16, 0  ;;  %3335 = vcosq.f32 %v290_v42  ;;  %v480_v26 = vsub.s32 32, %v3876_v6 }
  0x7f   :  { %v669_v10 = vmul.u32 %v662_v25, %v653_v54  ;;  %v5959_v55 = vand.u32 2147483647, %v3810_v47  ;;  %3337 = vsinq.f32 %v290_v42  ;;  %v485_v41 = vadd.s32 127, %v484_v17 }
  0x80   :  { %vm671_vm5 = vc.u32 %v3898_v35, %v3900_v56  ;;  %v672_v63 = vadd.s32 1, %v3901_v2  ;;  %v3925_v39 = vsel %vm307_vm14, %v391_v29, %v3656_v30  ;;  %3339 = vcosq.f32 %v393_v60 }
  0x81   :  { %vm3159_vm6 = vcmp.lt.s32.totalorder %v3158_v11, 0  ;;  %v731_v8 = vand.u32 31, %v729_v7  ;;  %3341 = vsinq.f32 %v393_v60  ;;  %v481_v13 = vshll.u32 %v3735_v23, %v3876_v6 }
  0x82   :  { %v673_v61 = vsel %vm671_vm5, %v672_v63, %v3901_v2  ;;  %v482_v33 = vshrl.u32 %v464_v40, %v480_v26  ;;  %v724_v27 = vand.u32 8388607, %v5959_v55  ;;  %v486_v1 = vshll.u32 %v485_v41, 23 }
  0x83   :  { %v674_v49 = vadd.s32 %v673_v61, %v669_v10  ;;  %v732_v3 = vsub.s32 32, %v731_v8  ;;  %v3933_v30 = vsel %vm3159_vm6, 0, %v3158_v11  ;;  %v730_v20 = vshrl.u32 %v729_v7, 5 }
  0x84   :  { %v734_v62 = vshll.u32 %v6067_v14, %v731_v8  ;;  %v6069_v53 = vmov 2475754826   ;;  %v6070_v6 = vmov 2131351028   ;;  %v743_v17 = vshll.u32 %v6062_v22, %v731_v8 }
  0x85   :  { %v675_v16 = vadd.s32 536870912, %v674_v49  ;;  %v735_v42 = vshrl.u32 %v6069_v53, %v732_v3  ;;  %v737_v23 = vshll.u32 %v6069_v53, %v731_v8  ;;  %v740_v36 = vshll.u32 %v6070_v6, %v731_v8 }
  0x86   :  { %v738_v57 = vshrl.u32 %v6070_v6, %v732_v3  ;;  %v741_v12 = vshrl.u32 %v6062_v22, %v732_v3  ;;  %v744_v54 = vshrl.u32 %v6063_v50, %v732_v3  ;;  %v3943_v32 = vor.u32 %v482_v33, %v481_v13 }
  0x87   :  { %v567_v24 = vadd.s32 %v3769_v9, %v3762_v15  ;;  %v3947_v2 = vshrl.u32 %v675_v16, 30  ;;  %v746_v29 = vshll.u32 %v6063_v50, %v731_v8  ;;  %v3950_v11 = vor.u32 4788187, %v486_v1 }
  0x88   :  { %v587_v60 = vsub.s32 4294967266, %v3933_v30  ;;  %v725_v40 = vor.u32 8388608, %v724_v27  ;;  %v747_v7 = vshrl.u32 %v6068_v34, %v732_v3  ;;  %v3954_v26 = vpop.eup %3335  ;;  %v736_v41 = vor.u32 %v735_v42, %v734_v62 }
  0x89   :  { %v677_v10 = vshll.u32 %v3947_v2, 30  ;;  %v739_v63 = vor.u32 %v738_v57, %v737_v23  ;;  %v745_v13 = vor.u32 %v744_v54, %v743_v17  ;;  %v3957_v61 = vpop.eup %3337  ;;  %vm410_vm7 = vcmp.lt.s32.totalorder %v3549_v4, 0 }
  0x8a   :  { %v742_v15 = vor.u32 %v741_v12, %v740_v36  ;;  %v748_v9 = vor.u32 %v747_v7, %v746_v29  ;;  %vm749_vm8 = vcmp.lt.s32.totalorder %v730_v20, 1  ;;  %vm752_vm9 = vcmp.lt.s32.totalorder %v730_v20, 4  ;;  %v3960_v8 = vpop.eup %3339 }
  0x8b   :  { %v583_v33 = vsub.s32 32, %v3933_v30  ;;  %v3963_v27 = vsub.s32 %v674_v49, %v677_v10  ;;  %v733_v1 = vshrl.u32 %v6067_v14, %v732_v3  ;;  %vm751_vm10 = vcmp.lt.s32.totalorder %v730_v20, 3  ;;  %v3966_v62 = vpop.eup %3341 }
  0x8c   :  { %vm300_vm11 = vcmp.eq.s32.totalorder %v3910_v5, 2  ;;  %v588_v16 = vadd.s32 127, %v587_v60  ;;  %v754_v42 = vsel %vm752_vm9, %v742_v15, 2102212464  ;;  %v765_v23 = vshll.u32 %v725_v40, 8 }
  0x8d   :  { %v823_v36 = vand.u32 2139095040, %v3818_v43  ;;  %vm297_vm12 = vcmp.eq.s32.totalorder %v3910_v5, 0  ;;  %v680_v57 = vsub.s32 0, %v3963_v27  ;;  %vm750_vm13 = vcmp.lt.s32.totalorder %v730_v20, 2 }
  0x8e   :  { %v757_v49 = vsel %vm749_vm8, %v736_v41, %v739_v63  ;;  %v758_v3 = vsel %vm752_vm9, %v745_v13, 920167782  ;;  %v584_v12 = vshll.u32 %v3854_v46, %v3933_v30  ;;  %v761_v54 = vsel %vm749_vm8, %v739_v63, %v742_v15 }
  0x8f   :  { %v759_v17 = vsel %vm751_vm10, %v742_v15, %v758_v3  ;;  %v762_v29 = vsel %vm752_vm9, %v748_v9, 1326507024  ;;  %v585_v60 = vshrl.u32 %v567_v24, %v583_v33  ;;  %v3161_v40 = vmin.u32 %v680_v57, %v3963_v27 }
  0x90   :  { %v753_v7 = vsel %vm749_vm8, %v733_v1, %v736_v41  ;;  %v755_v10 = vsel %vm751_vm10, %v739_v63, %v754_v42  ;;  %v589_v55 = vshll.u32 %v588_v16, 23  ;;  %v760_v25 = vsel %vm750_vm13, %v757_v49, %v759_v17 }
  0x91   :  { %v763_v59 = vsel %vm751_vm10, %v745_v13, %v762_v29  ;;  %v824_v48 = vshrl.u32 %v823_v36, 23  ;;  %v682_v46 = vclz %v3161_v40  ;;  %v756_v24 = vsel %vm750_vm13, %v753_v7, %v755_v10 }
  0x92   :  { %v764_v30 = vsel %vm750_vm13, %v761_v54, %v763_v59  ;;  %v3986_v3 = vmul.u32.u64.low %v765_v23, %v760_v25  ;;  %v3987_v15 = vmul.u32.u64.high %v765_v23, %v760_v25, %v3986_v3  ;;  %v5963_v63 = vxor.u32 2147483648, %v3957_v61 }
  0x93   :  { %v3991_v9 = vmul.u32.u64.low %v765_v23, %v764_v30  ;;  %v3992_v33 = vmul.u32.u64.high %v765_v23, %v764_v30, %v3991_v9  ;;  %v3168_v41 = vadd.s32 4294967169, %v824_v48  ;;  %v5962_v1 = vxor.u32 2147483648, %v3954_v26 }
  0x94   :  { %v6071_v13 = vsub.s32 4, %v3703_v45  ;;  %v3162_v16 = vadd.s32 4294967294, %v682_v46  ;;  %v488_v25 = vand.u32 2147483647, %v3950_v11  ;;  %v490_v20 = vcvt.s32.f32 %v3943_v32 }
  0x95   :  { %v586_v42 = vor.u32 %v585_v60, %v584_v12  ;;  %v830_v36 = vadd.s32 1, %v3168_v41  ;;  %v590_v57 = vor.u32 4788187, %v589_v55  ;;  %v772_v48 = vmul.u32 %v765_v23, %v756_v24 }
  0x96   :  { %v495_v59 = vsel %vm410_vm7, %v6071_v13, %v3703_v45  ;;  %vm3163_vm14 = vcmp.lt.s32.totalorder %v3162_v16, 0  ;;  %v775_v49 = vadd.s32 1, %v3987_v15  ;;  %vm296_vm0 = vcmp.lt.s32.totalorder %v3910_v5, 2 }
  0x97   :  { %v6072_v17 = vand.u32 2147483647, %v3549_v4  ;;  %v685_v45 = vsel %vm3163_vm14, 0, %v3162_v16  ;;  %vm774_vm2 = vc.u32 %v3992_v33, %v3986_v3  ;;  %v302_v55 = vsel %vm300_vm11, %v5962_v1, %v3957_v61 }
  0x98   :  { %v4021_v32 = vsel %vm3871_vm15, 0, %v3925_v39  ;;  %v690_v23 = vsub.s32 4294967266, %v685_v45  ;;  %v299_v12 = vsel %vm297_vm12, %v3954_v26, %v5963_v63  ;;  %v776_v29 = vsel %vm774_vm2, %v775_v49, %v3987_v15 }
  0x99   :  { %vm4007_vm1 = vcmp.le.f32.partialorder %v6072_v17, 0.7853982  ;;  %v5964_v60 = vand.u32 2147483647, %v3818_v43  ;;  %vm831_vm3 = vcmp.gt.s32.totalorder %v830_v36, 0  ;;  %v491_v40 = vmul.f32 %v490_v20, %v488_v25 }
  0x9a   :  { %v4025_v11 = vsel %vm4007_vm1, 0, %v495_v59  ;;  %v591_v31 = vand.u32 2147483647, %v590_v57  ;;  %v593_v39 = vcvt.s32.f32 %v586_v42  ;;  %v777_v7 = vadd.s32 %v776_v29, %v772_v48 }
  0x9b   :  { %v670_v10 = vadd.s32 %v3900_v56, %v3898_v35  ;;  %v686_v46 = vsub.s32 32, %v685_v45  ;;  %v832_v30 = vsel %vm831_vm3, %v830_v36, 0  ;;  %v926_v24 = vand.u32 2139095040, %v3821_v44 }
  0x9c   :  { %v4038_v9 = vand.u32 3, %v4021_v32  ;;  %v4041_v41 = vand.u32 3, %v4025_v11  ;;  %v691_v15 = vadd.s32 127, %v690_v23  ;;  %v778_v13 = vadd.s32 536870912, %v777_v7 }
  0x9d   :  { %v4045_v59 = vsel %vm296_vm0, %v299_v12, %v302_v55  ;;  %v834_v56 = vand.u32 31, %v832_v30  ;;  %v492_v25 = vxor.u32 2147483648, %v491_v40  ;;  %v4049_v20 = vmul.f32 %v593_v39, %v591_v31 }
  0x9e   :  { %v4051_v42 = vshrl.u32 %v778_v13, 30  ;;  %v827_v36 = vand.u32 8388607, %v5964_v60  ;;  %v687_v57 = vshll.u32 %v3963_v27, %v685_v45  ;;  %v688_v48 = vshrl.u32 %v670_v10, %v686_v46 }
  0x9f   :  { %v835_v49 = vsub.s32 32, %v834_v56  ;;  %v927_v5 = vshrl.u32 %v926_v24, 23  ;;  %v692_v17 = vshll.u32 %v691_v15, 23  ;;  %v4057_v23 = vshrl.u32 %v832_v30, 5 }
  0xa0   :  { %v780_v55 = vshll.u32 %v4051_v42, 30  ;;  %v837_v12 = vshll.u32 %v6067_v14, %v834_v56  ;;  %v840_v31 = vshll.u32 %v6069_v53, %v834_v56  ;;  %v846_v13 = vshll.u32 %v6062_v22, %v834_v56 }
  0xa1   :  { %v838_v29 = vshrl.u32 %v6069_v53, %v835_v49  ;;  %v841_v39 = vshrl.u32 %v6070_v6, %v835_v49  ;;  %v843_v27 = vshll.u32 %v6070_v6, %v834_v56  ;;  %v844_v45 = vshrl.u32 %v6062_v22, %v835_v49 }
  0xa2   :  { %v4064_v1 = vsub.s32 %v777_v7, %v780_v55  ;;  %v847_v10 = vshrl.u32 %v6063_v50, %v835_v49  ;;  %v493_v46 = vsel %vm410_vm7, %v492_v25, %v491_v40  ;;  %vm513_vm15 = vcmp.lt.s32.totalorder %v3618_v51, 0 }
  0xa3   :  { %v595_v30 = vxor.u32 2147483648, %v4049_v20  ;;  %v828_v24 = vor.u32 8388608, %v827_v36  ;;  %v3172_v15 = vadd.s32 4294967169, %v927_v5  ;;  %v689_v63 = vor.u32 %v688_v48, %v687_v57 }
  0xa4   :  { %v693_v60 = vor.u32 4788187, %v692_v17  ;;  %v783_v7 = vsub.s32 0, %v4064_v1  ;;  %v839_v55 = vor.u32 %v838_v29, %v837_v12  ;;  %vm400_vm4 = vcmp.eq.s32.totalorder %v4038_v9, 0 }
  0xa5   :  { %vm403_vm5 = vcmp.eq.s32.totalorder %v4038_v9, 2  ;;  %v842_v35 = vor.u32 %v841_v39, %v840_v31  ;;  %v848_v16 = vor.u32 %v847_v10, %v846_v13  ;;  %v849_v4 = vshll.u32 %v6063_v50, %v834_v56 }
  0xa6   :  { %v850_v40 = vshrl.u32 %v6068_v34, %v835_v49  ;;  %v3165_v25 = vmin.u32 %v783_v7, %v4064_v1  ;;  %v836_v36 = vshrl.u32 %v6067_v14, %v835_v49  ;;  %v845_v5 = vor.u32 %v844_v45, %v843_v27 }
  0xa7   :  { %vm852_vm6 = vcmp.lt.s32.totalorder %v4057_v23, 1  ;;  %v6075_v57 = vand.u32 2147483647, %v3618_v51  ;;  %vm854_vm8 = vcmp.lt.s32.totalorder %v4057_v23, 3  ;;  %v868_v12 = vshll.u32 %v828_v24, 8 }
  0xa8   :  { %v851_v17 = vor.u32 %v850_v40, %v849_v4  ;;  %v933_v56 = vadd.s32 1, %v3172_v15  ;;  %v696_v29 = vcvt.s32.f32 %v689_v63  ;;  %v785_v31 = vclz %v3165_v25  ;;  %v4108_v25 = vld [vmem:[#allocation5 + $0x110] sm:$0xff] }
  0xa9   :  { %vm4083_vm7 = vcmp.le.f32.partialorder %v6075_v57, 0.7853982  ;;  %vm853_vm9 = vcmp.lt.s32.totalorder %v4057_v23, 2  ;;  %vm855_vm10 = vcmp.lt.s32.totalorder %v4057_v23, 4  ;;  %v694_v49 = vand.u32 2147483647, %v693_v60 }
  0xaa   :  { %v857_v39 = vsel %vm855_vm10, %v845_v5, 2102212464  ;;  %v860_v13 = vsel %vm852_vm6, %v839_v55, %v842_v35  ;;  %v861_v27 = vsel %vm855_vm10, %v848_v16, 920167782  ;;  %v3166_v45 = vadd.s32 4294967294, %v785_v31 }
  0xab   :  { %v856_v10 = vsel %vm852_vm6, %v836_v36, %v839_v55  ;;  %v862_v24 = vsel %vm854_vm8, %v845_v5, %v861_v27  ;;  %v864_v63 = vsel %vm852_vm6, %v842_v35, %v845_v5  ;;  %v858_v15 = vsel %vm854_vm8, %v842_v35, %v857_v39 }
  0xac   :  { %v863_v60 = vsel %vm853_vm9, %v860_v13, %v862_v24  ;;  %v865_v7 = vsel %vm855_vm10, %v851_v17, 1326507024  ;;  %vm934_vm11 = vcmp.gt.s32.totalorder %v933_v56, 0  ;;  %vm3167_vm12 = vcmp.lt.s32.totalorder %v3166_v45, 0 }
  0xad   :  { %v866_v4 = vsel %vm854_vm8, %v848_v16, %v865_v7  ;;  %v4104_v40 = vmul.u32.u64.low %v868_v12, %v863_v60  ;;  %v4105_v55 = vmul.u32.u64.high %v868_v12, %v863_v60, %v4104_v40  ;;  %v496_v36 = vsel %vm4007_vm1, %v4108_v25, %v493_v46 }
  0xae   :  { %v788_v35 = vsel %vm3167_vm12, 0, %v3166_v45  ;;  %v867_v5 = vsel %vm853_vm9, %v864_v63, %v866_v4  ;;  %v935_v57 = vsel %vm934_vm11, %v933_v56, 0  ;;  %v596_v17 = vsel %vm513_vm15, %v595_v30, %v4049_v20  ;;  %v4142_v63 = vld [vmem:[#allocation5 + $0x118] sm:$0xff] }
  0xaf   :  { %vm616_vm13 = vcmp.lt.s32.totalorder %v3724_v18, 0  ;;  %v793_v16 = vsub.s32 4294967266, %v788_v35  ;;  %v859_v31 = vsel %vm853_vm9, %v856_v10, %v858_v15  ;;  %v5965_v39 = vand.u32 2147483647, %v3821_v44 }
  0xb0   :  { %v697_v13 = vmul.f32 %v696_v29, %v694_v49  ;;  %v4122_v54 = vmul.u32.u64.low %v868_v12, %v867_v5  ;;  %v4123_v46 = vmul.u32.u64.high %v868_v12, %v867_v5, %v4122_v54  ;;  %v937_v27 = vand.u32 31, %v935_v57 }
  0xb1   :  { %v6078_v45 = vxor.u32 2147483648, %v3966_v62  ;;  %v6079_v20 = vxor.u32 2147483648, %v3960_v8  ;;  %3343 = vcosq.f32 %v496_v36  ;;  %v878_v30 = vadd.s32 1, %v4105_v55 }
  0xb2   :  { %v773_v29 = vadd.s32 %v3986_v3, %v3992_v33  ;;  %v789_v49 = vsub.s32 32, %v788_v35  ;;  %v875_v10 = vmul.u32 %v868_v12, %v859_v31  ;;  %v938_v24 = vsub.s32 32, %v937_v27 }
  0xb3   :  { %v4130_v56 = vsel %vm400_vm4, %v3960_v8, %v6078_v45  ;;  %v4137_v23 = vsel %vm403_vm5, %v6079_v20, %v3966_v62  ;;  %3345 = vsinq.f32 %v496_v36  ;;  %v599_v15 = vsel %vm4083_vm7, %v4142_v63, %v596_v17 }
  0xb4   :  { %v6080_v60 = vand.u32 2147483647, %v3724_v18  ;;  %v794_v4 = vadd.s32 127, %v793_v16  ;;  %v930_v3 = vand.u32 8388607, %v5965_v39  ;;  %v698_v33 = vxor.u32 2147483648, %v697_v13 }
  0xb5   :  { %v790_v12 = vshll.u32 %v4064_v1, %v788_v35  ;;  %vm877_vm0 = vc.u32 %v4123_v46, %v4104_v40  ;;  %v4158_v36 = vshrl.u32 %v935_v57, 5  ;;  %v940_v17 = vshll.u32 %v6067_v14, %v937_v27 }
  0xb6   :  { %vm4149_vm14 = vcmp.le.f32.partialorder %v6080_v60, 0.7853982  ;;  %v879_v5 = vsel %vm877_vm0, %v878_v30, %v4105_v55  ;;  %v943_v31 = vshll.u32 %v6069_v53, %v937_v27  ;;  %v949_v54 = vshll.u32 %v6062_v22, %v937_v27 }
  0xb7   :  { %v791_v16 = vshrl.u32 %v773_v29, %v789_v49  ;;  %v880_v45 = vadd.s32 %v879_v5, %v875_v10  ;;  %v941_v20 = vshrl.u32 %v6069_v53, %v938_v24  ;;  %v944_v60 = vshrl.u32 %v6070_v6, %v938_v24 }
  0xb8   :  { %vm399_vm1 = vcmp.lt.s32.totalorder %v4038_v9, 2  ;;  %v795_v1 = vshll.u32 %v794_v4, 23  ;;  %v946_v35 = vshll.u32 %v6070_v6, %v937_v27  ;;  %v947_v57 = vshrl.u32 %v6062_v22, %v938_v24 }
  0xb9   :  { %v950_v55 = vshrl.u32 %v6063_v50, %v938_v24  ;;  %v597_v30 = vsub.s32 4, %v3823_v52  ;;  %3347 = vcosq.f32 %v599_v15  ;;  %v881_v39 = vadd.s32 536870912, %v880_v45 }
  0xba   :  { %v952_v29 = vshll.u32 %v6063_v50, %v937_v27  ;;  %v931_v49 = vor.u32 8388608, %v930_v3  ;;  %v942_v10 = vor.u32 %v941_v20, %v940_v17  ;;  %v945_v5 = vor.u32 %v944_v60, %v943_v31  ;;  %v4184_v31 = vld [vmem:[#allocation5 + $0x108] sm:$0xff] }
  0xbb   :  { %v951_v53 = vor.u32 %v950_v55, %v949_v54  ;;  %v699_v28 = vsel %vm616_vm13, %v698_v33, %v697_v13  ;;  %v4174_v4 = vshrl.u32 %v881_v39, 30  ;;  %v953_v6 = vshrl.u32 %v6068_v34, %v938_v24  ;;  %v4178_v22 = vpop.eup %3343 }
  0xbc   :  { %vm955_vm2 = vcmp.lt.s32.totalorder %v4158_v36, 1  ;;  %vm294_vm3 = vweird.f32 %v4180_v58  ;;  %v792_v27 = vor.u32 %v791_v16, %v790_v12  ;;  %v796_v3 = vor.u32 4788187, %v795_v1 }
  0xbd   :  { %v948_v17 = vor.u32 %v947_v57, %v946_v35  ;;  %vm958_vm4 = vcmp.lt.s32.totalorder %v4158_v36, 4  ;;  %vm5974_vm5 = vweird.f32 %v4184_v31  ;;  %v883_v39 = vshll.u32 %v4174_v4, 30  ;;  %v4190_v54 = vpop.eup %3345 }
  0xbe   :  { %v939_v13 = vshrl.u32 %v6067_v14, %v938_v24  ;;  %v954_v33 = vor.u32 %v953_v6, %v952_v29  ;;  %vm957_vm6 = vcmp.lt.s32.totalorder %v4158_v36, 3  ;;  %vm956_vm8 = vcmp.lt.s32.totalorder %v4158_v36, 2 }
  0xbf   :  { %v963_v12 = vsel %vm955_vm2, %v942_v10, %v945_v5  ;;  %v964_v16 = vsel %vm958_vm4, %v951_v53, 920167782  ;;  %v971_v20 = vshll.u32 %v931_v49, 8  ;;  %3349 = vsinq.f32 %v599_v15 }
  0xc0   :  { %v702_v60 = vsel %vm4149_vm14, %v3724_v18, %v699_v28  ;;  %v4200_v24 = vsub.s32 %v880_v45, %v883_v39  ;;  %v960_v6 = vsel %vm958_vm4, %v948_v17, 2102212464  ;;  %v797_v1 = vand.u32 2147483647, %v796_v3 }
  0xc1   :  { %v799_v35 = vcvt.s32.f32 %v792_v27  ;;  %v965_v57 = vsel %vm957_vm6, %v948_v17, %v964_v16  ;;  %v968_v55 = vsel %vm958_vm4, %v954_v33, 1326507024  ;;  %v959_v15 = vsel %vm955_vm2, %v939_v13, %v942_v10 }
  0xc2   :  { %v886_v29 = vsub.s32 0, %v4200_v24  ;;  %v966_v28 = vsel %vm956_vm8, %v963_v12, %v965_v57  ;;  %v967_v45 = vsel %vm955_vm2, %v945_v5, %v948_v17  ;;  %v961_v49 = vsel %vm957_vm6, %v945_v5, %v960_v6 }
  0xc3   :  { %v969_v27 = vsel %vm957_vm6, %v951_v53, %v968_v55  ;;  %v4219_v3 = vmul.u32.u64.low %v971_v20, %v966_v28  ;;  %v4220_v39 = vmul.u32.u64.high %v971_v20, %v966_v28, %v4219_v3  ;;  %v4223_v33 = vpop.eup %3347  ;;  %v406_v10 = vsel %vm399_vm1, %v4130_v56, %v4137_v23 }
  0xc4   :  { %v598_v17 = vsel %vm513_vm15, %v597_v30, %v3823_v52  ;;  %3351 = vcosq.f32 %v702_v60  ;;  %v3169_v5 = vmin.u32 %v886_v29, %v4200_v24  ;;  %v700_v53 = vsub.s32 4, %v3947_v2 }
  0xc5   :  { %3353 = vsinq.f32 %v702_v60  ;;  %v800_v13 = vmul.f32 %v799_v35, %v797_v1  ;;  %v970_v12 = vsel %vm956_vm8, %v967_v45, %v969_v27  ;;  %v962_v6 = vsel %vm956_vm8, %v959_v15, %v961_v49 }
  0xc6   :  { %v888_v16 = vclz %v3169_v5  ;;  %v4238_v9 = vmul.u32.u64.low %v971_v20, %v970_v12  ;;  %v4239_v56 = vmul.u32.u64.high %v971_v20, %v970_v12, %v4238_v9  ;;  %vm503_vm9 = vcmp.eq.s32.totalorder %v4041_v41, 0 }
  0xc7   :  { %vm506_vm15 = vcmp.eq.s32.totalorder %v4041_v41, 2  ;;  %vm719_vm10 = vcmp.lt.s32.totalorder %v3810_v47, 0  ;;  %v981_v51 = vadd.s32 1, %v4220_v39  ;;  %v4248_v52 = vsel %vm294_vm3, nan, %v4045_v59 }
  0xc8   :  { %v4252_v23 = vsel %vm4083_vm7, 0, %v598_v17  ;;  %v6083_v36 = vand.u32 2147483647, %v3810_v47  ;;  %v3170_v60 = vadd.s32 4294967294, %v888_v16  ;;  %v4262_v1 = vsel %vm5974_vm5, nan, %v406_v10 }
  0xc9   :  { %v4265_v35 = vand.u32 3, %v4252_v23  ;;  %v701_v59 = vsel %vm616_vm13, %v700_v53, %v3947_v2  ;;  %v978_v48 = vmul.u32 %v971_v20, %v962_v6  ;;  %v4270_v57 = vpop.eup %3349  ;;  %v801_v55 = vxor.u32 2147483648, %v800_v13 }
  0xca   :  { %vm4256_vm11 = vcmp.le.f32.partialorder %v6083_v36, 0.7853982  ;;  %v876_v29 = vadd.s32 %v4104_v40, %v4123_v46  ;;  %vm3171_vm7 = vcmp.lt.s32.totalorder %v3170_v60, 0  ;;  %vm980_vm12 = vc.u32 %v4239_v56, %v4219_v3 }
  0xcb   :  { %v504_v15 = vxor.u32 2147483648, %v4190_v54  ;;  %v507_v28 = vxor.u32 2147483648, %v4178_v22  ;;  %v891_v45 = vsel %vm3171_vm7, 0, %v3170_v60  ;;  %v982_v49 = vsel %vm980_vm12, %v981_v51, %v4220_v39  ;;  %v4311_v60 = vld [vmem:[#allocation5 + $0x120] sm:$0xff] }
  0xcc   :  { %vm502_vm13 = vcmp.lt.s32.totalorder %v4041_v41, 2  ;;  %v4282_v18 = vsel %vm4149_vm14, 0, %v701_v59  ;;  %v892_v2 = vsub.s32 32, %v891_v45  ;;  %v893_v40 = vshll.u32 %v4200_v24, %v891_v45 }
  0xcd   :  { %v896_v46 = vsub.s32 4294967266, %v891_v45  ;;  %vm605_vm0 = vcmp.lt.s32.totalorder %v4265_v35, 2  ;;  %vm606_vm1 = vcmp.eq.s32.totalorder %v4265_v35, 0  ;;  %v707_v20 = vand.u32 3, %v4282_v18 }
  0xce   :  { %v983_v27 = vadd.s32 %v982_v49, %v978_v48  ;;  %v4288_v10 = vpop.eup %3351  ;;  %vm609_vm2 = vcmp.eq.s32.totalorder %v4265_v35, 2  ;;  %v802_v7 = vsel %vm719_vm10, %v801_v55, %v800_v13  ;;  %v894_v39 = vshrl.u32 %v876_v29, %v892_v2 }
  0xcf   :  { %v897_v17 = vadd.s32 127, %v896_v46  ;;  %v4293_v5 = vpop.eup %3353  ;;  %vm5973_vm14 = vweird.f32 %v4108_v25  ;;  %v505_v24 = vsel %vm503_vm9, %v4178_v22, %v504_v15  ;;  %v508_v53 = vsel %vm506_vm15, %v507_v28, %v4190_v54 }
  0xd0   :  { %v610_v13 = vxor.u32 2147483648, %v4223_v33  ;;  %v984_v12 = vadd.s32 536870912, %v983_v27  ;;  %v803_v16 = vsub.s32 4, %v4051_v42  ;;  %v895_v6 = vor.u32 %v894_v39, %v893_v40 }
  0xd1   :  { %v898_v9 = vshll.u32 %v897_v17, 23  ;;  %v1119_v51 = vadd.s32 3, %v3906_v0  ;;  %vm5972_vm4 = vweird.f32 %v4142_v63  ;;  %v607_v36 = vxor.u32 2147483648, %v4270_v57 }
  0xd2   :  { %vm5971_vm6 = vweird.f32 %v4311_v60  ;;  %vm708_vm8 = vcmp.lt.s32.totalorder %v707_v20, 2  ;;  %v805_v59 = vsel %vm4256_vm11, %v3810_v47, %v802_v7  ;;  %v4317_v48 = vshrl.u32 %v984_v12, 30 }
  0xd3   :  { %v710_v55 = vxor.u32 2147483648, %v4293_v5  ;;  %v713_v29 = vxor.u32 2147483648, %v4288_v10  ;;  %v899_v0 = vor.u32 4788187, %v898_v9  ;;  %v902_v45 = vcvt.s32.f32 %v895_v6 }
  0xd4   :  { %v611_v49 = vsel %vm609_vm2, %v610_v13, %v4270_v57  ;;  %vm709_vm9 = vcmp.eq.s32.totalorder %v707_v20, 0  ;;  %vm712_vm15 = vcmp.eq.s32.totalorder %v707_v20, 2  ;;  %v986_v2 = vshll.u32 %v4317_v48, 30 }
  0xd5   :  { %v804_v40 = vsel %vm719_vm10, %v803_v16, %v4051_v42  ;;  %3355 = vcosq.f32 %v805_v59  ;;  %v900_v46 = vand.u32 2147483647, %v899_v0  ;;  %v1120_v7 = vand.u32 3, %v1119_v51 }
  0xd6   :  { %v608_v39 = vsel %vm606_vm1, %v4223_v33, %v607_v36  ;;  %3357 = vsinq.f32 %v805_v59  ;;  %v4335_v17 = vsub.s32 %v983_v27, %v986_v2  ;;  %v1223_v12 = vadd.s32 3, %v4021_v32 }
  0xd7   :  { %v711_v6 = vsel %vm709_vm9, %v4288_v10, %v710_v55  ;;  %v714_v47 = vsel %vm712_vm15, %v713_v29, %v4293_v5  ;;  %v903_v42 = vmul.f32 %v902_v45, %v900_v46  ;;  %v906_v16 = vsub.s32 4, %v4174_v4 }
  0xd8   :  { %v509_v9 = vsel %vm502_vm13, %v505_v24, %v508_v53  ;;  %v806_v27 = vsel %vm4256_vm11, 0, %v804_v40  ;;  %vm822_vm10 = vcmp.lt.s32.totalorder %v3818_v43, 0  ;;  %v989_v32 = vsub.s32 0, %v4335_v17 }
  0xd9   :  { %v612_v51 = vsel %vm605_vm0, %v608_v39, %v611_v49  ;;  %v4353_v59 = vand.u32 3, %v806_v27  ;;  %vm1122_vm7 = vcmp.eq.s32.totalorder %v1120_v7, 0  ;;  %vm1125_vm12 = vcmp.eq.s32.totalorder %v1120_v7, 2 }
  0xda   :  { %v715_v0 = vsel %vm708_vm8, %v711_v6, %v714_v47  ;;  %v904_v45 = vxor.u32 2147483648, %v903_v42  ;;  %v3173_v41 = vmin.u32 %v989_v32, %v4335_v17  ;;  %v4357_v24 = vand.u32 3, %v1223_v12 }
  0xdb   :  { %v4361_v30 = vsel %vm5973_vm14, nan, %v509_v9  ;;  %v6086_v53 = vand.u32 2147483647, %v3818_v43  ;;  %v907_v20 = vsel %vm822_vm10, %v906_v16, %v4174_v4  ;;  %vm1121_vm13 = vcmp.lt.s32.totalorder %v1120_v7, 2 }
  0xdc   :  { %v991_v49 = vclz %v3173_v41  ;;  %v6089_v2 = vxor.u32 2147483648, %v3957_v61  ;;  %v6090_v46 = vxor.u32 2147483648, %v3954_v26  ;;  %v1327_v12 = vadd.s32 3, %v4025_v11 }
  0xdd   :  { %vm4365_vm11 = vcmp.le.f32.partialorder %v6086_v53, 0.7853982  ;;  %v4381_v6 = vsel %vm5972_vm4, nan, %v612_v51  ;;  %v4385_v47 = vsel %vm5971_vm6, nan, %v715_v0  ;;  %vm812_vm0 = vcmp.eq.s32.totalorder %v4353_v59, 0 }
  0xde   :  { %v1124_v40 = vsel %vm1122_vm7, %v3954_v26, %v6089_v2  ;;  %v1127_v39 = vsel %vm1125_vm12, %v6090_v46, %v3957_v61  ;;  %vm815_vm1 = vcmp.eq.s32.totalorder %v4353_v59, 2  ;;  %v905_v4 = vsel %vm822_vm10, %v904_v45, %v903_v42 }
  0xdf   :  { %v909_v26 = vsel %vm4365_vm11, 0, %v907_v20  ;;  %v3174_v61 = vadd.s32 4294967294, %v991_v49  ;;  %vm1226_vm2 = vcmp.eq.s32.totalorder %v4357_v24, 0  ;;  %v4394_v11 = vpop.eup %3355  ;;  %v4398_v16 = vsel %vm1121_vm13, %v1124_v40, %v1127_v39 }
  0xe0   :  { %v4396_v7 = vand.u32 3, %v909_v26  ;;  %v1431_v9 = vadd.s32 3, %v4252_v23  ;;  %v1535_v32 = vadd.s32 3, %v4282_v18  ;;  %v4402_v51 = vpop.eup %3357  ;;  %vm925_vm8 = vcmp.lt.s32.totalorder %v3821_v44, 0 }
  0xe1   :  { %v979_v42 = vadd.s32 %v4219_v3, %v4239_v56  ;;  %vm3175_vm9 = vcmp.lt.s32.totalorder %v3174_v61, 0  ;;  %vm1229_vm15 = vcmp.eq.s32.totalorder %v4357_v24, 2  ;;  %v1328_v0 = vand.u32 3, %v1327_v12 }
  0xe2   :  { %v908_v45 = vsel %vm4365_vm11, %v3818_v43, %v905_v4  ;;  %v994_v41 = vsel %vm3175_vm9, 0, %v3174_v61  ;;  %vm1225_vm10 = vcmp.lt.s32.totalorder %v4357_v24, 2  ;;  %v6091_v23 = vxor.u32 2147483648, %v3966_v62  ;;  %v163_v43 = vld [vmem:[#allocation5 + $0xd0] sm:$0xff] }
  0xe3   :  { %vm811_vm7 = vcmp.lt.s32.totalorder %v4353_v59, 2  ;;  %v816_v53 = vxor.u32 2147483648, %v4394_v11  ;;  %v995_v3 = vsub.s32 32, %v994_v41  ;;  %v996_v56 = vshll.u32 %v4335_v17, %v994_v41  ;;  %v4428_v17 = vld [vmem:[#allocation5 + $0x128] sm:$0xff]  ;;  %v152_v59 = vld [vmem:[#allocation5 + $0x80] sm:$0xff] }
  0xe4   :  { %v1228_v18 = vsel %vm1226_vm2, %v3960_v8, %v6091_v23  ;;  %v999_v20 = vsub.s32 4294967266, %v994_v41  ;;  %v813_v49 = vxor.u32 2147483648, %v4402_v51  ;;  %v6092_v35 = vand.u32 2147483647, %v3821_v44 }
  0xe5   :  { %v6095_v2 = vxor.u32 2147483648, %v3960_v8  ;;  %v1432_v46 = vand.u32 3, %v1431_v9  ;;  %v1639_v39 = vadd.s32 3, %v806_v27  ;;  %3359 = vcosq.f32 %v908_v45 }
  0xe6   :  { %vm4421_vm12 = vcmp.le.f32.partialorder %v6092_v35, 0.7853982  ;;  %v997_v12 = vshrl.u32 %v979_v42, %v995_v3  ;;  %v1000_v4 = vadd.s32 127, %v999_v20  ;;  %vm1330_vm11 = vcmp.eq.s32.totalorder %v1328_v0, 0 }
  0xe7   :  { %v1231_v40 = vsel %vm1229_vm15, %v6095_v2, %v3966_v62  ;;  %vm809_vm13 = vweird.f32 %v4428_v17  ;;  %3361 = vsinq.f32 %v908_v45  ;;  %v1009_v61 = vsub.s32 4, %v4317_v48  ;;  %v109_v17 = vld [vmem:[#allocation2 + $0x88] sm:$0xff] }
  0xe8   :  { %vm1333_vm2 = vcmp.eq.s32.totalorder %v1328_v0, 2  ;;  %v1536_v41 = vand.u32 3, %v1535_v32  ;;  %v817_v8 = vsel %vm815_vm1, %v816_v53, %v4402_v51  ;;  %v998_v62 = vor.u32 %v997_v12, %v996_v56 }
  0xe9   :  { %v1001_v9 = vshll.u32 %v1000_v4, 23  ;;  %vm1329_vm9 = vcmp.lt.s32.totalorder %v1328_v0, 2  ;;  %v814_v27 = vsel %vm812_vm0, %v4394_v11, %v813_v49  ;;  %vm1434_vm15 = vcmp.eq.s32.totalorder %v1432_v46, 0 }
  0xea   :  { %vm1437_vm6 = vcmp.eq.s32.totalorder %v1432_v46, 2  ;;  %v1640_v42 = vand.u32 3, %v1639_v39  ;;  %v1005_v45 = vcvt.s32.f32 %v998_v62  ;;  %v1332_v32 = vsel %vm1330_vm11, %v4178_v22, %v504_v15  ;;  %v4494_v39 = vld [vmem:[#allocation5 + $0x130] sm:$0xff] }
  0xeb   :  { %v1002_v23 = vor.u32 4788187, %v1001_v9  ;;  %v1335_v3 = vsel %vm1333_vm2, %v507_v28, %v4190_v54  ;;  %v1010_v56 = vsel %vm925_vm8, %v1009_v61, %v4317_v48  ;;  %vm1538_vm1 = vcmp.eq.s32.totalorder %v1536_v41, 0  ;;  %v156_v61 = vld [vmem:[#allocation5 + $0xa0] sm:$0xff] }
  0xec   :  { %vm1541_vm0 = vcmp.eq.s32.totalorder %v1536_v41, 2  ;;  %v1743_v20 = vadd.s32 3, %v909_v26  ;;  %vm1433_vm4 = vcmp.lt.s32.totalorder %v1432_v46, 2  ;;  %v1436_v2 = vsel %vm1434_vm15, %v4223_v33, %v607_v36 }
  0xed   :  { %v1003_v35 = vand.u32 2147483647, %v1002_v23  ;;  %v1439_v15 = vsel %vm1437_vm6, %v610_v13, %v4270_v57  ;;  %vm915_vm11 = vcmp.eq.s32.totalorder %v4396_v7, 0  ;;  %v1232_v22 = vsel %vm1225_vm10, %v1228_v18, %v1231_v40 }
  0xee   :  { %vm1537_vm2 = vcmp.lt.s32.totalorder %v1536_v41, 2  ;;  %vm1642_vm14 = vcmp.eq.s32.totalorder %v1640_v42, 0  ;;  %vm1645_vm5 = vcmp.eq.s32.totalorder %v1640_v42, 2  ;;  %v1012_v28 = vsel %vm4421_vm12, 0, %v1010_v56 }
  0xef   :  { %v1006_v54 = vmul.f32 %v1005_v45, %v1003_v35  ;;  %v1540_v36 = vsel %vm1538_vm1, %v4288_v10, %v710_v55  ;;  %v1543_v33 = vsel %vm1541_vm0, %v713_v29, %v4293_v5  ;;  %v818_v57 = vsel %vm811_vm7, %v814_v27, %v817_v8  ;;  %v3360_v26 = vpop.eup %3359  ;;  %v4504_v8 = vld [vmem:[#allocation5 + $0x138] sm:$0xff]  ;;  %v161_v45 = vld [vmem:[#allocation5 + $0xc0] sm:$0xff] }
  0xf0   :  { %v1336_v13 = vsel %vm1329_vm9, %v1332_v32, %v1335_v3  ;;  %v1440_v48 = vsel %vm1433_vm4, %v1436_v2, %v1439_v15  ;;  %v4468_v24 = vand.u32 3, %v1743_v20  ;;  %vm914_vm6 = vcmp.lt.s32.totalorder %v4396_v7, 2  ;;  %v159_v27 = vld [vmem:[#allocation5 + $0xb8] sm:$0xff]  ;;  %v162_v32 = vld [vmem:[#allocation5 + $0xc8] sm:$0xff]  ;;  %v108_v35 = vld [vmem:[#allocation2 + $0x80] sm:$0xff] }
  0xf1   :  { %v1007_v18 = vxor.u32 2147483648, %v1006_v54  ;;  %vm1641_vm10 = vcmp.lt.s32.totalorder %v1640_v42, 2  ;;  %v1644_v40 = vsel %vm1642_vm14, %v4394_v11, %v813_v49  ;;  %v1647_v55 = vsel %vm1645_vm5, %v816_v53, %v4402_v51  ;;  %v3362_v46 = vpop.eup %3361  ;;  %v154_v53 = vld [vmem:[#allocation5 + $0x90] sm:$0xff]  ;;  %v155_v49 = vld [vmem:[#allocation5 + $0x98] sm:$0xff]  ;;  %v165_v15 = vld [vmem:[#allocation5 + $0xe0] sm:$0xff] }
  0xf2   :  { %vm918_vm15 = vcmp.eq.s32.totalorder %v4396_v7, 2  ;;  %v4477_v10 = vsel %vm294_vm3, nan, %v4398_v16  ;;  %v1544_v5 = vsel %vm1537_vm2, %v1540_v36, %v1543_v33  ;;  %v1847_v29 = vadd.s32 3, %v1012_v28  ;;  %v153_v16 = vld [vmem:[#allocation5 + $0x88] sm:$0xff]  ;;  %v164_v2 = vld [vmem:[#allocation5 + $0xd8] sm:$0xff]  ;;  %v167_v33 = vld [vmem:[#allocation5 + $0xf0] sm:$0xff] }
  0xf3   :  { %v4482_v0 = vsel %vm809_vm13, nan, %v818_v57  ;;  %v1008_v11 = vsel %vm925_vm8, %v1007_v18, %v1006_v54  ;;  %vm6096_vm5 = vweird.f32 %v4184_v31  ;;  %vm6097_vm14 = vweird.f32 %v4108_v25  ;;  %v157_v25 = vld [vmem:[#allocation5 + $0xa8] sm:$0xff]  ;;  %v168_v57 = vld [vmem:[#allocation5 + $0xf8] sm:$0xff] }
  0xf4   :  { %v4488_v51 = vsel %vm6096_vm5, nan, %v1232_v22  ;;  %v4492_v58 = vsel %vm6097_vm14, nan, %v1336_v13  ;;  %vm912_vm3 = vweird.f32 %v4494_v39  ;;  %v919_v12 = vxor.u32 2147483648, %v3360_v26  ;;  %v166_v22 = vld [vmem:[#allocation5 + $0xe8] sm:$0xff] }
  0xf5   :  { %v4497_v4 = vand.u32 3, %v1012_v28  ;;  %vm6098_vm4 = vweird.f32 %v4142_v63  ;;  %v1648_v31 = vsel %vm1641_vm10, %v1644_v40, %v1647_v55  ;;  %v916_v41 = vxor.u32 2147483648, %v3362_v46  ;;  %v158_v63 = vld [vmem:[#allocation5 + $0xb0] sm:$0xff]  ;;  %v111_v55 = vld [vmem:[#allocation2 + $0x98] sm:$0xff]  ;;  %v122_v7 = vld [vmem:[#allocation2 + $0xe8] sm:$0xff] }
  0xf6   :  { %v4501_v44 = vsel %vm6098_vm4, nan, %v1440_v48  ;;  %v1011_v62 = vsel %vm4421_vm12, %v4504_v8, %v1008_v11  ;;  %vm6099_vm8 = vweird.f32 %v4311_v60  ;;  %vm1745_vm7 = vcmp.lt.s32.totalorder %v4468_v24, 2  ;;  %v110_v40 = vld [vmem:[#allocation2 + $0x90] sm:$0xff] }
  0xf7   :  { %v4511_v9 = vsel %vm6099_vm8, nan, %v1544_v5  ;;  %vm1746_vm9 = vcmp.eq.s32.totalorder %v4468_v24, 0  ;;  %vm1749_vm1 = vcmp.eq.s32.totalorder %v4468_v24, 2  ;;  %v4516_v42 = vand.u32 3, %v1847_v29  ;;  %v112_v5 = vld [vmem:[#allocation2 + $0xa0] sm:$0xff] }
  0xf8   :  { %v4518_v23 = vmul.f32 %v152_v59, %v152_v59  ;;  %v4522_v60 = vsel %vm809_vm13, nan, %v1648_v31  ;;  %v4524_v3 = vmul.f32 %v153_v16, %v153_v16  ;;  %v4526_v56 = vmul.f32 %v154_v53, %v154_v53  ;;  %v113_v53 = vld [vmem:[#allocation2 + $0xa8] sm:$0xff]  ;;  %v115_v31 = vld [vmem:[#allocation2 + $0xb8] sm:$0xff] }
  0xf9   :  { %v4528_v20 = vmul.f32 %v155_v49, %v155_v49  ;;  %v920_v54 = vsel %vm918_vm15, %v919_v12, %v3362_v46  ;;  %3363 = vcosq.f32 %v1011_v62  ;;  %v4532_v28 = vmul.f32 %v156_v61, %v156_v61  ;;  %v114_v49 = vld [vmem:[#allocation2 + $0xb0] sm:$0xff] }
  0xfa   :  { %6100 = vst [vmem:[#allocation35_spill] sm:$0xff] %v4526_v56  ;;  %v4534_v36 = vmul.f32 %v157_v25, %v157_v25  ;;  %v917_v13 = vsel %vm915_vm11, %v3360_v26, %v916_v41  ;;  %3365 = vsinq.f32 %v1011_v62  ;;  %v1748_v48 = vsel %vm1746_vm9, %v3360_v26, %v916_v41  ;;  %v118_v41 = vld [vmem:[#allocation2 + $0xc8] sm:$0xff] }
  0xfb   :  { %6101 = vst [vmem:[#allocation36_spill] sm:$0xff] %v4528_v20  ;;  %6102 = vst [vmem:[#allocation37_spill] sm:$0xff] %v4532_v28  ;;  %v1751_v18 = vsel %vm1749_vm1, %v919_v12, %v3362_v46  ;;  %v4542_v29 = vmul.f32 %v158_v63, %v158_v63  ;;  %v4544_v59 = vmul.f32 %v159_v27, %v159_v27  ;;  %v117_v12 = vld [vmem:[#allocation2 + $0xc0] sm:$0xff]  ;;  %vm1018_vm12 = vcmp.eq.s32.totalorder %v4497_v4, 0 }
  0xfc   :  { %6103 = vst [vmem:[#allocation38_spill] sm:$0xff] %v4534_v36  ;;  %v4546_v11 = vmul.f32 %v161_v45, %v161_v45  ;;  %v4548_v16 = vmul.f32 %v162_v32, %v162_v32  ;;  %v4550_v61 = vmul.f32 %v163_v43, %v163_v43  ;;  %v4552_v26 = vmul.f32 %v164_v2, %v164_v2  ;;  %v119_v32 = vld [vmem:[#allocation2 + $0xd0] sm:$0xff]  ;;  %v120_v43 = vld [vmem:[#allocation2 + $0xd8] sm:$0xff]  ;;  %v121_v2 = vld [vmem:[#allocation2 + $0xe0] sm:$0xff] }
  0xfd   :  { %6104 = vst [vmem:[#allocation39_spill] sm:$0xff] %v4542_v29  ;;  %6105 = vst [vmem:[#allocation40_spill] sm:$0xff] %v4544_v59  ;;  %v4554_v25 = vmul.f32 %v165_v15, %v165_v15  ;;  %v4556_v46 = vmul.f32 %v166_v22, %v166_v22  ;;  %v921_v62 = vsel %vm914_vm6, %v917_v13, %v920_v54  ;;  %v123_v54 = vld [vmem:[#allocation2 + $0xf0] sm:$0xff]  ;;  %v124_v13 = vld [vmem:[#allocation2 + $0xf8] sm:$0xff]  ;;  %vm1021_vm13 = vcmp.eq.s32.totalorder %v4497_v4, 2 }
  0xfe   :  { %6106 = vst [vmem:[#allocation41_spill] sm:$0xff] %v4552_v26  ;;  %v1752_v63 = vsel %vm1745_vm7, %v1748_v48, %v1751_v18  ;;  %v4562_v27 = vmul.f32 %v167_v33, %v167_v33  ;;  %v4564_v45 = vmul.f32 %v168_v57, %v168_v57  ;;  %v4566_v34 = vmul.f32 %v108_v35, %v108_v35 }
  0xff   :  { %6107 = vst [vmem:[#allocation42_spill] sm:$0xff] %v4554_v25  ;;  %6108 = vst [vmem:[#allocation43_spill] sm:$0xff] %v4556_v46  ;;  %v4568_v15 = vmul.f32 %v109_v17, %v109_v17  ;;  %v4570_v22 = vmul.f32 %v110_v40, %v110_v40  ;;  %v4572_v50 = vmul.f32 %v111_v55, %v111_v55  ;;  %v4584_v35 = vsel %vm912_vm3, nan, %v921_v62 }
 0x100   :  { %6109 = vst [vmem:[#allocation44_spill] sm:$0xff] %v4562_v27  ;;  %6110 = vst [vmem:[#allocation45_spill] sm:$0xff] %v4564_v45  ;;  %v4574_v24 = vmul.f32 %v112_v5, %v112_v5  ;;  %v4576_v33 = vmul.f32 %v113_v53, %v113_v53  ;;  %v4578_v57 = vmul.f32 %v114_v49, %v114_v49  ;;  %v4590_v17 = vsel %vm912_vm3, nan, %v1752_v63 }
 0x101   :  { %6111 = vst [vmem:[#allocation46_spill] sm:$0xff] %v4566_v34  ;;  %6112 = vst [vmem:[#allocation47_spill] sm:$0xff] %v4568_v15  ;;  %v4580_v48 = vmul.f32 %v115_v31, %v115_v31  ;;  %vm1850_vm0 = vcmp.eq.s32.totalorder %v4516_v42, 0  ;;  %vm1853_vm11 = vcmp.eq.s32.totalorder %v4516_v42, 2  ;;  %v4594_v18 = vmul.f32 %v117_v12, %v117_v12  ;;  %v6129_v15 = vld [vmem:[#allocation16_spill] sm:$0xff] }
 0x102   :  { %6113 = vst [vmem:[#allocation48_spill] sm:$0xff] %v4570_v22  ;;  %6114 = vst [vmem:[#allocation49_spill] sm:$0xff] %v4572_v50  ;;  %v4596_v40 = vmul.f32 %v118_v41, %v118_v41  ;;  %v4598_v55 = vmul.f32 %v119_v32, %v119_v32  ;;  %v4600_v5 = vmul.f32 %v120_v43, %v120_v43  ;;  %vm1017_vm2 = vcmp.lt.s32.totalorder %v4497_v4, 2  ;;  %v6130_v34 = vld [vmem:[#allocation20_spill] sm:$0xff] }
 0x103   :  { %6115 = vst [vmem:[#allocation50_spill] sm:$0xff] %v4574_v24  ;;  %6116 = vst [vmem:[#allocation51_spill] sm:$0xff] %v4576_v33  ;;  %v4602_v53 = vmul.f32 %v121_v2, %v121_v2  ;;  %v1890_v49 = vmul.f32 %v4546_v11, %v4518_v23  ;;  %v4606_v39 = vmul.f32 %v122_v7, %v122_v7  ;;  %v3364_v41 = vpop.eup %3363  ;;  %vm1849_vm6 = vcmp.lt.s32.totalorder %v4516_v42, 2  ;;  %v6127_v24 = vld [vmem:[#allocation19_spill] sm:$0xff] }
 0x104   :  { %6117 = vst [vmem:[#allocation52_spill] sm:$0xff] %v4578_v57  ;;  %6118 = vst [vmem:[#allocation53_spill] sm:$0xff] %v4580_v48  ;;  %v4608_v31 = vmul.f32 %v123_v54, %v123_v54  ;;  %v4610_v62 = vmul.f32 %v124_v13, %v124_v13  ;;  %v1891_v12 = vmul.f32 %v4548_v16, %v4524_v3  ;;  %v3366_v7 = vpop.eup %3365  ;;  %vm1015_vm10 = vweird.f32 %v4504_v8 }
 0x105   :  { %6119 = vst [vmem:[#allocation54_spill] sm:$0xff] %v4594_v18  ;;  %6120 = vst [vmem:[#allocation55_spill] sm:$0xff] %v4596_v40  ;;  %v1892_v63 = vmul.f32 %v4550_v61, %v4526_v56  ;;  %v1893_v32 = vmul.f32 %v4552_v26, %v4528_v20  ;;  %v1894_v43 = vmul.f32 %v4554_v25, %v4532_v28  ;;  %3367 = vrcp.f32 %v1890_v49  ;;  %v6132_v18 = vld [vmem:[#allocation21_spill] sm:$0xff] }
 0x106   :  { %6121 = vst [vmem:[#allocation56_spill] sm:$0xff] %v4598_v55  ;;  %6122 = vst [vmem:[#allocation57_spill] sm:$0xff] %v4600_v5  ;;  %v1895_v2 = vmul.f32 %v4556_v46, %v4534_v36  ;;  %v1896_v54 = vmul.f32 %v4562_v27, %v4542_v29  ;;  %v1897_v13 = vmul.f32 %v4564_v45, %v4544_v59  ;;  %3369 = vrcp.f32 %v1891_v12  ;;  %v6131_v55 = vld [vmem:[#allocation17_spill] sm:$0xff]  ;;  %v6133_v12 = vld [vmem:[#allocation22_spill] sm:$0xff] }
 0x107   :  { %6123 = vst [vmem:[#allocation58_spill] sm:$0xff] %v4602_v53  ;;  %6124 = vst [vmem:[#allocation59_spill] sm:$0xff] %v4606_v39  ;;  %v1930_v48 = vmul.f32 %v4248_v52, %v3741_v37  ;;  %v1932_v57 = vmul.f32 %v4361_v30, %v3764_v19  ;;  %v1933_v33 = vmul.f32 %v4381_v6, %v3773_v21  ;;  %v1019_v53 = vxor.u32 2147483648, %v3366_v7  ;;  %v6134_v45 = vld [vmem:[#allocation23_spill] sm:$0xff]  ;;  %v6135_v27 = vld [vmem:[#allocation24_spill] sm:$0xff] }
 0x108   :  { %6125 = vst [vmem:[#allocation60_spill] sm:$0xff] %v4608_v31  ;;  %6126 = vst [vmem:[#allocation61_spill] sm:$0xff] %v4610_v62  ;;  %v1931_v62 = vmul.f32 %v4262_v1, %v3743_v38  ;;  %v1938_v50 = vmul.f32 %v4477_v10, %v6127_v24  ;;  %v6128_v31 = vld [vmem:[#allocation15_spill] sm:$0xff]  ;;  %v1935_v39 = vmul.f32 %v4482_v0, %v6129_v15  ;;  %v1022_v5 = vxor.u32 2147483648, %v3364_v41  ;;  %v6136_v46 = vld [vmem:[#allocation25_spill] sm:$0xff] }
 0x109   :  { %v1934_v22 = vmul.f32 %v4385_v47, %v6128_v31  ;;  %v1939_v49 = vmul.f32 %v4488_v51, %v6130_v34  ;;  %3371 = vrcp.f32 %v1892_v63  ;;  %v1936_v40 = vmul.f32 %v4584_v35, %v6131_v55 }
 0x10a   :  { %3373 = vrcp.f32 %v1893_v32  ;;  %v1940_v14 = vmul.f32 %v4492_v58, %v6132_v18  ;;  %v1941_v59 = vmul.f32 %v4501_v44, %v6133_v12  ;;  %v1942_v29 = vmul.f32 %v4511_v9, %v6134_v45 }
 0x10b   :  { %3375 = vrcp.f32 %v1894_v43  ;;  %v1943_v36 = vmul.f32 %v4522_v60, %v6135_v27  ;;  %v1944_v63 = vmul.f32 %v4590_v17, %v6136_v46  ;;  %v4657_v28 = vadd.f32 %v1938_v50, %v1930_v48 }
 0x10c   :  { %3377 = vrcp.f32 %v1895_v2  ;;  %v4659_v32 = vadd.f32 %v1939_v49, %v1931_v62  ;;  %v1954_v20 = vmul.f32 %v4248_v52, %v6127_v24  ;;  %v1955_v25 = vmul.f32 %v4262_v1, %v6130_v34 }
 0x10d   :  { %v1020_v43 = vsel %vm1018_vm12, %v3364_v41, %v1019_v53  ;;  %v1023_v26 = vsel %vm1021_vm13, %v1022_v5, %v3366_v7  ;;  %v1852_v56 = vsel %vm1850_vm0, %v3364_v41, %v1019_v53  ;;  %v1855_v50 = vsel %vm1853_vm11, %v1022_v5, %v3366_v7  ;;  %v6156_v41 = vld [vmem:[#allocation43_spill] sm:$0xff]  ;;  %v6158_v7 = vld [vmem:[#allocation38_spill] sm:$0xff] }
 0x10e   :  { %3379 = vrcp.f32 %v1896_v54  ;;  %v1956_v48 = vmul.f32 %v4361_v30, %v6132_v18  ;;  %v1957_v52 = vmul.f32 %v4381_v6, %v6133_v12  ;;  %v1958_v34 = vmul.f32 %v4385_v47, %v6134_v45 }
 0x10f   :  { %3381 = vrcp.f32 %v1897_v13  ;;  %v1962_v1 = vmul.f32 %v4477_v10, %v3741_v37  ;;  %v1963_v24 = vmul.f32 %v4488_v51, %v3743_v38  ;;  %v1964_v5 = vmul.f32 %v4492_v58, %v3764_v19  ;;  %v4693_v45 = vpop.eup %3367 }
 0x110   :  { %v1024_v53 = vsel %vm1017_vm2, %v1020_v43, %v1023_v26  ;;  %v1856_v30 = vsel %vm1849_vm6, %v1852_v56, %v1855_v50  ;;  %v1965_v6 = vmul.f32 %v4501_v44, %v3773_v21  ;;  %v1966_v47 = vmul.f32 %v4511_v9, %v6128_v31  ;;  %6137 = vst [vmem:[#allocation19_spill] sm:$0xff] %v4693_v45  ;;  %v4695_v18 = vpop.eup %3369  ;;  %v6162_v50 = vld [vmem:[#allocation39_spill] sm:$0xff] }
 0x111   :  { %v1948_v37 = vadd.f32 %v1940_v14, %v1932_v57  ;;  %v1949_v10 = vadd.f32 %v1941_v59, %v1933_v33  ;;  %v1950_v38 = vadd.f32 %v1942_v29, %v1934_v22  ;;  %v1951_v51 = vadd.f32 %v1943_v36, %v1935_v39  ;;  %6138 = vst [vmem:[#allocation15_spill] sm:$0xff] %v4695_v18  ;;  %v6148_v57 = vld [vmem:[#allocation26_spill] sm:$0xff]  ;;  %v6154_v39 = vld [vmem:[#allocation37_spill] sm:$0xff] }
 0x112   :  { %v1952_v19 = vadd.f32 %v1944_v63, %v1936_v40  ;;  %v1959_v58 = vmul.f32 %v4482_v0, %v6135_v27  ;;  %v1960_v4 = vmul.f32 %v4584_v35, %v6136_v46  ;;  %v1967_v21 = vmul.f32 %v4522_v60, %v6129_v15  ;;  %v6160_v63 = vld [vmem:[#allocation44_spill] sm:$0xff] }
 0x113   :  { %v4703_v44 = vpop.eup %3371  ;;  %v1025_v14 = vsel %vm1015_vm10, nan, %v1024_v53  ;;  %v1857_v9 = vsel %vm1015_vm10, nan, %v1856_v30  ;;  %v1968_v42 = vmul.f32 %v4590_v17, %v6131_v55  ;;  %v4711_v56 = vsub.f32 %v1954_v20, %v1962_v1  ;;  %v6153_v55 = vld [vmem:[#allocation36_spill] sm:$0xff] }
 0x114   :  { %6139 = vst [vmem:[#allocation16_spill] sm:$0xff] %v4703_v44  ;;  %v4713_v0 = vpop.eup %3373  ;;  %v4715_v36 = vsub.f32 %v1955_v25, %v1963_v24  ;;  %v4717_v29 = vsub.f32 %v1956_v48, %v1964_v5  ;;  %v4719_v60 = vsub.f32 %v1957_v52, %v1965_v6  ;;  %v4721_v59 = vsub.f32 %v1958_v34, %v1966_v47  ;;  %v6163_v52 = vld [vmem:[#allocation27_spill] sm:$0xff]  ;;  %v6164_v53 = vld [vmem:[#allocation28_spill] sm:$0xff]  ;;  %v6165_v47 = vld [vmem:[#allocation45_spill] sm:$0xff] }
 0x115   :  { %6140 = vst [vmem:[#allocation20_spill] sm:$0xff] %v4713_v0  ;;  %v4723_v26 = vpop.eup %3375  ;;  %v4727_v8 = vmul.f32 %v4693_v45, %v4546_v11  ;;  %v4731_v20 = vmul.f32 %v4695_v18, %v4548_v16  ;;  %v4735_v25 = vmul.f32 %v4693_v45, %v4518_v23  ;;  %v4739_v46 = vmul.f32 %v4695_v18, %v4524_v3  ;;  %v6146_v11 = vld [vmem:[#allocation35_spill] sm:$0xff]  ;;  %v6147_v16 = vld [vmem:[#allocation18_spill] sm:$0xff]  ;;  %v6149_v23 = vld [vmem:[#allocation41_spill] sm:$0xff] }
 0x116   :  { %6141 = vst [vmem:[#allocation17_spill] sm:$0xff] %v4723_v26  ;;  %v4741_v27 = vpop.eup %3377  ;;  %v4745_v15 = vmul.f32 %v4703_v44, %v4550_v61  ;;  %v4749_v22 = vmul.f32 %v4703_v44, %v6146_v11  ;;  %v1937_v33 = vmul.f32 %v1025_v14, %v6147_v16  ;;  %v1945_v35 = vmul.f32 %v1857_v9, %v6148_v57  ;;  %v6151_v3 = vld [vmem:[#allocation42_spill] sm:$0xff] }
 0x117   :  { %6142 = vst [vmem:[#allocation21_spill] sm:$0xff] %v4727_v8  ;;  %6143 = vst [vmem:[#allocation22_spill] sm:$0xff] %v4731_v20  ;;  %v4755_v17 = vmul.f32 %v4713_v0, %v6149_v23  ;;  %v4759_v40 = vmul.f32 %v4723_v26, %v6151_v3  ;;  %v4763_v61 = vmul.f32 %v4713_v0, %v6153_v55  ;;  %v6006_v34 = vand.u32 2147483647, %v6163_v52 }
 0x118   :  { %6144 = vst [vmem:[#allocation23_spill] sm:$0xff] %v4741_v27  ;;  %6145 = vst [vmem:[#allocation24_spill] sm:$0xff] %v4745_v15  ;;  %v4767_v31 = vmul.f32 %v4723_v26, %v6154_v39  ;;  %v4769_v62 = vpop.eup %3379  ;;  %v4773_v2 = vmul.f32 %v4741_v27, %v6156_v41  ;;  %v4777_v54 = vmul.f32 %v4741_v27, %v6158_v7  ;;  %v2029_v1 = vand.u32 2139095040, %v6163_v52 }
 0x119   :  { %6150 = vst [vmem:[#allocation25_spill] sm:$0xff] %v4755_v17  ;;  %6152 = vst [vmem:[#allocation35_spill] sm:$0xff] %v4759_v40  ;;  %v1961_v13 = vmul.f32 %v1025_v14, %v6148_v57  ;;  %v1969_v49 = vmul.f32 %v1857_v9, %v6147_v16  ;;  %v4781_v12 = vpop.eup %3381  ;;  %v4785_v43 = vmul.f32 %v4769_v62, %v6160_v63  ;;  %v6005_v30 = vand.u32 2147483647, %v6164_v53  ;;  %v6167_v9 = vld [vmem:[#allocation40_spill] sm:$0xff] }
 0x11a   :  { %6155 = vst [vmem:[#allocation18_spill] sm:$0xff] %v4769_v62  ;;  %6157 = vst [vmem:[#allocation26_spill] sm:$0xff] %v4773_v2  ;;  %v4789_v48 = vmul.f32 %v4769_v62, %v6162_v50  ;;  %v1953_v24 = vadd.f32 %v1945_v35, %v1937_v33  ;;  %v4793_v5 = vsub.f32 %v1959_v58, %v1967_v21  ;;  %v2133_v6 = vand.u32 2139095040, %v6164_v53  ;;  %v6169_v35 = vld [vmem:[#allocation29_spill] sm:$0xff] }
 0x11b   :  { %6159 = vst [vmem:[#allocation41_spill] sm:$0xff] %v4781_v12  ;;  %6161 = vst [vmem:[#allocation42_spill] sm:$0xff] %v4785_v43  ;;  %v4799_v14 = vmul.f32 %v4781_v12, %v6165_v47  ;;  %v4803_v11 = vmul.f32 %v4781_v12, %v6167_v9  ;;  %v4805_v16 = vsub.f32 %v1960_v4, %v1968_v42  ;;  %v2030_v57 = vshrl.u32 %v2029_v1, 23 }
 0x11c   :  { %v2033_v33 = vand.u32 8388607, %v6006_v34  ;;  %v2134_v58 = vshrl.u32 %v2133_v6, 23  ;;  %v2137_v21 = vand.u32 8388607, %v6005_v30  ;;  %v2237_v23 = vand.u32 2139095040, %v6169_v35 }
 0x11d   :  { %6166 = vst [vmem:[#allocation36_spill] sm:$0xff] %v4799_v14  ;;  %6168 = vst [vmem:[#allocation37_spill] sm:$0xff] %v4803_v11  ;;  %v4812_v3 = vsub.f32 %v1961_v13, %v1969_v49  ;;  %v1978_v55 = vmul.f32 %v4657_v28, %v4657_v28  ;;  %v1979_v39 = vmul.f32 %v4659_v32, %v4659_v32  ;;  %v3208_v4 = vadd.s32 4294967169, %v2030_v57 }
 0x11e   :  { %v1980_v42 = vmul.f32 %v1948_v37, %v1948_v37  ;;  %v1981_v41 = vmul.f32 %v1949_v10, %v1949_v10  ;;  %v3212_v7 = vadd.s32 4294967169, %v2134_v58  ;;  %v2238_v63 = vshrl.u32 %v2237_v23, 23 }
 0x11f   :  { %v1982_v50 = vmul.f32 %v1950_v38, %v1950_v38  ;;  %v4818_v1 = vmul.f32 %v1951_v51, %v1951_v51  ;;  %v4820_v6 = vmul.f32 %v1952_v19, %v1952_v19  ;;  %v2036_v47 = vadd.s32 1, %v3208_v4 }
 0x120   :  { %v2034_v9 = vor.u32 8388608, %v2033_v33  ;;  %v2138_v13 = vor.u32 8388608, %v2137_v21  ;;  %v2140_v49 = vadd.s32 1, %v3212_v7  ;;  %v3216_v30 = vadd.s32 4294967169, %v2238_v63 }
 0x121   :  { %v4822_v34 = vmul.f32 %v1953_v24, %v1953_v24  ;;  %v4825_v28 = vmul.f32 %v1978_v55, %v4727_v8  ;;  %v4828_v32 = vmul.f32 %v1979_v39, %v4731_v20  ;;  %vm2037_vm15 = vcmp.gt.s32.totalorder %v2036_v47, 0 }
 0x122   :  { %v4831_v37 = vmul.f32 %v1980_v42, %v4745_v15  ;;  %v4834_v10 = vmul.f32 %v1981_v41, %v4755_v17  ;;  %v2038_v38 = vsel %vm2037_vm15, %v2036_v47, 0  ;;  %vm2141_vm5 = vcmp.gt.s32.totalorder %v2140_v49, 0 }
 0x123   :  { %v4837_v51 = vmul.f32 %v1982_v50, %v4759_v40  ;;  %v2039_v19 = vshrl.u32 %v2038_v38, 5  ;;  %v2040_v24 = vand.u32 31, %v2038_v38  ;;  %v2142_v57 = vsel %vm2141_vm5, %v2140_v49, 0 }
 0x124   :  { %6170 = vst [vmem:[#allocation43_spill] sm:$0xff] %v4834_v10  ;;  %v4839_v33 = vshll.u32 %v2034_v9, 8  ;;  %v2144_v58 = vand.u32 31, %v2142_v57  ;;  %v4841_v21 = vshll.u32 %v2138_v13, 8  ;;  %v4843_v23 = vadd.s32 1, %v3216_v30 }
 0x125   :  { %6171 = vst [vmem:[#allocation38_spill] sm:$0xff] %v4837_v51  ;;  %v2041_v55 = vsub.s32 32, %v2040_v24  ;;  %v6172_v39 = vmov 683565275   ;;  %v6173_v42 = vmov 2475754826  }
 0x126   :  { %v2043_v4 = vshll.u32 %v6172_v39, %v2040_v24  ;;  %v2046_v41 = vshll.u32 %v6173_v42, %v2040_v24  ;;  %v6174_v7 = vmov 2131351028   ;;  %v6175_v47 = vmov 2102212464  }
 0x127   :  { %v2049_v63 = vshll.u32 %v6174_v7, %v2040_v24  ;;  %v2052_v50 = vshll.u32 %v6175_v47, %v2040_v24  ;;  %v6176_v12 = vmov 920167782   ;;  %vm2058_vm14 = vcmp.lt.s32.totalorder %v2039_v19, 1 }
 0x128   :  { %v2055_v62 = vshll.u32 %v6176_v12, %v2040_v24  ;;  %v4850_v49 = vshrl.u32 %v2142_v57, 5  ;;  %v2042_v9 = vshrl.u32 %v6172_v39, %v2041_v55  ;;  %v2044_v13 = vshrl.u32 %v6173_v42, %v2041_v55 }
 0x129   :  { %v2047_v30 = vshrl.u32 %v6174_v7, %v2041_v55  ;;  %v2050_v38 = vshrl.u32 %v6175_v47, %v2041_v55  ;;  %v2053_v27 = vshrl.u32 %v6176_v12, %v2041_v55  ;;  %v6177_v26 = vmov 1326507024  }
 0x12a   :  { %v2056_v0 = vshrl.u32 %v6177_v26, %v2041_v55  ;;  %vm2059_vm3 = vcmp.lt.s32.totalorder %v2039_v19, 2  ;;  %vm2061_vm4 = vcmp.lt.s32.totalorder %v2039_v19, 4  ;;  %v2045_v44 = vor.u32 %v2044_v13, %v2043_v4 }
 0x12b   :  { %v2048_v18 = vor.u32 %v2047_v30, %v2046_v41  ;;  %v2051_v24 = vor.u32 %v2050_v38, %v2049_v63  ;;  %v2145_v45 = vsub.s32 32, %v2144_v58  ;;  %v2054_v57 = vor.u32 %v2053_v27, %v2052_v50 }
 0x12c   :  { %v2057_v40 = vor.u32 %v2056_v0, %v2055_v62  ;;  %vm2060_vm8 = vcmp.lt.s32.totalorder %v2039_v19, 3  ;;  %v2147_v17 = vshll.u32 %v6172_v39, %v2144_v58  ;;  %v2062_v15 = vsel %vm2058_vm14, %v2042_v9, %v2045_v44 }
 0x12d   :  { %v2063_v20 = vsel %vm2061_vm4, %v2051_v24, 2102212464  ;;  %v2066_v8 = vsel %vm2058_vm14, %v2045_v44, %v2048_v18  ;;  %v2070_v53 = vsel %vm2058_vm14, %v2048_v18, %v2051_v24  ;;  %v2067_v55 = vsel %vm2061_vm4, %v2054_v57, 920167782 }
 0x12e   :  { %v2064_v51 = vsel %vm2060_vm8, %v2048_v18, %v2063_v20  ;;  %v2071_v10 = vsel %vm2061_vm4, %v2057_v40, 1326507024  ;;  %v2150_v4 = vshll.u32 %v6173_v42, %v2144_v58  ;;  %vm2245_vm7 = vcmp.gt.s32.totalorder %v4843_v23, 0 }
 0x12f   :  { %v2068_v41 = vsel %vm2060_vm8, %v2051_v24, %v2067_v55  ;;  %v2072_v27 = vsel %vm2060_vm8, %v2054_v57, %v2071_v10  ;;  %v2146_v0 = vshrl.u32 %v6172_v39, %v2145_v45  ;;  %v2148_v62 = vshrl.u32 %v6173_v42, %v2145_v45 }
 0x130   :  { %v2065_v63 = vsel %vm2059_vm3, %v2062_v15, %v2064_v51  ;;  %v2069_v50 = vsel %vm2059_vm3, %v2066_v8, %v2068_v41  ;;  %v2073_v44 = vsel %vm2059_vm3, %v2070_v53, %v2072_v27  ;;  %v2151_v18 = vshrl.u32 %v6174_v7, %v2145_v45 }
 0x131   :  { %v4871_v20 = vmul.u32.u64.low %v4839_v33, %v2073_v44  ;;  %v4872_v40 = vmul.u32.u64.high %v4839_v33, %v2073_v44, %v4871_v20  ;;  %v4875_v9 = vmul.u32.u64.low %v4839_v33, %v2069_v50  ;;  %v4876_v13 = vmul.u32.u64.high %v4839_v33, %v2069_v50, %v4875_v9 }
 0x132   :  { %v2149_v10 = vor.u32 %v2148_v62, %v2147_v17  ;;  %v2152_v30 = vor.u32 %v2151_v18, %v2150_v4  ;;  %v2153_v38 = vshll.u32 %v6174_v7, %v2144_v58  ;;  %v2154_v15 = vshrl.u32 %v6175_v47, %v2145_v45 }
 0x133   :  { %v2156_v8 = vshll.u32 %v6175_v47, %v2144_v58  ;;  %v2157_v53 = vshrl.u32 %v6176_v12, %v2145_v45  ;;  %v2159_v51 = vshll.u32 %v6176_v12, %v2144_v58  ;;  %v2160_v19 = vshrl.u32 %v6177_v26, %v2145_v45 }
 0x134   :  { %v2081_v24 = vmul.u32 %v4839_v33, %v2065_v63  ;;  %v2155_v57 = vor.u32 %v2154_v15, %v2153_v38  ;;  %vm2162_vm9 = vcmp.lt.s32.totalorder %v4850_v49, 1  ;;  %vm2163_vm1 = vcmp.lt.s32.totalorder %v4850_v49, 2 }
 0x135   :  { %vm2083_vm12 = vc.u32 %v4872_v40, %v4875_v9  ;;  %v2084_v17 = vadd.s32 1, %v4876_v13  ;;  %v2158_v55 = vor.u32 %v2157_v53, %v2156_v8  ;;  %vm2164_vm13 = vcmp.lt.s32.totalorder %v4850_v49, 3 }
 0x136   :  { %v2161_v4 = vor.u32 %v2160_v19, %v2159_v51  ;;  %vm2165_vm0 = vcmp.lt.s32.totalorder %v4850_v49, 4  ;;  %v2166_v58 = vsel %vm2162_vm9, %v2146_v0, %v2149_v10  ;;  %v2170_v45 = vsel %vm2162_vm9, %v2149_v10, %v2152_v30 }
 0x137   :  { %v2085_v33 = vsel %vm2083_vm12, %v2084_v17, %v4876_v13  ;;  %v2167_v41 = vsel %vm2165_vm0, %v2155_v57, 2102212464  ;;  %v2171_v27 = vsel %vm2165_vm0, %v2158_v55, 920167782  ;;  %v2174_v62 = vsel %vm2162_vm9, %v2152_v30, %v2155_v57 }
 0x138   :  { %v2086_v63 = vadd.s32 %v2085_v33, %v2081_v24  ;;  %v2168_v50 = vsel %vm2164_vm13, %v2152_v30, %v2167_v41  ;;  %v2172_v44 = vsel %vm2164_vm13, %v2155_v57, %v2171_v27  ;;  %v2175_v18 = vsel %vm2165_vm0, %v2161_v4, 1326507024  ;;  %v6179_v27 = vld [vmem:[#allocation30_spill] sm:$0xff] }
 0x139   :  { %v2169_v20 = vsel %vm2163_vm1, %v2166_v58, %v2168_v50  ;;  %v2173_v38 = vsel %vm2163_vm1, %v2170_v45, %v2172_v44  ;;  %v2176_v15 = vsel %vm2164_vm13, %v2158_v55, %v2175_v18  ;;  %v2246_v0 = vsel %vm2245_vm7, %v4843_v23, 0 }
 0x13a   :  { %v2087_v10 = vadd.s32 536870912, %v2086_v63  ;;  %v2177_v13 = vsel %vm2163_vm1, %v2174_v62, %v2176_v15  ;;  %v4904_v8 = vmul.u32.u64.low %v4841_v21, %v2173_v38  ;;  %v4905_v30 = vmul.u32.u64.high %v4841_v21, %v2173_v38, %v4904_v8 }
 0x13b   :  { %v4910_v53 = vmul.f32 %v4818_v1, %v4773_v2  ;;  %v4913_v51 = vmul.u32.u64.low %v4841_v21, %v2177_v13  ;;  %v4914_v19 = vmul.u32.u64.high %v4841_v21, %v2177_v13, %v4913_v51  ;;  %v6026_v24 = vand.u32 2147483647, %v6169_v35 }
 0x13c   :  { %v4919_v23 = vmul.f32 %v4820_v6, %v4785_v43  ;;  %v4923_v49 = vmul.f32 %v4822_v34, %v4799_v14  ;;  %v4925_v57 = vshrl.u32 %v2087_v10, 30  ;;  %v2248_v17 = vand.u32 31, %v2246_v0 }
 0x13d   :  { %v4929_v1 = vmul.f32 %v4711_v56, %v4711_v56  ;;  %v4933_v55 = vmul.f32 %v4715_v36, %v4715_v36  ;;  %v4937_v4 = vmul.f32 %v4717_v29, %v4717_v29  ;;  %v2185_v6 = vmul.u32 %v4841_v21, %v2169_v20 }
 0x13e   :  { %6178 = vst [vmem:[#allocation44_spill] sm:$0xff] %v4923_v49  ;;  %v4942_v34 = vmul.f32 %v4719_v60, %v4719_v60  ;;  %v2089_v58 = vshll.u32 %v4925_v57, 30  ;;  %v2188_v45 = vadd.s32 1, %v4905_v30  ;;  %v2249_v56 = vsub.s32 32, %v2248_v17 }
 0x13f   :  { %v4948_v33 = vmul.f32 %v4721_v59, %v4721_v59  ;;  %v4952_v36 = vmul.f32 %v4793_v5, %v4793_v5  ;;  %vm2187_vm11 = vc.u32 %v4914_v19, %v4904_v8  ;;  %v2241_v29 = vand.u32 8388607, %v6026_v24 }
 0x140   :  { %v4958_v60 = vsub.s32 %v2086_v63, %v2089_v58  ;;  %v2189_v21 = vsel %vm2187_vm11, %v2188_v45, %v4905_v30  ;;  %v4961_v41 = vshrl.u32 %v2246_v0, 5  ;;  %v2341_v62 = vand.u32 2139095040, %v6179_v27 }
 0x141   :  { %v2190_v59 = vadd.s32 %v2189_v21, %v2185_v6  ;;  %v2251_v50 = vshll.u32 %v6172_v39, %v2248_v17  ;;  %v2252_v5 = vshrl.u32 %v6173_v42, %v2249_v56  ;;  %v2254_v44 = vshll.u32 %v6173_v42, %v2248_v17 }
 0x142   :  { %v2092_v18 = vsub.s32 0, %v4958_v60  ;;  %v2255_v20 = vshrl.u32 %v6174_v7, %v2249_v56  ;;  %v2257_v63 = vshll.u32 %v6174_v7, %v2248_v17  ;;  %v2258_v38 = vshrl.u32 %v6175_v47, %v2249_v56 }
 0x143   :  { %v4973_v15 = vmul.f32 %v4805_v16, %v4805_v16  ;;  %v2191_v0 = vadd.s32 536870912, %v2190_v59  ;;  %v2242_v10 = vor.u32 8388608, %v2241_v29  ;;  %v2260_v13 = vshll.u32 %v6175_v47, %v2248_v17 }
 0x144   :  { %v3209_v30 = vmin.u32 %v2092_v18, %v4958_v60  ;;  %v2261_v51 = vshrl.u32 %v6176_v12, %v2249_v56  ;;  %vm2266_vm2 = vcmp.lt.s32.totalorder %v4961_v41, 1  ;;  %v2342_v6 = vshrl.u32 %v2341_v62, 23 }
 0x145   :  { %v4979_v58 = vshrl.u32 %v2191_v0, 30  ;;  %v2263_v45 = vshll.u32 %v6176_v12, %v2248_v17  ;;  %v2264_v21 = vshrl.u32 %v6177_v26, %v2249_v56  ;;  %vm2269_vm6 = vcmp.lt.s32.totalorder %v4961_v41, 4 }
 0x146   :  { %v2094_v16 = vclz %v3209_v30  ;;  %v2253_v24 = vor.u32 %v2252_v5, %v2251_v50  ;;  %v2256_v29 = vor.u32 %v2255_v20, %v2254_v44  ;;  %v2259_v49 = vor.u32 %v2258_v38, %v2257_v63 }
 0x147   :  { %v2193_v14 = vshll.u32 %v4979_v58, 30  ;;  %v2250_v18 = vshrl.u32 %v6172_v39, %v2249_v56  ;;  %v2262_v43 = vor.u32 %v2261_v51, %v2260_v13  ;;  %vm2268_vm10 = vcmp.lt.s32.totalorder %v4961_v41, 3 }
 0x148   :  { %v2082_v62 = vadd.s32 %v4875_v9, %v4872_v40  ;;  %v3210_v0 = vadd.s32 4294967294, %v2094_v16  ;;  %v2265_v17 = vor.u32 %v2264_v21, %v2263_v45  ;;  %v4989_v2 = vshll.u32 %v2242_v10, 8 }
 0x149   :  { %v4991_v35 = vsub.s32 %v2190_v59, %v2193_v14  ;;  %v2271_v50 = vsel %vm2269_vm6, %v2259_v49, 2102212464  ;;  %v2275_v5 = vsel %vm2269_vm6, %v2262_v43, 920167782  ;;  %v3220_v44 = vadd.s32 4294967169, %v2342_v6 }
 0x14a   :  { %vm3211_vm15 = vcmp.lt.s32.totalorder %v3210_v0, 0  ;;  %vm2267_vm5 = vcmp.lt.s32.totalorder %v4961_v41, 2  ;;  %v2274_v56 = vsel %vm2266_vm2, %v2253_v24, %v2256_v29  ;;  %v2276_v40 = vsel %vm2268_vm10, %v2259_v49, %v2275_v5 }
 0x14b   :  { %v2097_v9 = vsel %vm3211_vm15, 0, %v3210_v0  ;;  %v2196_v14 = vsub.s32 0, %v4991_v35  ;;  %v2270_v59 = vsel %vm2266_vm2, %v2250_v18, %v2253_v24  ;;  %v2278_v20 = vsel %vm2266_vm2, %v2256_v29, %v2259_v49 }
 0x14c   :  { %v2098_v63 = vsub.s32 32, %v2097_v9  ;;  %v2102_v38 = vsub.s32 4294967266, %v2097_v9  ;;  %v2272_v10 = vsel %vm2268_vm10, %v2256_v29, %v2271_v50  ;;  %v2279_v13 = vsel %vm2269_vm6, %v2265_v17, 1326507024 }
 0x14d   :  { %v2099_v30 = vshll.u32 %v4958_v60, %v2097_v9  ;;  %v3213_v51 = vmin.u32 %v2196_v14, %v4991_v35  ;;  %v2277_v6 = vsel %vm2267_vm5, %v2274_v56, %v2276_v40  ;;  %v2280_v24 = vsel %vm2268_vm10, %v2262_v43, %v2279_v13 }
 0x14e   :  { %v2100_v45 = vshrl.u32 %v2082_v62, %v2098_v63  ;;  %v2103_v49 = vadd.s32 127, %v2102_v38  ;;  %v2281_v21 = vsel %vm2267_vm5, %v2278_v20, %v2280_v24  ;;  %v2348_v16 = vadd.s32 1, %v3220_v44 }
 0x14f   :  { %v2001_v29 = vmul.f32 %v4812_v3, %v4812_v3  ;;  %v2002_v60 = vmul.f32 %v4929_v1, %v4735_v25  ;;  %v2198_v18 = vclz %v3213_v51  ;;  %v6035_v0 = vand.u32 2147483647, %v6179_v27 }
 0x150   :  { %v2104_v17 = vshll.u32 %v2103_v49, 23  ;;  %v2273_v50 = vsel %vm2267_vm5, %v2270_v59, %v2272_v10  ;;  %v5027_v43 = vmul.u32.u64.low %v4989_v2, %v2281_v21  ;;  %v5028_v62 = vmul.u32.u64.high %v4989_v2, %v2281_v21, %v5027_v43 }
 0x151   :  { %v3214_v5 = vadd.s32 4294967294, %v2198_v18  ;;  %v5031_v44 = vmul.u32.u64.low %v4989_v2, %v2277_v6  ;;  %v5032_v56 = vmul.u32.u64.high %v4989_v2, %v2277_v6, %v5031_v44  ;;  %vm2349_vm14 = vcmp.gt.s32.totalorder %v2348_v16, 0 }
 0x152   :  { %v5037_v3 = vmul.f32 %v4933_v55, %v4739_v46  ;;  %v2101_v1 = vor.u32 %v2100_v45, %v2099_v30  ;;  %v2105_v40 = vor.u32 4788187, %v2104_v17  ;;  %v2350_v9 = vsel %vm2349_vm14, %v2348_v16, 0 }
 0x153   :  { %v5041_v41 = vmul.f32 %v4937_v4, %v4749_v22  ;;  %v5045_v14 = vmul.f32 %v4942_v34, %v4763_v61  ;;  %vm3215_vm3 = vcmp.lt.s32.totalorder %v3214_v5, 0  ;;  %v2352_v59 = vand.u32 31, %v2350_v9 }
 0x154   :  { %v2201_v20 = vsel %vm3215_vm3, 0, %v3214_v5  ;;  %v2289_v63 = vmul.u32 %v4989_v2, %v2273_v50  ;;  %vm2291_vm4 = vc.u32 %v5028_v62, %v5031_v44  ;;  %v2345_v55 = vand.u32 8388607, %v6035_v0 }
 0x155   :  { %v5054_v38 = vmul.f32 %v4948_v33, %v4767_v31  ;;  %v5058_v4 = vmul.f32 %v4952_v36, %v4777_v54  ;;  %v2206_v34 = vsub.s32 4294967266, %v2201_v20  ;;  %v2292_v10 = vadd.s32 1, %v5032_v56 }
 0x156   :  { %v5063_v2 = vmul.f32 %v4973_v15, %v4789_v48  ;;  %v2106_v13 = vand.u32 2147483647, %v2105_v40  ;;  %v2108_v30 = vcvt.s32.f32 %v2101_v1  ;;  %v2353_v51 = vsub.s32 32, %v2352_v59 }
 0x157   :  { %v2186_v6 = vadd.s32 %v4904_v8, %v4914_v19  ;;  %v2202_v24 = vsub.s32 32, %v2201_v20  ;;  %v2207_v33 = vadd.s32 127, %v2206_v34  ;;  %v2293_v45 = vsel %vm2291_vm4, %v2292_v10, %v5032_v56 }
 0x158   :  { %v5069_v36 = vmul.f32 %v2001_v29, %v4803_v11  ;;  %v2294_v49 = vadd.s32 %v2293_v45, %v2289_v63  ;;  %v2346_v21 = vor.u32 8388608, %v2345_v55  ;;  %v5071_v16 = vshrl.u32 %v2350_v9, 5 }
 0x159   :  { %v2355_v15 = vshll.u32 %v6172_v39, %v2352_v59  ;;  %v2356_v18 = vshrl.u32 %v6173_v42, %v2353_v51  ;;  %v2358_v17 = vshll.u32 %v6173_v42, %v2352_v59  ;;  %v2359_v50 = vshrl.u32 %v6174_v7, %v2353_v51 }
 0x15a   :  { %6180 = vst [vmem:[#allocation39_spill] sm:$0xff] %v5069_v36  ;;  %v2109_v8 = vmul.f32 %v2108_v30, %v2106_v13  ;;  %v2203_v19 = vshll.u32 %v4991_v35, %v2201_v20  ;;  %v2295_v43 = vadd.s32 536870912, %v2294_v49  ;;  %v2364_v5 = vshll.u32 %v6175_v47, %v2352_v59 }
 0x15b   :  { %v2204_v29 = vshrl.u32 %v2186_v6, %v2202_v24  ;;  %v2208_v56 = vshll.u32 %v2207_v33, 23  ;;  %v2361_v1 = vshll.u32 %v6174_v7, %v2352_v59  ;;  %v2362_v40 = vshrl.u32 %v6175_v47, %v2353_v51 }
 0x15c   :  { %v5082_v9 = vadd.f32 %v2002_v60, %v4825_v28  ;;  %vm2028_vm8 = vcmp.lt.s32.totalorder %v6163_v52, 0  ;;  %v5085_v63 = vshrl.u32 %v2295_v43, 30  ;;  %v2365_v55 = vshrl.u32 %v6176_v12, %v2353_v51 }
 0x15d   :  { %v2357_v34 = vor.u32 %v2356_v18, %v2355_v15  ;;  %v2360_v35 = vor.u32 %v2359_v50, %v2358_v17  ;;  %v2367_v20 = vshll.u32 %v6176_v12, %v2352_v59  ;;  %v2368_v10 = vshrl.u32 %v6177_v26, %v2353_v51 }
 0x15e   :  { %v2297_v13 = vshll.u32 %v5085_v63, 30  ;;  %v2366_v30 = vor.u32 %v2365_v55, %v2364_v5  ;;  %vm2370_vm7 = vcmp.lt.s32.totalorder %v5071_v16, 1  ;;  %v5092_v6 = vshll.u32 %v2346_v21, 8 }
 0x15f   :  { %v2110_v28 = vxor.u32 2147483648, %v2109_v8  ;;  %v2205_v60 = vor.u32 %v2204_v29, %v2203_v19  ;;  %v2209_v24 = vor.u32 4788187, %v2208_v56  ;;  %v2363_v33 = vor.u32 %v2362_v40, %v2361_v1 }
 0x160   :  { %v5094_v45 = vsub.s32 %v2294_v49, %v2297_v13  ;;  %v2354_v15 = vshrl.u32 %v6172_v39, %v2353_v51  ;;  %vm2372_vm9 = vcmp.lt.s32.totalorder %v5071_v16, 3  ;;  %vm2373_vm1 = vcmp.lt.s32.totalorder %v5071_v16, 4 }
 0x161   :  { %v2369_v59 = vor.u32 %v2368_v10, %v2367_v20  ;;  %vm2371_vm12 = vcmp.lt.s32.totalorder %v5071_v16, 2  ;;  %v2375_v18 = vsel %vm2373_vm1, %v2363_v33, 2102212464  ;;  %v2378_v21 = vsel %vm2370_vm7, %v2357_v34, %v2360_v35 }
 0x162   :  { %v6181_v17 = vand.u32 2147483647, %v6163_v52  ;;  %v2112_v51 = vsub.s32 4, %v4925_v57  ;;  %v2300_v50 = vsub.s32 0, %v5094_v45  ;;  %v2379_v19 = vsel %vm2373_vm1, %v2366_v30, 920167782 }
 0x163   :  { %v2111_v43 = vsel %vm2028_vm8, %v2110_v28, %v2109_v8  ;;  %v2210_v5 = vand.u32 2147483647, %v2209_v24  ;;  %v2212_v29 = vcvt.s32.f32 %v2205_v60  ;;  %v2380_v56 = vsel %vm2372_vm9, %v2363_v33, %v2379_v19 }
 0x164   :  { %vm5106_vm13 = vcmp.le.f32.partialorder %v6181_v17, 0.7853982  ;;  %v3217_v1 = vmin.u32 %v2300_v50, %v5094_v45  ;;  %v2374_v40 = vsel %vm2370_vm7, %v2354_v15, %v2357_v34  ;;  %v2376_v55 = vsel %vm2372_vm9, %v2360_v35, %v2375_v18  ;;  %v6184_v18 = vld [vmem:[#allocation43_spill] sm:$0xff] }
 0x165   :  { %v2381_v20 = vsel %vm2371_vm12, %v2378_v21, %v2380_v56  ;;  %v2382_v10 = vsel %vm2370_vm7, %v2360_v35, %v2363_v33  ;;  %v2383_v8 = vsel %vm2373_vm1, %v2369_v59, 1326507024  ;;  %v2011_v34 = vadd.f32 %v5037_v3, %v4828_v32  ;;  %v6185_v33 = vld [vmem:[#allocation38_spill] sm:$0xff] }
 0x166   :  { %v5130_v13 = vmul.u32.u64.low %v5092_v6, %v2381_v20  ;;  %v5131_v28 = vmul.u32.u64.high %v5092_v6, %v2381_v20, %v5130_v13  ;;  %v2012_v60 = vadd.f32 %v5041_v41, %v4831_v37  ;;  %v2216_v24 = vsub.s32 4, %v4979_v58 }
 0x167   :  { %v2302_v15 = vclz %v3217_v1  ;;  %v2013_v35 = vadd.f32 %v5045_v14, %v6184_v18  ;;  %v5143_v59 = vadd.f32 %v5054_v38, %v6185_v33  ;;  %v2114_v21 = vsel %vm5106_vm13, %v6163_v52, %v2111_v43  ;;  %v6186_v38 = vld [vmem:[#allocation28_spill] sm:$0xff] }
 0x168   :  { %v2384_v32 = vsel %vm2372_vm9, %v2366_v30, %v2383_v8  ;;  %v2213_v3 = vmul.f32 %v2212_v29, %v2210_v5  ;;  %v2377_v37 = vsel %vm2371_vm12, %v2374_v40, %v2376_v55  ;;  %v2113_v14 = vsel %vm2028_vm8, %v2112_v51, %v4925_v57  ;;  %v6187_v57 = vld [vmem:[#allocation31_spill] sm:$0xff] }
 0x169   :  { %v3218_v17 = vadd.s32 4294967294, %v2302_v15  ;;  %v2385_v41 = vsel %vm2371_vm12, %v2382_v10, %v2384_v32  ;;  %vm2132_vm0 = vcmp.lt.s32.totalorder %v6186_v38, 0  ;;  %3383 = vcosq.f32 %v2114_v21 }
 0x16a   :  { %v5159_v50 = vmul.u32.u64.low %v5092_v6, %v2385_v41  ;;  %v5160_v19 = vmul.u32.u64.high %v5092_v6, %v2385_v41, %v5159_v50  ;;  %v2217_v30 = vsel %vm2132_vm0, %v2216_v24, %v4979_v58  ;;  %v2396_v43 = vadd.s32 1, %v5131_v28 }
 0x16b   :  { %vm3219_vm11 = vcmp.lt.s32.totalorder %v3218_v17, 0  ;;  %v2320_v5 = vsub.s32 4, %v5085_v63  ;;  %v2393_v29 = vmul.u32 %v5092_v6, %v2377_v37  ;;  %v2445_v51 = vand.u32 2139095040, %v6187_v57 }
 0x16c   :  { %v2305_v16 = vsel %vm3219_vm11, 0, %v3218_v17  ;;  %v5171_v56 = vadd.f32 %v5058_v4, %v4910_v53  ;;  %v5175_v1 = vadd.f32 %v5063_v2, %v4919_v23  ;;  %v2214_v40 = vxor.u32 2147483648, %v2213_v3  ;;  %v6192_v4 = vld [vmem:[#allocation29_spill] sm:$0xff] }
 0x16d   :  { %v2310_v58 = vsub.s32 4294967266, %v2305_v16  ;;  %3385 = vsinq.f32 %v2114_v21  ;;  %v6189_v55 = vand.u32 2147483647, %v6186_v38  ;;  %vm2395_vm6 = vc.u32 %v5160_v19, %v5130_v13 }
 0x16e   :  { %6188 = vst [vmem:[#allocation27_spill] sm:$0xff] %v5175_v1  ;;  %v2446_v6 = vshrl.u32 %v2445_v51, 23  ;;  %v2115_v53 = vsel %vm5106_vm13, 0, %v2113_v14  ;;  %vm2236_vm10 = vcmp.lt.s32.totalorder %v6192_v4, 0  ;;  %v2397_v2 = vsel %vm2395_vm6, %v2396_v43, %v5131_v28 }
 0x16f   :  { %vm5179_vm2 = vcmp.le.f32.partialorder %v6189_v55, 0.7853982  ;;  %v2321_v10 = vsel %vm2236_vm10, %v2320_v5, %v5085_v63  ;;  %v2398_v8 = vadd.s32 %v2397_v2, %v2393_v29  ;;  %v6034_v24 = vand.u32 2147483647, %v6187_v57  ;;  %v6200_v55 = vld [vmem:[#allocation32_spill] sm:$0xff] }
 0x170   :  { %v2219_v23 = vsel %vm5179_vm2, 0, %v2217_v30  ;;  %v3224_v15 = vadd.s32 4294967169, %v2446_v6  ;;  %v2215_v18 = vsel %vm2132_vm0, %v2214_v40, %v2213_v3  ;;  %v2290_v49 = vadd.s32 %v5031_v44, %v5028_v62 }
 0x171   :  { %v2306_v33 = vsub.s32 32, %v2305_v16  ;;  %v2311_v21 = vadd.s32 127, %v2310_v58  ;;  %v5200_v32 = vmul.f32 2.0, %v5082_v9  ;;  %v6194_v28 = vand.u32 2147483647, %v6192_v4 }
 0x172   :  { %v2399_v63 = vadd.s32 536870912, %v2398_v8  ;;  %v2452_v37 = vadd.s32 1, %v3224_v15  ;;  %v5208_v41 = vmul.f32 2.0, %v2011_v34  ;;  %v2119_v14 = vadd.s32 3, %v2115_v53 }
 0x173   :  { %6193 = vst [vmem:[#allocation45_spill] sm:$0xff] %v5200_v32  ;;  %vm5204_vm15 = vcmp.le.f32.partialorder %v6194_v28, 0.7853982  ;;  %v2223_v3 = vadd.s32 3, %v2219_v23  ;;  %v2218_v44 = vsel %vm5179_vm2, %v6186_v38, %v2215_v18  ;;  %v2449_v50 = vand.u32 8388607, %v6034_v24  ;;  %v5219_v30 = vpop.eup %3383 }
 0x174   :  { %6197 = vst [vmem:[#allocation40_spill] sm:$0xff] %v5208_v41  ;;  %v2323_v62 = vsel %vm5204_vm15, 0, %v2321_v10  ;;  %v5215_v9 = vshrl.u32 %v2399_v63, 30  ;;  %vm2453_vm5 = vcmp.gt.s32.totalorder %v2452_v37, 0  ;;  %v2307_v34 = vshll.u32 %v5094_v45, %v2305_v16 }
 0x175   :  { %v2308_v43 = vshrl.u32 %v2290_v49, %v2306_v33  ;;  %v2312_v5 = vshll.u32 %v2311_v21, 23  ;;  %v2454_v29 = vsel %vm2453_vm5, %v2452_v37, 0  ;;  %v5222_v51 = vmul.f32 2.0, %v2012_v60 }
 0x176   :  { %v5224_v40 = vmul.f32 2.0, %v2013_v35  ;;  %v2401_v58 = vshll.u32 %v5215_v9, 30  ;;  %v2549_v20 = vand.u32 2139095040, %v6200_v55  ;;  %v5228_v6 = vand.u32 3, %v2119_v14 }
 0x177   :  { %6198 = vst [vmem:[#allocation30_spill] sm:$0xff] %v5222_v51  ;;  %3387 = vcosq.f32 %v2218_v44  ;;  %v5230_v53 = vand.u32 3, %v2223_v3  ;;  %v2456_v23 = vand.u32 31, %v2454_v29  ;;  %v5232_v2 = vpop.eup %3385  ;;  %v5235_v16 = vadd.s32 3, %v2323_v62 }
 0x178   :  { %6199 = vst [vmem:[#allocation43_spill] sm:$0xff] %v5224_v40  ;;  %3389 = vsinq.f32 %v2218_v44  ;;  %v5237_v60 = vsub.s32 %v2398_v8, %v2401_v58  ;;  %v2309_v35 = vor.u32 %v2308_v43, %v2307_v34  ;;  %v2313_v10 = vor.u32 4788187, %v2312_v5 }
 0x179   :  { %v2450_v15 = vor.u32 8388608, %v2449_v50  ;;  %v2457_v18 = vsub.s32 32, %v2456_v23  ;;  %v2459_v33 = vshll.u32 %v6172_v39, %v2456_v23  ;;  %v2462_v21 = vshll.u32 %v6173_v42, %v2456_v23 }
 0x17a   :  { %v2404_v49 = vsub.s32 0, %v5237_v60  ;;  %v2550_v28 = vshrl.u32 %v2549_v20, 23  ;;  %v2123_v63 = vxor.u32 2147483648, %v5232_v2  ;;  %v2455_v37 = vshrl.u32 %v2454_v29, 5 }
 0x17b   :  { %v2460_v14 = vshrl.u32 %v6173_v42, %v2457_v18  ;;  %v2463_v3 = vshrl.u32 %v6174_v7, %v2457_v18  ;;  %vm2125_vm14 = vcmp.eq.s32.totalorder %v5228_v6, 2  ;;  %v2394_v8 = vadd.s32 %v5130_v13, %v5160_v19 }
 0x17c   :  { %v3221_v62 = vmin.u32 %v2404_v49, %v5237_v60  ;;  %v2465_v44 = vshll.u32 %v6174_v7, %v2456_v23  ;;  %v2466_v50 = vshrl.u32 %v6175_v47, %v2457_v18  ;;  %vm2122_vm3 = vcmp.eq.s32.totalorder %v5228_v6, 0 }
 0x17d   :  { %v2314_v34 = vand.u32 2147483647, %v2313_v10  ;;  %v2316_v43 = vcvt.s32.f32 %v2309_v35  ;;  %v2468_v5 = vshll.u32 %v6175_v47, %v2456_v23  ;;  %v5253_v29 = vshll.u32 %v2450_v15, 8 }
 0x17e   :  { %v2406_v58 = vclz %v3221_v62  ;;  %v2461_v20 = vor.u32 %v2460_v14, %v2459_v33  ;;  %v2464_v24 = vor.u32 %v2463_v3, %v2462_v21  ;;  %v3228_v0 = vadd.s32 4294967169, %v2550_v28 }
 0x17f   :  { %v2458_v13 = vshrl.u32 %v6172_v39, %v2457_v18  ;;  %v2469_v19 = vshrl.u32 %v6176_v12, %v2457_v18  ;;  %v2471_v49 = vshll.u32 %v6176_v12, %v2456_v23  ;;  %vm2474_vm4 = vcmp.lt.s32.totalorder %v2455_v37, 1 }
 0x180   :  { %v3222_v45 = vadd.s32 4294967294, %v2406_v58  ;;  %v2467_v36 = vor.u32 %v2466_v50, %v2465_v44  ;;  %v2472_v10 = vshrl.u32 %v6177_v26, %v2457_v18  ;;  %vm2477_vm8 = vcmp.lt.s32.totalorder %v2455_v37, 4 }
 0x181   :  { %v5259_v35 = vpop.eup %3387  ;;  %v2470_v15 = vor.u32 %v2469_v19, %v2468_v5  ;;  %vm2475_vm7 = vcmp.lt.s32.totalorder %v2455_v37, 2  ;;  %vm2476_vm9 = vcmp.lt.s32.totalorder %v2455_v37, 3  ;;  %v2482_v23 = vsel %vm2474_vm4, %v2461_v20, %v2464_v24 }
 0x182   :  { %v5262_v21 = vpop.eup %3389  ;;  %vm3223_vm1 = vcmp.lt.s32.totalorder %v3222_v45, 0  ;;  %v2473_v28 = vor.u32 %v2472_v10, %v2471_v49  ;;  %v2479_v14 = vsel %vm2477_vm8, %v2467_v36, 2102212464  ;;  %v2317_v3 = vmul.f32 %v2316_v43, %v2314_v34 }
 0x183   :  { %v2409_v62 = vsel %vm3223_vm1, 0, %v3222_v45  ;;  %v2483_v18 = vsel %vm2477_vm8, %v2470_v15, 920167782  ;;  %v2556_v44 = vadd.s32 1, %v3228_v0  ;;  %v2478_v5 = vsel %vm2474_vm4, %v2458_v13, %v2461_v20 }
 0x184   :  { %v2414_v50 = vsub.s32 4294967266, %v2409_v62  ;;  %v2484_v58 = vsel %vm2476_vm9, %v2467_v36, %v2483_v18  ;;  %v2486_v19 = vsel %vm2474_vm4, %v2464_v24, %v2467_v36  ;;  %v2480_v33 = vsel %vm2476_vm9, %v2464_v24, %v2479_v14 }
 0x185   :  { %v2485_v49 = vsel %vm2475_vm7, %v2482_v23, %v2484_v58  ;;  %v2487_v10 = vsel %vm2477_vm8, %v2473_v28, 1326507024  ;;  %vm2557_vm12 = vcmp.gt.s32.totalorder %v2556_v44, 0  ;;  %v2410_v40 = vsub.s32 32, %v2409_v62 }
 0x186   :  { %v2415_v34 = vadd.s32 127, %v2414_v50  ;;  %v2488_v45 = vsel %vm2476_vm9, %v2470_v15, %v2487_v10  ;;  %v2558_v43 = vsel %vm2557_vm12, %v2556_v44, 0  ;;  %v6201_v0 = vxor.u32 2147483648, %v5219_v30 }
 0x187   :  { %v2489_v36 = vsel %vm2475_vm7, %v2486_v19, %v2488_v45  ;;  %v5283_v24 = vmul.u32.u64.low %v5253_v29, %v2485_v49  ;;  %v5284_v13 = vmul.u32.u64.high %v5253_v29, %v2485_v49, %v5283_v24  ;;  %v5290_v28 = vsel %vm2122_vm3, %v5219_v30, %v2123_v63 }
 0x188   :  { %v5279_v20 = vsel %vm2125_vm14, %v6201_v0, %v5232_v2  ;;  %v2481_v15 = vsel %vm2475_vm7, %v2478_v5, %v2480_v33  ;;  %v6202_v14 = vand.u32 2147483647, %v6200_v55  ;;  %v2560_v18 = vand.u32 31, %v2558_v43 }
 0x189   :  { %v2318_v44 = vxor.u32 2147483648, %v2317_v3  ;;  %v5297_v50 = vmul.u32.u64.low %v5253_v29, %v2489_v36  ;;  %v5298_v58 = vmul.u32.u64.high %v5253_v29, %v2489_v36, %v5297_v50  ;;  %v2411_v19 = vshll.u32 %v5237_v60, %v2409_v62 }
 0x18a   :  { %v2553_v23 = vand.u32 8388607, %v6202_v14  ;;  %v2412_v49 = vshrl.u32 %v2394_v8, %v2410_v40  ;;  %v2416_v10 = vshll.u32 %v2415_v34, 23  ;;  %v2561_v45 = vsub.s32 32, %v2560_v18 }
 0x18b   :  { %v2497_v63 = vmul.u32 %v5253_v29, %v2481_v15  ;;  %v2500_v37 = vadd.s32 1, %v5284_v13  ;;  %v2563_v33 = vshll.u32 %v6172_v39, %v2560_v18  ;;  %v2566_v36 = vshll.u32 %v6173_v42, %v2560_v18 }
 0x18c   :  { %v2554_v0 = vor.u32 8388608, %v2553_v23  ;;  %v2564_v14 = vshrl.u32 %v6173_v42, %v2561_v45  ;;  %v2319_v40 = vsel %vm2236_vm10, %v2318_v44, %v2317_v3  ;;  %vm2499_vm13 = vc.u32 %v5298_v58, %v5283_v24 }
 0x18d   :  { %v2559_v60 = vshrl.u32 %v2558_v43, 5  ;;  %v2567_v8 = vshrl.u32 %v6174_v7, %v2561_v45  ;;  %v2413_v29 = vor.u32 %v2412_v49, %v2411_v19  ;;  %v2417_v62 = vor.u32 4788187, %v2416_v10 }
 0x18e   :  { %v2501_v34 = vsel %vm2499_vm13, %v2500_v37, %v5284_v13  ;;  %v2569_v15 = vshll.u32 %v6174_v7, %v2560_v18  ;;  %v2565_v50 = vor.u32 %v2564_v14, %v2563_v33  ;;  %v2570_v2 = vshrl.u32 %v6175_v47, %v2561_v45 }
 0x18f   :  { %v2502_v23 = vadd.s32 %v2501_v34, %v2497_v63  ;;  %v2572_v30 = vshll.u32 %v6175_v47, %v2560_v18  ;;  %v2568_v5 = vor.u32 %v2567_v8, %v2566_v36  ;;  %v2573_v3 = vshrl.u32 %v6176_v12, %v2561_v45 }
 0x190   :  { %v2575_v44 = vshll.u32 %v6176_v12, %v2560_v18  ;;  %v2576_v43 = vshrl.u32 %v6177_v26, %v2561_v45  ;;  %vm2121_vm0 = vcmp.lt.s32.totalorder %v5228_v6, 2  ;;  %v2562_v13 = vshrl.u32 %v6172_v39, %v2561_v45 }
 0x191   :  { %v2503_v19 = vadd.s32 536870912, %v2502_v23  ;;  %v2571_v49 = vor.u32 %v2570_v2, %v2569_v15  ;;  %vm2578_vm11 = vcmp.lt.s32.totalorder %v2559_v60, 1  ;;  %v2322_v10 = vsel %vm5204_vm15, %v6192_v4, %v2319_v40 }
 0x192   :  { %v2574_v63 = vor.u32 %v2573_v3, %v2572_v30  ;;  %v2577_v37 = vor.u32 %v2576_v43, %v2575_v44  ;;  %vm2581_vm2 = vcmp.lt.s32.totalorder %v2559_v60, 4  ;;  %v2420_v33 = vcvt.s32.f32 %v2413_v29 }
 0x193   :  { %v5325_v14 = vshrl.u32 %v2503_v19, 30  ;;  %vm2580_vm6 = vcmp.lt.s32.totalorder %v2559_v60, 3  ;;  %v2583_v18 = vsel %vm2581_vm2, %v2571_v49, 2102212464  ;;  %v2418_v36 = vand.u32 2147483647, %v2417_v62 }
 0x194   :  { %vm2579_vm10 = vcmp.lt.s32.totalorder %v2559_v60, 2  ;;  %v2586_v8 = vsel %vm2578_vm11, %v2565_v50, %v2568_v5  ;;  %v2587_v2 = vsel %vm2581_vm2, %v2574_v63, 920167782  ;;  %vm2118_vm5 = vweird.f32 %v6163_v52 }
 0x195   :  { %3391 = vcosq.f32 %v2322_v10  ;;  %v2505_v17 = vshll.u32 %v5325_v14, 30  ;;  %v2582_v45 = vsel %vm2578_vm11, %v2562_v13, %v2565_v50  ;;  %v2584_v30 = vsel %vm2580_vm6, %v2568_v5, %v2583_v18 }
 0x196   :  { %v2588_v40 = vsel %vm2580_vm6, %v2571_v49, %v2587_v2  ;;  %v2590_v29 = vsel %vm2578_vm11, %v2568_v5, %v2571_v49  ;;  %v2591_v62 = vsel %vm2581_vm2, %v2577_v37, 1326507024  ;;  %v2594_v34 = vshll.u32 %v2554_v0, 8 }
 0x197   :  { %3393 = vsinq.f32 %v2322_v10  ;;  %v5337_v15 = vsub.s32 %v2502_v23, %v2505_v17  ;;  %v2589_v3 = vsel %vm2579_vm10, %v2586_v8, %v2588_v40  ;;  %v2592_v44 = vsel %vm2580_vm6, %v2574_v63, %v2591_v62 }
 0x198   :  { %v2421_v43 = vmul.f32 %v2420_v33, %v2418_v36  ;;  %v2593_v19 = vsel %vm2579_vm10, %v2590_v29, %v2592_v44  ;;  %v5342_v50 = vmul.u32.u64.low %v2594_v34, %v2589_v3  ;;  %v5343_v13 = vmul.u32.u64.high %v2594_v34, %v2589_v3, %v5342_v50  ;;  %v6207_v36 = vld [vmem:[#allocation33_spill] sm:$0xff] }
 0x199   :  { %v2508_v18 = vsub.s32 0, %v5337_v15  ;;  %v2585_v5 = vsel %vm2579_vm10, %v2582_v45, %v2584_v30  ;;  %v5348_v49 = vmul.u32.u64.low %v2594_v34, %v2593_v19  ;;  %v5349_v0 = vmul.u32.u64.high %v2594_v34, %v2593_v19, %v5348_v49 }
 0x19a   :  { %vm2226_vm15 = vcmp.eq.s32.totalorder %v5230_v53, 0  ;;  %vm2229_vm14 = vcmp.eq.s32.totalorder %v5230_v53, 2  ;;  %v5354_v23 = vand.u32 3, %v5235_v16  ;;  %vm2340_vm3 = vcmp.lt.s32.totalorder %v6179_v27, 0 }
 0x19b   :  { %v6203_v10 = vand.u32 2147483647, %v6179_v27  ;;  %v6206_v60 = vsub.s32 4, %v5215_v9  ;;  %v3225_v33 = vmin.u32 %v2508_v18, %v5337_v15  ;;  %v2653_v8 = vand.u32 2139095040, %v6207_v36 }
 0x19c   :  { %v2128_v16 = vsel %vm2121_vm0, %v5290_v28, %v5279_v20  ;;  %vm2225_vm8 = vcmp.lt.s32.totalorder %v5230_v53, 2  ;;  %v2601_v2 = vmul.u32 %v2594_v34, %v2585_v5  ;;  %v2604_v17 = vadd.s32 1, %v5343_v13 }
 0x19d   :  { %vm5359_vm4 = vcmp.le.f32.partialorder %v6203_v10, 0.7853982  ;;  %v2425_v37 = vsel %vm2340_vm3, %v6206_v60, %v5215_v9  ;;  %v6208_v45 = vxor.u32 2147483648, %v5262_v21  ;;  %v6209_v9 = vxor.u32 2147483648, %v5259_v35 }
 0x19e   :  { %v2422_v29 = vxor.u32 2147483648, %v2421_v43  ;;  %v2510_v62 = vclz %v3225_v33  ;;  %vm2330_vm7 = vcmp.eq.s32.totalorder %v5354_v23, 0  ;;  %v2427_v6 = vsel %vm5359_vm4, 0, %v2425_v37 }
 0x19f   :  { %v2228_v30 = vsel %vm2226_vm15, %v5259_v35, %v6208_v45  ;;  %v2231_v40 = vsel %vm2229_vm14, %v6209_v9, %v5262_v21  ;;  %vm2603_vm9 = vc.u32 %v5349_v0, %v5342_v50  ;;  %v2654_v20 = vshrl.u32 %v2653_v8, 23  ;;  %v3392_v28 = vpop.eup %3391 }
 0x1a0   :  { %vm2333_vm1 = vcmp.eq.s32.totalorder %v5354_v23, 2  ;;  %vm2444_vm12 = vcmp.lt.s32.totalorder %v6187_v57, 0  ;;  %v3226_v34 = vadd.s32 4294967294, %v2510_v62  ;;  %v2605_v35 = vsel %vm2603_vm9, %v2604_v17, %v5343_v13 }
 0x1a1   :  { %v5392_v21 = vsel %vm2118_vm5, nan, %v2128_v16  ;;  %v5396_v3 = vsel %vm2225_vm8, %v2228_v30, %v2231_v40  ;;  %v6210_v44 = vand.u32 2147483647, %v6187_v57  ;;  %v2606_v18 = vadd.s32 %v2605_v35, %v2601_v2  ;;  %v3394_v49 = vpop.eup %3393 }
 0x1a2   :  { %v3232_v5 = vadd.s32 4294967169, %v2654_v20  ;;  %v2423_v13 = vsel %vm2340_vm3, %v2422_v29, %v2421_v43  ;;  %v2431_v10 = vadd.s32 3, %v2427_v6  ;;  %v2498_v52 = vadd.s32 %v5283_v24, %v5298_v58 }
 0x1a3   :  { %vm5400_vm13 = vcmp.le.f32.partialorder %v6210_v44, 0.7853982  ;;  %vm3227_vm0 = vcmp.lt.s32.totalorder %v3226_v34, 0  ;;  %v2528_v60 = vsub.s32 4, %v5325_v14  ;;  %v2607_v37 = vadd.s32 536870912, %v2606_v18 }
 0x1a4   :  { %v2513_v53 = vsel %vm3227_vm0, 0, %v3226_v34  ;;  %v2660_v33 = vadd.s32 1, %v3232_v5  ;;  %v2334_v8 = vxor.u32 2147483648, %v3392_v28  ;;  %v6036_v2 = vand.u32 2147483647, %v6207_v36 }
 0x1a5   :  { %v2514_v16 = vsub.s32 32, %v2513_v53  ;;  %v2518_v17 = vsub.s32 4294967266, %v2513_v53  ;;  %v2331_v45 = vxor.u32 2147483648, %v3394_v49  ;;  %v2426_v43 = vsel %vm5359_vm4, %v6179_v27, %v2423_v13 }
 0x1a6   :  { %v5413_v30 = vshrl.u32 %v2607_v37, 30  ;;  %vm2661_vm11 = vcmp.gt.s32.totalorder %v2660_v33, 0  ;;  %v2515_v24 = vshll.u32 %v5337_v15, %v2513_v53  ;;  %v5416_v29 = vand.u32 3, %v2431_v10  ;;  %v6213_v10 = vld [vmem:[#allocation34_spill] sm:$0xff] }
 0x1a7   :  { %v2516_v58 = vshrl.u32 %v2498_v52, %v2514_v16  ;;  %v2519_v9 = vadd.s32 127, %v2518_v17  ;;  %v2662_v40 = vsel %vm2661_vm11, %v2660_v33, 0  ;;  %v5421_v62 = vsel %vm2444_vm12, %v2528_v60, %v5325_v14 }
 0x1a8   :  { %v2609_v6 = vshll.u32 %v5413_v30, 30  ;;  %v2664_v20 = vand.u32 31, %v2662_v40  ;;  %v5426_v63 = vsel %vm2333_vm1, %v2334_v8, %v3394_v49  ;;  %3395 = vcosq.f32 %v2426_v43 }
 0x1a9   :  { %v2520_v34 = vshll.u32 %v2519_v9, 23  ;;  %v2657_v15 = vand.u32 8388607, %v6036_v2  ;;  %v5432_v35 = vsel %vm2330_vm7, %v3392_v28, %v2331_v45  ;;  %3397 = vsinq.f32 %v2426_v43 }
 0x1aa   :  { %v5434_v44 = vsub.s32 %v2606_v18, %v2609_v6  ;;  %v2665_v14 = vsub.s32 32, %v2664_v20  ;;  %v2517_v5 = vor.u32 %v2516_v58, %v2515_v24  ;;  %v2757_v52 = vand.u32 2139095040, %v6213_v10 }
 0x1ab   :  { %v2521_v13 = vor.u32 4788187, %v2520_v34  ;;  %v2602_v53 = vadd.s32 %v5342_v50, %v5349_v0  ;;  %v2667_v28 = vshll.u32 %v6172_v39, %v2664_v20  ;;  %v2658_v18 = vor.u32 8388608, %v2657_v15 }
 0x1ac   :  { %v2612_v60 = vsub.s32 0, %v5434_v44  ;;  %v2668_v37 = vshrl.u32 %v6173_v42, %v2665_v14  ;;  %v2663_v33 = vshrl.u32 %v2662_v40, 5  ;;  %v2670_v8 = vshll.u32 %v6173_v42, %v2664_v20 }
 0x1ad   :  { %v2671_v16 = vshrl.u32 %v6174_v7, %v2665_v14  ;;  %v2673_v45 = vshll.u32 %v6174_v7, %v2664_v20  ;;  %v2674_v43 = vshrl.u32 %v6175_v47, %v2665_v14  ;;  %v2676_v50 = vshll.u32 %v6175_v47, %v2664_v20 }
 0x1ae   :  { %v3229_v17 = vmin.u32 %v2612_v60, %v5434_v44  ;;  %v2522_v0 = vand.u32 2147483647, %v2521_v13  ;;  %v2524_v24 = vcvt.s32.f32 %v2517_v5  ;;  %v2677_v58 = vshrl.u32 %v6176_v12, %v2665_v14 }
 0x1af   :  { %v2758_v9 = vshrl.u32 %v2757_v52, 23  ;;  %vm2222_vm2 = vweird.f32 %v6186_v38  ;;  %vm2329_vm6 = vcmp.lt.s32.totalorder %v5354_v23, 2  ;;  %v2666_v6 = vshrl.u32 %v6172_v39, %v2665_v14 }
 0x1b0   :  { %v2614_v40 = vclz %v3229_v17  ;;  %v2669_v34 = vor.u32 %v2668_v37, %v2667_v28  ;;  %v2754_v15 = vand.u32 2147483647, %v6213_v10  ;;  %v2672_v60 = vor.u32 %v2671_v16, %v2670_v8 }
 0x1b1   :  { %v2678_v2 = vor.u32 %v2677_v58, %v2676_v50  ;;  %v2679_v49 = vshll.u32 %v6176_v12, %v2664_v20  ;;  %v2680_v13 = vshrl.u32 %v6177_v26, %v2665_v14  ;;  %v2675_v51 = vor.u32 %v2674_v43, %v2673_v45 }
 0x1b2   :  { %v3230_v5 = vadd.s32 4294967294, %v2614_v40  ;;  %vm2682_vm10 = vcmp.lt.s32.totalorder %v2663_v33, 1  ;;  %v5458_v52 = vshll.u32 %v2658_v18, 8  ;;  %v5460_v41 = vpop.eup %3395  ;;  %v2525_v32 = vmul.f32 %v2524_v24, %v2522_v0 }
 0x1b3   :  { %v2681_v17 = vor.u32 %v2680_v13, %v2679_v49  ;;  %vm2685_vm5 = vcmp.lt.s32.totalorder %v2663_v33, 4  ;;  %v3236_v1 = vadd.s32 4294967169, %v2758_v9  ;;  %v5462_v28 = vpop.eup %3397  ;;  %vm2326_vm15 = vweird.f32 %v6192_v4 }
 0x1b4   :  { %vm3231_vm14 = vcmp.lt.s32.totalorder %v3230_v5, 0  ;;  %vm2683_vm3 = vcmp.lt.s32.totalorder %v2663_v33, 2  ;;  %vm2684_vm4 = vcmp.lt.s32.totalorder %v2663_v33, 3  ;;  %v2687_v20 = vsel %vm2685_vm5, %v2675_v51, 2102212464 }
 0x1b5   :  { %v2617_v14 = vsel %vm3231_vm14, 0, %v3230_v5  ;;  %v2686_v37 = vsel %vm2682_vm10, %v2666_v6, %v2669_v34  ;;  %v2690_v18 = vsel %vm2682_vm10, %v2669_v34, %v2672_v60  ;;  %v2691_v8 = vsel %vm2685_vm5, %v2678_v2, 920167782 }
 0x1b6   :  { %v2618_v16 = vsub.s32 32, %v2617_v14  ;;  %v2619_v49 = vshll.u32 %v5434_v44, %v2617_v14  ;;  %v2622_v45 = vsub.s32 4294967266, %v2617_v14  ;;  %v2688_v43 = vsel %vm2684_vm4, %v2672_v60, %v2687_v20 }
 0x1b7   :  { %v2526_v50 = vxor.u32 2147483648, %v2525_v32  ;;  %v2692_v0 = vsel %vm2684_vm4, %v2675_v51, %v2691_v8  ;;  %v2694_v24 = vsel %vm2682_vm10, %v2672_v60, %v2675_v51  ;;  %v2695_v58 = vsel %vm2685_vm5, %v2681_v17, 1326507024 }
 0x1b8   :  { %v2620_v9 = vshrl.u32 %v2602_v53, %v2618_v16  ;;  %v2623_v40 = vadd.s32 127, %v2622_v45  ;;  %v2693_v6 = vsel %vm2683_vm3, %v2690_v18, %v2692_v0  ;;  %v2696_v34 = vsel %vm2684_vm4, %v2678_v2, %v2695_v58 }
 0x1b9   :  { %vm2548_vm8 = vcmp.lt.s32.totalorder %v6200_v55, 0  ;;  %v2689_v44 = vsel %vm2683_vm3, %v2686_v37, %v2688_v43  ;;  %v2697_v13 = vsel %vm2683_vm3, %v2694_v24, %v2696_v34  ;;  %v6214_v51 = vand.u32 2147483647, %v6200_v55 }
 0x1ba   :  { %v5480_v5 = vmul.u32.u64.low %v5458_v52, %v2693_v6  ;;  %v5481_v20 = vmul.u32.u64.high %v5458_v52, %v2693_v6, %v5480_v5  ;;  %v2621_v60 = vor.u32 %v2620_v9, %v2619_v49  ;;  %v2624_v17 = vshll.u32 %v2623_v40, 23 }
 0x1bb   :  { %vm5486_vm7 = vcmp.le.f32.partialorder %v6214_v51, 0.7853982  ;;  %v5491_v2 = vmul.u32.u64.low %v5458_v52, %v2697_v13  ;;  %v5492_v14 = vmul.u32.u64.high %v5458_v52, %v2697_v13, %v5491_v2  ;;  %v5497_v33 = vsel %vm2222_vm2, nan, %v5396_v3 }
 0x1bc   :  { %v2336_v37 = vsel %vm2329_vm6, %v5432_v35, %v5426_v63  ;;  %v6217_v18 = vsel %vm5400_vm13, 0, %v5421_v62  ;;  %v2764_v16 = vadd.s32 1, %v3236_v1  ;;  %v2438_v49 = vxor.u32 2147483648, %v5460_v41 }
 0x1bd   :  { %v2535_v8 = vadd.s32 3, %v6217_v18  ;;  %v2625_v45 = vor.u32 4788187, %v2624_v17  ;;  %v2628_v43 = vcvt.s32.f32 %v2621_v60  ;;  %v2705_v0 = vmul.u32 %v5458_v52, %v2689_v44 }
 0x1be   :  { %v2527_v38 = vsel %vm2444_vm12, %v2526_v50, %v2525_v32  ;;  %v2708_v3 = vadd.s32 1, %v5481_v20  ;;  %v2761_v23 = vand.u32 8388607, %v2754_v15  ;;  %vm2765_vm9 = vcmp.gt.s32.totalorder %v2764_v16, 0 }
 0x1bf   :  { %vm2434_vm1 = vcmp.eq.s32.totalorder %v5416_v29, 0  ;;  %vm2437_vm0 = vcmp.eq.s32.totalorder %v5416_v29, 2  ;;  %v2626_v1 = vand.u32 2147483647, %v2625_v45  ;;  %vm2707_vm11 = vc.u32 %v5492_v14, %v5480_v5 }
 0x1c0   :  { %v2766_v62 = vsel %vm2765_vm9, %v2764_v16, 0  ;;  %v5520_v63 = vsel %vm2326_vm15, nan, %v2336_v37  ;;  %v5522_v32 = vand.u32 3, %v2535_v8  ;;  %v2709_v35 = vsel %vm2707_vm11, %v2708_v3, %v5481_v20 }
 0x1c1   :  { %v2768_v52 = vand.u32 31, %v2766_v62  ;;  %v2435_v50 = vxor.u32 2147483648, %v5462_v28  ;;  %v2530_v24 = vsel %vm5400_vm13, %v6187_v57, %v2527_v38  ;;  %v2629_v58 = vmul.f32 %v2628_v43, %v2626_v1 }
 0x1c2   :  { %v2710_v9 = vadd.s32 %v2709_v35, %v2705_v0  ;;  %v5530_v40 = vsel %vm2437_vm0, %v2438_v49, %v5462_v28  ;;  %v2632_v4 = vsub.s32 4, %v5413_v30  ;;  %v2762_v6 = vor.u32 8388608, %v2761_v23 }
 0x1c3   :  { %v2769_v34 = vsub.s32 32, %v2768_v52  ;;  %v2630_v44 = vxor.u32 2147483648, %v2629_v58  ;;  %v2771_v20 = vshll.u32 %v6172_v39, %v2768_v52  ;;  %v2774_v51 = vshll.u32 %v6173_v42, %v2768_v52 }
 0x1c4   :  { %v2711_v13 = vadd.s32 536870912, %v2710_v9  ;;  %3399 = vcosq.f32 %v2530_v24  ;;  %v2767_v60 = vshrl.u32 %v2766_v62, 5  ;;  %v2777_v37 = vshll.u32 %v6174_v7, %v2768_v52 }
 0x1c5   :  { %v2772_v19 = vshrl.u32 %v6173_v42, %v2769_v34  ;;  %v2775_v17 = vshrl.u32 %v6174_v7, %v2769_v34  ;;  %v2631_v28 = vsel %vm2548_vm8, %v2630_v44, %v2629_v58  ;;  %v2778_v18 = vshrl.u32 %v6175_v47, %v2769_v34 }
 0x1c6   :  { %v5539_v2 = vshrl.u32 %v2711_v13, 30  ;;  %vm2433_vm12 = vcmp.lt.s32.totalorder %v5416_v29, 2  ;;  %3401 = vsinq.f32 %v2530_v24  ;;  %v2633_v8 = vsel %vm2548_vm8, %v2632_v4, %v5413_v30 }
 0x1c7   :  { %v2634_v42 = vsel %vm5486_vm7, %v6200_v55, %v2631_v28  ;;  %v2770_v16 = vshrl.u32 %v6172_v39, %v2769_v34  ;;  %v2773_v45 = vor.u32 %v2772_v19, %v2771_v20  ;;  %v2776_v7 = vor.u32 %v2775_v17, %v2774_v51 }
 0x1c8   :  { %3403 = vcosq.f32 %v2634_v42  ;;  %v2713_v49 = vshll.u32 %v5539_v2, 30  ;;  %v2780_v43 = vshll.u32 %v6175_v47, %v2768_v52  ;;  %v2781_v0 = vshrl.u32 %v6176_v12, %v2769_v34 }
 0x1c9   :  { %3405 = vsinq.f32 %v2634_v42  ;;  %v2783_v38 = vshll.u32 %v6176_v12, %v2768_v52  ;;  %v2779_v30 = vor.u32 %v2778_v18, %v2777_v37  ;;  %v2784_v23 = vshrl.u32 %v6177_v26, %v2769_v34 }
 0x1ca   :  { %v5555_v3 = vsub.s32 %v2710_v9, %v2713_v49  ;;  %vm2786_vm13 = vcmp.lt.s32.totalorder %v2767_v60, 1  ;;  %v2436_v39 = vsel %vm2434_vm1, %v5460_v41, %v2435_v50  ;;  %v2635_v1 = vsel %vm5486_vm7, 0, %v2633_v8 }
 0x1cb   :  { %vm2652_vm2 = vcmp.lt.s32.totalorder %v6207_v36, 0  ;;  %v2782_v47 = vor.u32 %v2781_v0, %v2780_v43  ;;  %vm2788_vm6 = vcmp.lt.s32.totalorder %v2767_v60, 3  ;;  %v2785_v12 = vor.u32 %v2784_v23, %v2783_v38 }
 0x1cc   :  { %v2716_v62 = vsub.s32 0, %v5555_v3  ;;  %vm2787_vm10 = vcmp.lt.s32.totalorder %v2767_v60, 2  ;;  %vm2789_vm5 = vcmp.lt.s32.totalorder %v2767_v60, 4  ;;  %v2794_v26 = vsel %vm2786_vm13, %v2773_v45, %v2776_v7 }
 0x1cd   :  { %v2791_v35 = vsel %vm2789_vm5, %v2779_v30, 2102212464  ;;  %v2795_v52 = vsel %vm2789_vm5, %v2782_v47, 920167782  ;;  %v2802_v24 = vshll.u32 %v2762_v6, 8  ;;  %vm2430_vm15 = vweird.f32 %v6179_v27 }
 0x1ce   :  { %v2639_v41 = vadd.s32 3, %v2635_v1  ;;  %v3233_v53 = vmin.u32 %v2716_v62, %v5555_v3  ;;  %v2790_v50 = vsel %vm2786_vm13, %v2770_v16, %v2773_v45  ;;  %v2796_v58 = vsel %vm2788_vm6, %v2779_v30, %v2795_v52  ;;  %v3400_v9 = vpop.eup %3399 }
 0x1cf   :  { %v2792_v4 = vsel %vm2788_vm6, %v2776_v7, %v2791_v35  ;;  %v2797_v34 = vsel %vm2787_vm10, %v2794_v26, %v2796_v58  ;;  %v2798_v44 = vsel %vm2786_vm13, %v2776_v7, %v2779_v30  ;;  %v2799_v13 = vsel %vm2789_vm5, %v2785_v12, 1326507024 }
 0x1d0   :  { %vm2537_vm14 = vcmp.lt.s32.totalorder %v5522_v32, 2  ;;  %vm2538_vm3 = vcmp.eq.s32.totalorder %v5522_v32, 0  ;;  %v6218_v6 = vand.u32 2147483647, %v6207_v36  ;;  %v2718_v51 = vclz %v3233_v53  ;;  %v3402_v17 = vpop.eup %3401 }
 0x1d1   :  { %v2736_v19 = vsub.s32 4, %v5539_v2  ;;  %vm2541_vm8 = vcmp.eq.s32.totalorder %v5522_v32, 2  ;;  %v2800_v28 = vsel %vm2788_vm6, %v2782_v47, %v2799_v13  ;;  %v2440_v42 = vsel %vm2433_vm12, %v2436_v39, %v5530_v40 }
 0x1d2   :  { %vm5577_vm4 = vcmp.le.f32.partialorder %v6218_v6, 0.7853982  ;;  %v5584_v37 = vmul.u32.u64.low %v2802_v24, %v2797_v34  ;;  %v5585_v18 = vmul.u32.u64.high %v2802_v24, %v2797_v34, %v5584_v37  ;;  %v3404_v8 = vpop.eup %3403  ;;  %v3234_v16 = vadd.s32 4294967294, %v2718_v51 }
 0x1d3   :  { %v2793_v49 = vsel %vm2787_vm10, %v2790_v50, %v2792_v4  ;;  %v2801_v45 = vsel %vm2787_vm10, %v2798_v44, %v2800_v28  ;;  %v3406_v7 = vpop.eup %3405  ;;  %vm2534_vm7 = vweird.f32 %v6187_v57  ;;  %v2542_v43 = vxor.u32 2147483648, %v3400_v9 }
 0x1d4   :  { %v2640_v0 = vand.u32 3, %v2639_v41  ;;  %v5594_v38 = vmul.u32.u64.low %v2802_v24, %v2801_v45  ;;  %v5595_v30 = vmul.u32.u64.high %v2802_v24, %v2801_v45, %v5594_v38  ;;  %v2539_v23 = vxor.u32 2147483648, %v3402_v17 }
 0x1d5   :  { %v2706_v1 = vadd.s32 %v5480_v5, %v5492_v14  ;;  %vm3235_vm9 = vcmp.lt.s32.totalorder %v3234_v16, 0  ;;  %v2737_v29 = vsel %vm2652_vm2, %v2736_v19, %v5539_v2  ;;  %v2646_v40 = vxor.u32 2147483648, %v3404_v8  ;;  %v6226_v38 = vld [vmem:[#allocation21_spill] sm:$0xff] }
 0x1d6   :  { %v2721_v60 = vsel %vm3235_vm9, 0, %v3234_v16  ;;  %v2809_v39 = vmul.u32 %v2802_v24, %v2793_v49  ;;  %v2812_v47 = vadd.s32 1, %v5585_v18  ;;  %v2643_v62 = vxor.u32 2147483648, %v3406_v7  ;;  %v6244_v16 = vld [vmem:[#allocation51_spill] sm:$0xff] }
 0x1d7   :  { %v2722_v12 = vsub.s32 32, %v2721_v60  ;;  %v2723_v35 = vshll.u32 %v5555_v3, %v2721_v60  ;;  %v2726_v26 = vsub.s32 4294967266, %v2721_v60  ;;  %v2543_v52 = vsel %vm2541_vm8, %v2542_v43, %v3402_v17 }
 0x1d8   :  { %vm2642_vm1 = vcmp.eq.s32.totalorder %v2640_v0, 0  ;;  %vm2645_vm0 = vcmp.eq.s32.totalorder %v2640_v0, 2  ;;  %vm2811_vm11 = vc.u32 %v5595_v30, %v5584_v37  ;;  %v2540_v5 = vsel %vm2538_vm3, %v3400_v9, %v2539_v23 }
 0x1d9   :  { %v2724_v14 = vshrl.u32 %v2706_v1, %v2722_v12  ;;  %v2727_v2 = vadd.s32 127, %v2726_v26  ;;  %v2813_v24 = vsel %vm2811_vm11, %v2812_v47, %v5585_v18  ;;  %v2441_v41 = vsel %vm2430_vm15, nan, %v2440_v42  ;;  %v6227_v1 = vld [vmem:[#allocation55_spill] sm:$0xff]  ;;  %v6229_v47 = vld [vmem:[#allocation56_spill] sm:$0xff]  ;;  %v6231_v12 = vld [vmem:[#allocation57_spill] sm:$0xff] }
 0x1da   :  { %vm2641_vm12 = vcmp.lt.s32.totalorder %v2640_v0, 2  ;;  %v2739_v3 = vsel %vm5577_vm4, 0, %v2737_v29  ;;  %v2814_v53 = vadd.s32 %v2813_v24, %v2809_v39  ;;  %v2644_v50 = vsel %vm2642_vm1, %v3404_v8, %v2643_v62  ;;  %v6225_v0 = vld [vmem:[#allocation54_spill] sm:$0xff]  ;;  %v6230_v62 = vld [vmem:[#allocation24_spill] sm:$0xff] }
 0x1db   :  { %v2647_v58 = vsel %vm2645_vm0, %v2646_v40, %v3406_v7  ;;  %v2725_v4 = vor.u32 %v2724_v14, %v2723_v35  ;;  %v2728_v34 = vshll.u32 %v2727_v2, 23  ;;  %v2544_v44 = vsel %vm2537_vm14, %v2540_v5, %v2543_v52  ;;  %v6228_v29 = vld [vmem:[#allocation22_spill] sm:$0xff]  ;;  %v6232_v35 = vld [vmem:[#allocation25_spill] sm:$0xff]  ;;  %v6234_v2 = vld [vmem:[#allocation35_spill] sm:$0xff] }
 0x1dc   :  { %v2815_v9 = vadd.s32 536870912, %v2814_v53  ;;  %v5619_v13 = vmul.f32 %v5392_v21, %v5392_v21  ;;  %v5623_v27 = vmul.f32 %v5497_v33, %v5497_v33  ;;  %v2743_v19 = vadd.s32 3, %v2739_v3  ;;  %v6233_v14 = vld [vmem:[#allocation58_spill] sm:$0xff] }
 0x1dd   :  { %v2729_v6 = vor.u32 4788187, %v2728_v34  ;;  %v2732_v51 = vcvt.s32.f32 %v2725_v4  ;;  %v5627_v17 = vmul.f32 %v5520_v63, %v5520_v63  ;;  %v5630_v28 = vmul.f32 2.0, %v5143_v59  ;;  %v6238_v34 = vld [vmem:[#allocation47_spill] sm:$0xff] }
 0x1de   :  { %vm2638_vm13 = vweird.f32 %v6200_v55  ;;  %v2648_v32 = vsel %vm2641_vm12, %v2644_v50, %v2647_v58  ;;  %v2816_v21 = vshrl.u32 %v2815_v9, 30  ;;  %v5635_v18 = vmul.f32 2.0, %v5171_v56  ;;  %v6236_v50 = vld [vmem:[#allocation59_spill] sm:$0xff]  ;;  %v6237_v58 = vld [vmem:[#allocation26_spill] sm:$0xff]  ;;  %v6239_v9 = vld [vmem:[#allocation48_spill] sm:$0xff] }
 0x1df   :  { %6221 = vst [vmem:[#allocation38_spill] sm:$0xff] %v5630_v28  ;;  %v2545_v33 = vsel %vm2534_vm7, nan, %v2544_v44  ;;  %v2730_v8 = vand.u32 2147483647, %v2729_v6  ;;  %vm2756_vm6 = vcmp.lt.s32.totalorder %v6213_v10, 0  ;;  %v5640_v63 = vmul.f32 %v2441_v41, %v2441_v41  ;;  %v6235_v41 = vld [vmem:[#allocation46_spill] sm:$0xff] }
 0x1e0   :  { %6222 = vst [vmem:[#allocation28_spill] sm:$0xff] %v5635_v18  ;;  %v2817_v42 = vshll.u32 %v2816_v21, 30  ;;  %v2649_v55 = vsel %vm2638_vm13, nan, %v2648_v32  ;;  %v5644_v45 = vand.u32 3, %v2743_v19  ;;  %vm5648_vm10 = vcmp.le.f32.partialorder %v2754_v15, 0.7853982 }
 0x1e1   :  { %v2733_v49 = vmul.f32 %v2732_v51, %v2730_v8  ;;  %v5655_v43 = vmul.f32 %v2545_v33, %v2545_v33  ;;  %v2874_v23 = vmul.f32 %v6226_v38, %v6225_v0  ;;  %v2875_v40 = vmul.f32 %v6228_v29, %v6227_v1  ;;  %v6240_v32 = vld [vmem:[#allocation60_spill] sm:$0xff]  ;;  %v6241_v33 = vld [vmem:[#allocation42_spill] sm:$0xff] }
 0x1e2   :  { %v5653_v7 = vsub.s32 %v2814_v53, %v2817_v42  ;;  %v2840_v39 = vsub.s32 4, %v2816_v21  ;;  %v2876_v15 = vmul.f32 %v6230_v62, %v6229_v47  ;;  %v2877_v26 = vmul.f32 %v6232_v35, %v6231_v12  ;;  %v6242_v42 = vld [vmem:[#allocation49_spill] sm:$0xff] }
 0x1e3   :  { %v2734_v60 = vxor.u32 2147483648, %v2733_v49  ;;  %v5666_v5 = vmul.f32 %v2649_v55, %v2649_v55  ;;  %v2878_v24 = vmul.f32 %v6234_v2, %v6233_v14  ;;  %v2882_v3 = vmul.f32 %v4735_v25, %v6235_v41 }
 0x1e4   :  { %v2820_v52 = vsub.s32 0, %v5653_v7  ;;  %v2879_v4 = vmul.f32 %v6237_v58, %v6236_v50  ;;  %v2883_v44 = vmul.f32 %v4739_v46, %v6238_v34  ;;  %v2884_v6 = vmul.f32 %v4749_v22, %v6239_v9 }
 0x1e5   :  { %v2735_v53 = vsel %vm2652_vm2, %v2734_v60, %v2733_v49  ;;  %v2880_v8 = vmul.f32 %v6241_v33, %v6240_v32  ;;  %v2885_v55 = vmul.f32 %v4763_v61, %v6242_v42  ;;  %v2841_v49 = vsel %vm2756_vm6, %v2840_v39, %v2816_v21  ;;  %v6243_v60 = vld [vmem:[#allocation50_spill] sm:$0xff] }
 0x1e6   :  { %v2738_v51 = vsel %vm5577_vm4, %v6207_v36, %v2735_v53  ;;  %v3237_v19 = vmin.u32 %v2820_v52, %v5653_v7  ;;  %v2886_v57 = vmul.f32 %v4767_v31, %v6243_v60  ;;  %v2887_v59 = vmul.f32 %v4777_v54, %v6244_v16  ;;  %v6245_v53 = vld [vmem:[#allocation52_spill] sm:$0xff] }
 0x1e7   :  { %3407 = vcosq.f32 %v2738_v51  ;;  %v2888_v52 = vmul.f32 %v4789_v48, %v6245_v53  ;;  %v2890_v18 = vadd.f32 %v2882_v3, %v2874_v23  ;;  %vm2749_vm2 = vcmp.eq.s32.totalorder %v5644_v45, 2  ;;  %v6246_v3 = vld [vmem:[#allocation61_spill] sm:$0xff] }
 0x1e8   :  { %3409 = vsinq.f32 %v2738_v51  ;;  %v2822_v20 = vclz %v3237_v19  ;;  %v2891_v11 = vadd.f32 %v2883_v44, %v2875_v40  ;;  %v2892_v33 = vadd.f32 %v2884_v6, %v2876_v15  ;;  %v6247_v19 = vld [vmem:[#allocation36_spill] sm:$0xff] }
 0x1e9   :  { %vm2746_vm5 = vcmp.eq.s32.totalorder %v5644_v45, 0  ;;  %v2843_v39 = vsel %vm5648_vm10, 0, %v2841_v49  ;;  %v2893_v51 = vadd.f32 %v2885_v55, %v2877_v26  ;;  %vm2745_vm15 = vcmp.lt.s32.totalorder %v5644_v45, 2 }
 0x1ea   :  { %v3238_v21 = vadd.s32 4294967294, %v2822_v20  ;;  %v2810_v23 = vadd.s32 %v5584_v37, %v5595_v30  ;;  %v5707_v53 = vmul.f32 %v6247_v19, %v6246_v3  ;;  %v2894_v40 = vadd.f32 %v2886_v57, %v2878_v24 }
 0x1eb   :  { %v2895_v15 = vadd.f32 %v2887_v59, %v2879_v4  ;;  %vm2742_vm14 = vweird.f32 %v6207_v36  ;;  %v5711_v6 = vadd.f32 %v2888_v52, %v2880_v8  ;;  %v5714_v26 = vmul.f32 %v2890_v18, %v5619_v13 }
 0x1ec   :  { %6248 = vst [vmem:[#allocation31_spill] sm:$0xff] %v5707_v53  ;;  %vm3239_vm3 = vcmp.lt.s32.totalorder %v3238_v21, 0  ;;  %v5716_v49 = vadd.s32 3, %v2843_v39  ;;  %v5719_v37 = vmul.f32 %v2891_v11, %v5623_v27  ;;  %v5722_v30 = vmul.f32 %v2892_v33, %v5627_v17 }
 0x1ed   :  { %v2825_v55 = vsel %vm3239_vm3, 0, %v3238_v21  ;;  %v5726_v4 = vmul.f32 %v2893_v51, %v5640_v63  ;;  %v5729_v8 = vmul.f32 %v2894_v40, %v5655_v43  ;;  %v5732_v18 = vmul.f32 %v2895_v15, %v5666_v5 }
 0x1ee   :  { %v2826_v59 = vsub.s32 32, %v2825_v55  ;;  %v2827_v57 = vshll.u32 %v5653_v7, %v2825_v55  ;;  %v2830_v24 = vsub.s32 4294967266, %v2825_v55  ;;  %v2906_v11 = vmul.f32 %v4735_v25, %v6225_v0 }
 0x1ef   :  { %v2907_v33 = vmul.f32 %v4739_v46, %v6227_v1  ;;  %v2908_v7 = vmul.f32 %v4749_v22, %v6229_v47  ;;  %v2909_v21 = vmul.f32 %v4763_v61, %v6231_v12  ;;  %v2910_v51 = vmul.f32 %v4767_v31, %v6233_v14 }
 0x1f0   :  { %v2828_v20 = vshrl.u32 %v2810_v23, %v2826_v59  ;;  %v2831_v52 = vadd.s32 127, %v2830_v24  ;;  %v2911_v40 = vmul.f32 %v4777_v54, %v6236_v50  ;;  %v2914_v25 = vmul.f32 %v6226_v38, %v6235_v41 }
 0x1f1   :  { %v3408_v39 = vpop.eup %3407  ;;  %v2915_v46 = vmul.f32 %v6228_v29, %v6238_v34  ;;  %v2916_v61 = vmul.f32 %v6230_v62, %v6239_v9  ;;  %v2912_v31 = vmul.f32 %v4789_v48, %v6240_v32  ;;  %v2917_v54 = vmul.f32 %v6232_v35, %v6242_v42 }
 0x1f2   :  { %v3410_v23 = vpop.eup %3409  ;;  %v2750_v15 = vxor.u32 2147483648, %v3408_v39  ;;  %v2829_v55 = vor.u32 %v2828_v20, %v2827_v57  ;;  %v2832_v22 = vshll.u32 %v2831_v52, 23  ;;  %v2918_v38 = vmul.f32 %v6234_v2, %v6243_v60  ;;  %v6249_v20 = vld [vmem:[#allocation52_spill] sm:$0xff]  ;;  %v6250_v52 = vld [vmem:[#allocation42_spill] sm:$0xff] }
 0x1f3   :  { %v2747_v59 = vxor.u32 2147483648, %v3410_v23  ;;  %v2919_v57 = vmul.f32 %v6237_v58, %v6244_v16  ;;  %v2920_v48 = vmul.f32 %v6250_v52, %v6249_v20  ;;  %v2922_v10 = vadd.f32 %v2914_v25, %v2906_v11  ;;  %v6251_v25 = vld [vmem:[#allocation19_spill] sm:$0xff] }
 0x1f4   :  { %v2751_v29 = vsel %vm2749_vm2, %v2750_v15, %v3410_v23  ;;  %v2833_v24 = vor.u32 4788187, %v2832_v22  ;;  %v2836_v44 = vcvt.s32.f32 %v2829_v55  ;;  %v2923_v28 = vadd.f32 %v2915_v46, %v2907_v33 }
 0x1f5   :  { %v2748_v62 = vsel %vm2746_vm5, %v3408_v39, %v2747_v59  ;;  %v2924_v53 = vadd.f32 %v2916_v61, %v2908_v7  ;;  %v2954_v23 = vmul.f32 %v6225_v0, %v6235_v41  ;;  %v2925_v58 = vadd.f32 %v2917_v54, %v2909_v21  ;;  %v6252_v41 = vld [vmem:[#allocation15_spill] sm:$0xff] }
 0x1f6   :  { %v2752_v35 = vsel %vm2745_vm15, %v2748_v62, %v2751_v29  ;;  %v2834_v2 = vand.u32 2147483647, %v2833_v24  ;;  %v2926_v55 = vadd.f32 %v2918_v38, %v2910_v51  ;;  %v2955_v39 = vmul.f32 %v6227_v1, %v6238_v34  ;;  %v6263_v38 = vld [vmem:[#allocation17_spill] sm:$0xff] }
 0x1f7   :  { %v2753_v15 = vsel %vm2742_vm14, nan, %v2752_v35  ;;  %v2927_v11 = vadd.f32 %v2919_v57, %v2911_v40  ;;  %v2956_v45 = vmul.f32 %v6229_v47, %v6239_v9  ;;  %v2928_v33 = vadd.f32 %v2920_v48, %v2912_v31  ;;  %v6264_v57 = vld [vmem:[#allocation23_spill] sm:$0xff]  ;;  %v6265_v48 = vld [vmem:[#allocation18_spill] sm:$0xff] }
 0x1f8   :  { %v2837_v22 = vmul.f32 %v2836_v44, %v2834_v2  ;;  %v2864_v59 = vmul.f32 %v2753_v15, %v2753_v15  ;;  %v2957_v7 = vmul.f32 %v6231_v12, %v6242_v42  ;;  %v2962_v0 = vmul.f32 %v6251_v25, %v2954_v23  ;;  %v6267_v23 = vld [vmem:[#allocation41_spill] sm:$0xff] }
 0x1f9   :  { %v2963_v36 = vmul.f32 %v6252_v41, %v2955_v39  ;;  %v6253_v21 = vsub.f32 1.0, %v5619_v13  ;;  %v6254_v1 = vsub.f32 1.0, %v5623_v27  ;;  %v2958_v44 = vmul.f32 %v6233_v14, %v6243_v60  ;;  %v6257_v13 = vld [vmem:[#allocation34_spill] sm:$0xff]  ;;  %v6259_v14 = vld [vmem:[#allocation53_spill] sm:$0xff]  ;;  %v6260_v60 = vld [vmem:[#allocation20_spill] sm:$0xff] }
 0x1fa   :  { %v2838_v46 = vxor.u32 2147483648, %v2837_v22  ;;  %v6255_v47 = vsub.f32 1.0, %v5627_v17  ;;  %v6256_v40 = vsub.f32 1.0, %v5640_v63  ;;  %v2959_v42 = vmul.f32 %v6236_v50, %v6244_v16 }
 0x1fb   :  { %v2930_v51 = vmul.f32 %v2922_v10, %v6253_v21  ;;  %v2931_v34 = vmul.f32 %v2923_v28, %v6254_v1  ;;  %v2960_v61 = vmul.f32 %v6240_v32, %v6249_v20  ;;  %v2872_v27 = vsub.f32 1.0, %v2864_v59  ;;  %v6258_v28 = vld [vmem:[#allocation16_spill] sm:$0xff] }
 0x1fc   :  { %v2932_v9 = vmul.f32 %v2924_v53, %v6255_v47  ;;  %v2933_v12 = vmul.f32 %v2925_v58, %v6256_v40  ;;  %v2839_v10 = vsel %vm2756_vm6, %v2838_v46, %v2837_v22  ;;  %v2964_v31 = vmul.f32 %v6258_v28, %v2956_v45  ;;  %v6269_v45 = vld [vmem:[#allocation31_spill] sm:$0xff]  ;;  %v6271_v1 = vld [vmem:[#allocation40_spill] sm:$0xff]  ;;  %v6272_v40 = vld [vmem:[#allocation30_spill] sm:$0xff] }
 0x1fd   :  { %3411 = vlog2.f32 %v2962_v0  ;;  %v2842_v17 = vsel %vm5648_vm10, %v6257_v13, %v2839_v10  ;;  %v2961_v63 = vmul.f32 %v6246_v3, %v6259_v14  ;;  %v2965_v53 = vmul.f32 %v6260_v60, %v2957_v7 }
 0x1fe   :  { %3413 = vlog2.f32 %v2963_v36  ;;  %v6261_v16 = vsub.f32 1.0, %v5655_v43  ;;  %v6262_v32 = vsub.f32 1.0, %v5666_v5  ;;  %v2966_v29 = vmul.f32 %v6263_v38, %v2958_v44  ;;  %v6266_v43 = vld [vmem:[#allocation37_spill] sm:$0xff] }
 0x1ff   :  { %3415 = vcosq.f32 %v2842_v17  ;;  %v2938_v24 = vadd.f32 %v2930_v51, %v5714_v26  ;;  %v2939_v56 = vadd.f32 %v2931_v34, %v5719_v37  ;;  %v2967_v62 = vmul.f32 %v6264_v57, %v2959_v42  ;;  %v6270_v36 = vld [vmem:[#allocation45_spill] sm:$0xff] }
 0x200   :  { %v2934_v50 = vmul.f32 %v2926_v55, %v6261_v16  ;;  %v2935_v54 = vmul.f32 %v2927_v11, %v6262_v32  ;;  %3417 = vsinq.f32 %v2842_v17  ;;  %v2904_v20 = vmul.f32 %v5711_v6, %v2864_v59  ;;  %v6268_v6 = vld [vmem:[#allocation27_spill] sm:$0xff] }
 0x201   :  { %v2936_v52 = vmul.f32 %v2928_v33, %v2872_v27  ;;  %v2968_v35 = vmul.f32 %v6265_v48, %v2960_v61  ;;  %3419 = vlog2.f32 %v2964_v31  ;;  %v2889_v2 = vmul.f32 %v6266_v43, %v6259_v14  ;;  %v6273_v27 = vld [vmem:[#allocation43_spill] sm:$0xff]  ;;  %v6274_v31 = vld [vmem:[#allocation38_spill] sm:$0xff] }
 0x202   :  { %v2940_v5 = vadd.f32 %v2932_v9, %v5722_v30  ;;  %v2969_v15 = vmul.f32 %v6267_v23, %v2961_v63  ;;  %3421 = vlog2.f32 %v2965_v53  ;;  %v2848_v26 = vand.u32 3, %v5716_v49  ;;  %v6275_v53 = vld [vmem:[#allocation28_spill] sm:$0xff] }
 0x203   :  { %v2941_v37 = vadd.f32 %v2933_v12, %v5726_v4  ;;  %v2942_v58 = vadd.f32 %v2934_v50, %v5729_v8  ;;  %3423 = vlog2.f32 %v2966_v29  ;;  %v2024_v55 = vmul.f32 2.0, %v6268_v6 }
 0x204   :  { %v2943_v39 = vadd.f32 %v2935_v54, %v5732_v18  ;;  %v2946_v22 = vmul.f32 0.5, %v2938_v24  ;;  %3425 = vlog2.f32 %v2967_v62  ;;  %vm2846_vm4 = vweird.f32 %v6257_v13 }
 0x205   :  { %v2944_v59 = vadd.f32 %v2936_v52, %v2904_v20  ;;  %v2947_v30 = vmul.f32 0.5, %v2939_v56  ;;  %3427 = vlog2.f32 %v2968_v35  ;;  %v2913_v11 = vmul.f32 %v6266_v43, %v6246_v3 }
 0x206   :  { %v2921_v49 = vmul.f32 %v6247_v19, %v6259_v14  ;;  %v2948_v4 = vmul.f32 0.5, %v2940_v5  ;;  %3429 = vlog2.f32 %v2969_v15  ;;  %vm2849_vm8 = vcmp.lt.s32.totalorder %v2848_v26, 2 }
 0x207   :  { %v3412_v8 = vpop.eup %3411  ;;  %v2897_v33 = vadd.f32 %v2889_v2, %v6269_v45  ;;  %v2949_v18 = vmul.f32 0.5, %v2941_v37  ;;  %v2950_v7 = vmul.f32 0.5, %v2942_v58  ;;  %vm2850_vm7 = vcmp.eq.s32.totalorder %v2848_v26, 0 }
 0x208   :  { %v3414_v25 = vpop.eup %3413  ;;  %v2951_v0 = vmul.f32 0.5, %v2943_v39  ;;  %v2971_v41 = vmul.f32 0.6931472, %v3412_v8  ;;  %v2994_v46 = vadd.f32 %v2946_v22, %v6270_v36  ;;  %vm2853_vm9 = vcmp.eq.s32.totalorder %v2848_v26, 2  ;;  %v6277_v39 = vld [vmem:[#allocation39_spill] sm:$0xff] }
 0x209   :  { %v3416_v21 = vpop.eup %3415  ;;  %v2952_v3 = vmul.f32 0.5, %v2944_v59  ;;  %v2973_v51 = vmul.f32 0.6931472, %v3414_v25  ;;  %v2995_v19 = vadd.f32 %v2947_v30, %v6271_v1  ;;  %v2929_v47 = vadd.f32 %v2921_v49, %v2913_v11 }
 0x20a   :  { %v3418_v34 = vpop.eup %3417  ;;  %v2854_v44 = vxor.u32 2147483648, %v3416_v21  ;;  %v2986_v9 = vmul.f32 -0.5, %v2971_v41  ;;  %v2996_v12 = vadd.f32 %v2948_v4, %v6272_v40  ;;  %v2997_v28 = vadd.f32 %v2949_v18, %v6273_v27 }
 0x20b   :  { %v3420_v42 = vpop.eup %3419  ;;  %v2851_v61 = vxor.u32 2147483648, %v3418_v34  ;;  %v2987_v10 = vmul.f32 -0.5, %v2973_v51  ;;  %v2998_v17 = vadd.f32 %v2950_v7, %v6274_v31  ;;  %v2999_v16 = vadd.f32 %v2951_v0, %v6275_v53 }
 0x20c   :  { %v3422_v14 = vpop.eup %3421  ;;  %v2855_v63 = vsel %vm2853_vm9, %v2854_v44, %v3418_v34  ;;  %v2975_v60 = vmul.f32 0.6931472, %v3420_v42  ;;  %v3002_v50 = vadd.f32 %v2994_v46, %v2986_v9  ;;  %v3000_v29 = vadd.f32 %v2952_v3, %v2024_v55  ;;  %v6276_v55 = vld [vmem:[#allocation44_spill] sm:$0xff] }
 0x20d   :  { %v3424_v32 = vpop.eup %3423  ;;  %v2852_v54 = vsel %vm2850_vm7, %v3416_v21, %v2851_v61  ;;  %v2977_v38 = vmul.f32 0.6931472, %v3422_v14  ;;  %v3003_v24 = vadd.f32 %v2995_v19, %v2987_v10  ;;  %v2017_v22 = vadd.f32 %v6277_v39, %v6276_v55 }
 0x20e   :  { %v3426_v56 = vpop.eup %3425  ;;  %v2856_v57 = vsel %vm2849_vm8, %v2852_v54, %v2855_v63  ;;  %v2979_v62 = vmul.f32 0.6931472, %v3424_v32  ;;  %v2988_v20 = vmul.f32 -0.5, %v2975_v60  ;;  %v3240_v52 = vadd.f32 -1.0, %v3002_v50 }
 0x20f   :  { %v3428_v48 = vpop.eup %3427  ;;  %v2857_v35 = vsel %vm2846_vm4, nan, %v2856_v57  ;;  %v2981_v43 = vmul.f32 0.6931472, %v3426_v56  ;;  %v2989_v2 = vmul.f32 -0.5, %v2977_v38  ;;  %v3241_v5 = vadd.f32 -1.0, %v3003_v24 }
 0x210   :  { %v3430_v23 = vpop.eup %3429  ;;  %v2865_v15 = vmul.f32 %v2857_v35, %v2857_v35  ;;  %v2983_v37 = vmul.f32 0.6931472, %v3428_v48  ;;  %v2990_v58 = vmul.f32 -0.5, %v2979_v62  ;;  %v3004_v6 = vadd.f32 %v2996_v12, %v2988_v20 }
 0x211   :  { %v2991_v26 = vmul.f32 -0.5, %v2981_v43  ;;  %v3005_v59 = vadd.f32 %v2997_v28, %v2989_v2  ;;  %v3018_v30 = vmax.f32 %v3240_v52, 1e-07  ;;  %v2985_v13 = vmul.f32 0.6931472, %v3430_v23 }
 0x212   :  { %v2873_v11 = vsub.f32 1.0, %v2865_v15  ;;  %v2905_v49 = vmul.f32 %v2897_v33, %v2865_v15  ;;  %v2992_v4 = vmul.f32 -0.5, %v2983_v37  ;;  %v3006_v8 = vadd.f32 %v2998_v17, %v2990_v58 }
 0x213   :  { %v3007_v45 = vadd.f32 %v2999_v16, %v2991_v26  ;;  %v3242_v18 = vadd.f32 -1.0, %v3004_v6  ;;  %v3243_v7 = vadd.f32 -1.0, %v3005_v59  ;;  %v3019_v36 = vmax.f32 %v3241_v5, 1e-07 }
 0x214   :  { %v2937_v25 = vmul.f32 %v2929_v47, %v2873_v11  ;;  %v3008_v0 = vadd.f32 %v3000_v29, %v2992_v4  ;;  %v3244_v41 = vadd.f32 -1.0, %v3006_v8  ;;  %3431 = vrsqrt.f32 %v3018_v30 }
 0x215   :  { %v3245_v46 = vadd.f32 -1.0, %v3007_v45  ;;  %v5840_v21 = vmax.f32 %v3242_v18, 1e-07  ;;  %v2025_v3 = vmul.f32 2.0, %v2017_v22  ;;  %v5842_v19 = vmax.f32 %v3243_v7, 1e-07 }
 0x216   :  { %v2945_v51 = vadd.f32 %v2937_v25, %v2905_v49  ;;  %v3246_v1 = vadd.f32 -1.0, %v3008_v0  ;;  %v5844_v33 = vmax.f32 %v3244_v41, 1e-07  ;;  %3433 = vrsqrt.f32 %v3019_v36 }
 0x217   :  { %v2993_v44 = vmul.f32 -0.5, %v2985_v13  ;;  %v5846_v9 = vmax.f32 %v3245_v46, 1e-07  ;;  %3435 = vrsqrt.f32 %v5840_v21  ;;  %vm3028_vm1 = vcmp.eq.f32.partialorder %v3018_v30, inf }
 0x218   :  { %v2953_v34 = vmul.f32 0.5, %v2945_v51  ;;  %v5848_v47 = vmax.f32 %v3246_v1, 1e-07  ;;  %3437 = vrsqrt.f32 %v5842_v19  ;;  %vm3030_vm0 = vcmp.eq.f32.partialorder %v3018_v30, 0.0 }
 0x219   :  { %3439 = vrsqrt.f32 %v5844_v33  ;;  %v3031_v61 = vand.u32 2147483648, %v3018_v30  ;;  %vm3035_vm11 = vcmp.eq.f32.partialorder %v3019_v36, inf  ;;  %vm3037_vm12 = vcmp.eq.f32.partialorder %v3019_v36, 0.0 }
 0x21a   :  { %v3001_v40 = vadd.f32 %v2953_v34, %v2025_v3  ;;  %3441 = vrsqrt.f32 %v5846_v9  ;;  %v3038_v27 = vand.u32 2147483648, %v3019_v36  ;;  %vm3042_vm13 = vcmp.eq.f32.partialorder %v5840_v21, inf }
 0x21b   :  { %3443 = vrsqrt.f32 %v5848_v47  ;;  %vm3044_vm6 = vcmp.eq.f32.partialorder %v5840_v21, 0.0  ;;  %v3045_v17 = vand.u32 2147483648, %v5840_v21  ;;  %vm3049_vm10 = vcmp.eq.f32.partialorder %v5842_v19, inf }
 0x21c   :  { %v3009_v12 = vadd.f32 %v3001_v40, %v2993_v44  ;;  %vm3051_vm2 = vcmp.eq.f32.partialorder %v5842_v19, 0.0  ;;  %v3052_v63 = vand.u32 2147483648, %v5842_v19  ;;  %vm3056_vm5 = vcmp.eq.f32.partialorder %v5844_v33, inf }
 0x21d   :  { %vm3058_vm15 = vcmp.eq.f32.partialorder %v5844_v33, 0.0  ;;  %v3059_v32 = vand.u32 2147483648, %v5844_v33  ;;  %vm3063_vm14 = vcmp.eq.f32.partialorder %v5846_v9, inf  ;;  %vm3065_vm3 = vcmp.eq.f32.partialorder %v5846_v9, 0.0 }
 0x21e   :  { %v3247_v42 = vadd.f32 -1.0, %v3009_v12  ;;  %v3432_v10 = vpop.eup %3431  ;;  %v3066_v24 = vand.u32 2147483648, %v5846_v9  ;;  %vm3070_vm4 = vcmp.eq.f32.partialorder %v5848_v47, inf  ;;  %vm3072_vm8 = vcmp.eq.f32.partialorder %v5848_v47, 0.0 }
 0x21f   :  { %v3027_v31 = vmul.f32 %v3432_v10, %v3018_v30  ;;  %v3073_v37 = vand.u32 2147483648, %v5848_v47 }
 0x220   :  { %v5856_v28 = vmax.f32 %v3247_v42, 1e-07  ;;  %v3434_v14 = vpop.eup %3433 }
 0x221   :  { %v3029_v60 = vsel %vm3028_vm1, %v3018_v30, %v3027_v31  ;;  %v3034_v53 = vmul.f32 %v3434_v14, %v3019_v36  ;;  %v3436_v16 = vpop.eup %3435 }
 0x222   :  { %3445 = vrsqrt.f32 %v5856_v28  ;;  %v3032_v50 = vsel %vm3030_vm0, %v3031_v61, %v3029_v60  ;;  %v3438_v54 = vpop.eup %3437  ;;  %v3041_v29 = vmul.f32 %v3436_v16, %v5840_v21  ;;  %vm3077_vm7 = vcmp.eq.f32.partialorder %v5856_v28, inf }
 0x223   :  { %v3036_v38 = vsel %vm3035_vm11, %v3019_v36, %v3034_v53  ;;  %v3082_v56 = vadd.f32 1.0, %v3032_v50  ;;  %v3440_v57 = vpop.eup %3439  ;;  %v3048_v20 = vmul.f32 %v3438_v54, %v5842_v19  ;;  %v3080_v45 = vand.u32 2147483648, %v5856_v28 }
 0x224   :  { %v3039_v62 = vsel %vm3037_vm12, %v3038_v27, %v3036_v38  ;;  %v3442_v52 = vpop.eup %3441  ;;  %v3043_v48 = vsel %vm3042_vm13, %v5840_v21, %v3041_v29  ;;  %v3055_v35 = vmul.f32 %v3440_v57, %v5844_v33  ;;  %vm3079_vm9 = vcmp.eq.f32.partialorder %v5856_v28, 0.0 }
 0x225   :  { %v3083_v43 = vadd.f32 1.0, %v3039_v62  ;;  %3447 = vrcp.f32 %v3082_v56  ;;  %v3444_v2 = vpop.eup %3443  ;;  %v3046_v5 = vsel %vm3044_vm6, %v3045_v17, %v3043_v48  ;;  %v3050_v23 = vsel %vm3049_vm10, %v5842_v19, %v3048_v20 }
 0x226   :  { %v3062_v15 = vmul.f32 %v3442_v52, %v5846_v9  ;;  %v3053_v58 = vsel %vm3051_vm2, %v3052_v63, %v3050_v23  ;;  %v3057_v6 = vsel %vm3056_vm5, %v5844_v33, %v3055_v35  ;;  %v3069_v55 = vmul.f32 %v3444_v2, %v5848_v47 }
 0x227   :  { %v3084_v39 = vadd.f32 1.0, %v3046_v5  ;;  %v3060_v22 = vsel %vm3058_vm15, %v3059_v32, %v3057_v6  ;;  %v3085_v59 = vadd.f32 1.0, %v3053_v58  ;;  %3449 = vrcp.f32 %v3083_v43 }
 0x228   :  { %v3064_v26 = vsel %vm3063_vm14, %v5846_v9, %v3062_v15  ;;  %v3071_v11 = vsel %vm3070_vm4, %v5848_v47, %v3069_v55  ;;  %v3086_v49 = vadd.f32 1.0, %v3060_v22 }
 0x229   :  { %v3067_v30 = vsel %vm3065_vm3, %v3066_v24, %v3064_v26  ;;  %3451 = vrcp.f32 %v3084_v39  ;;  %v3074_v4 = vsel %vm3072_vm8, %v3073_v37, %v3071_v11 }
 0x22a   :  { %v3087_v8 = vadd.f32 1.0, %v3067_v30  ;;  %3453 = vrcp.f32 %v3085_v59  ;;  %v3088_v18 = vadd.f32 1.0, %v3074_v4 }
 0x22b   :  { %3455 = vrcp.f32 %v3086_v49 }
 0x22c   :  { %v3446_v13 = vpop.eup %3445  ;;  %3457 = vrcp.f32 %v3087_v8 }
 0x22d   :  { %v3076_v7 = vmul.f32 %v3446_v13, %v5856_v28  ;;  %3459 = vrcp.f32 %v3088_v18 }
 0x22f   :  { %v3078_v25 = vsel %vm3077_vm7, %v5856_v28, %v3076_v7  ;;  %v3448_v0 = vpop.eup %3447 }
 0x230   :  { %v3081_v41 = vsel %vm3079_vm9, %v3080_v45, %v3078_v25  ;;  %v3106_v46 = vsub.f32 1.0, %v3448_v0 }
 0x231   :  { %v3089_v36 = vadd.f32 1.0, %v3081_v41  ;;  %v3450_v21 = vpop.eup %3449 }
 0x232   :  { %3114 = vst [vmem:[#allocation7] sm:$0xff] %v3106_v46  ;;  %v3107_v51 = vsub.f32 1.0, %v3450_v21 }
 0x233   :  { %3461 = vrcp.f32 %v3089_v36  ;;  %v3452_v3 = vpop.eup %3451 }
 0x234   :  { %v3454_v1 = vpop.eup %3453  ;;  %v3108_v19 = vsub.f32 1.0, %v3452_v3  ;;  %3115 = vst [vmem:[#allocation7 + $0x8] sm:$0xff] %v3107_v51 }
 0x235   :  { %v3456_v33 = vpop.eup %3455  ;;  %v3109_v34 = vsub.f32 1.0, %v3454_v1 }
 0x236   :  { %v3458_v44 = vpop.eup %3457  ;;  %v3110_v9 = vsub.f32 1.0, %v3456_v33  ;;  %3116 = vst [vmem:[#allocation7 + $0x10] sm:$0xff] %v3108_v19 }
 0x237   :  { %v3460_v47 = vpop.eup %3459  ;;  %v3111_v40 = vsub.f32 1.0, %v3458_v44  ;;  %3117 = vst [vmem:[#allocation7 + $0x18] sm:$0xff] %v3109_v34 }
 0x238   :  { %v3112_v12 = vsub.f32 1.0, %v3460_v47  ;;  %3118 = vst [vmem:[#allocation7 + $0x20] sm:$0xff] %v3110_v9 }
 0x239   :  { %3119 = vst [vmem:[#allocation7 + $0x28] sm:$0xff] %v3111_v40 }
 0x23a   :  { %3120 = vst [vmem:[#allocation7 + $0x30] sm:$0xff] %v3112_v12 }
 0x23d   :  { %v3462_v42 = vpop.eup %3461 }
 0x23e   :  { %v3113_v61 = vsub.f32 1.0, %v3462_v42 }
 0x240   :  { %3121 = vst [vmem:[#allocation7 + $0x38] sm:$0xff] %v3113_v61 }
 0x241   :  { %3126 = vsyncadd [#allocation4], 896  ;;  %s3519_s1 = smov [#allocation7]  }
 0x242   :  { %s3127_s6 = sshll.u32 %s3519_s1, 4  ;;  %s3128_s6 = int_to_ptr.vmem [resolvable:$true] %s3127_s6 }
 0x243   :  { %s3471_s7 = scalar_lea.vmem %s3128_s6, 128  ;;  %s3475_s8 = scalar_lea.vmem %s3128_s6, 1024 }
 0x244   :  { %p3472_p0 = scmp.ne.s32.totalorder %s3128_s6, %s3471_s7  ;;  %p3476_p1 = scmp.lt.s32.totalorder %s3128_s6, %s3128_s6 }
 0x245   :  { %p3477_p2 = scmp.lt.s32.totalorder %s3475_s8, %s3471_s7 }
 0x247   :  { %p3478_p3 = por %p3477_p2, %p3476_p1 }
 0x249   :  { %p3479_p4 = pnand %p3478_p3, %p3472_p0 }
 0x24b   :  { %3482 = shalt.err (!%p3479_p4)
}
 0x24c   :  { %s3483_s11 = scalar_lea.hbm %s5926_s2, 128 }
 0x24d   :  { %p3484_p5 = scmp.ne.s32.totalorder %s5926_s2, %s3483_s11  ;;  %p3487_p6 = scmp.lt.u32.totalorder %s3483_s11, %s5926_s2 }
 0x24f   :  { %p3489_p7 = pnand %p3487_p6, %p3484_p5 }
 0x251   :  { %3492 = shalt.err (!%p3489_p7)
}
 0x252   :  { %s3520_s16 = smov 128   ;;  %s3521_s17 = smov 8  }
 0x253   :  { %3133 = dma.vmem_to_hbm [thread:$0]  %s3128_s6, 128, %s5926_s2, [#allocation4], %s3520_s16, %s3520_s16, %s3521_s17  }
 0x254   :  { %3497 = dma.done.wait [#allocation4], 1024  }
 0x255   :  { %3498 = vsyncadd [#allocation4], 4294966272 }
 0x256   :  { %3137 = vsyncpa [#allocation3], 1 }
 0x257   :  { %3138 = vsyncpa [#allocation6], 1 }
 0x258   :  { %3139 = vsyncpa [#allocation4], 1 }

</bundles_post_ra>
